<compile_context>
chip_gen: v5e
topology: v5e:2x2
jax: 0.10.0
libtpu: 0.0.40
codegen_flags: <defaults>
</compile_context>

<pallas_src>
import jax
import jax.numpy as jnp
from jax.experimental import pallas as pl
from jax.experimental.pallas import tpu as pltpu

_VMEM = pl.BlockSpec(memory_space=pltpu.MemorySpace.VMEM)


# --------------------------------------------------------------------------
# Fused forward kernel factory (static B, T, dims, n_layers)
# --------------------------------------------------------------------------
def _make_kernel(B, T, inp_dim, hid_dim, n_layers):
    H = hid_dim
    TB = T * B

    def conv_relu_bn(x, w0, w1, w2, bias, scale, shift):
        # Conv1d(k=3, padding=1) over time as 3 slab matmuls on shifted slabs.
        cin = x.shape[1]
        zero = jnp.zeros((B, cin), jnp.float32)
        x_prev = jnp.concatenate([zero, x[:TB - B, :]], axis=0)   # x[t-1], zero halo
        x_next = jnp.concatenate([x[B:, :], zero], axis=0)        # x[t+1], zero halo
        y = (jnp.dot(x_prev.astype(jnp.bfloat16), w0, preferred_element_type=jnp.float32)
             + jnp.dot(x.astype(jnp.bfloat16), w1, preferred_element_type=jnp.float32)
             + jnp.dot(x_next.astype(jnp.bfloat16), w2, preferred_element_type=jnp.float32))
        y = jnp.maximum(y + bias, 0.0)                 # conv bias + ReLU
        return y * scale + shift                       # eval-mode BN (folded)

    def gru_steps(xg, whh, bhn, hid):
        # Generic fully-unrolled GRU-form recurrence.
        #   xg : (T*B, 3*hid) precomputed gate inputs, columns [r | z | n],
        #        with b_ir+b_hr, b_iz+b_hz, b_in already folded in.
        #   whh: (hid, 3*hid) bf16 recurrent weight (block-diagonal for the
        #        fused bidirectional encoder, plain transposed weight otherwise).
        #   bhn: (1, hid) f32, kept inside r*(Whn h + b_hn) per PyTorch GRU.
        h = jnp.zeros((B, hid), jnp.float32)
        outs = []
        for s in range(T):                             # fully unrolled (T static)
            xt = xg[s * B:(s + 1) * B, :]              # slice the single live slab
            hg = jnp.dot(h.astype(jnp.bfloat16), whh,
                         preferred_element_type=jnp.float32)
            rz = jax.nn.sigmoid(xt[:, :2 * hid] + hg[:, :2 * hid])   # fused r/z sigmoid
            r, z = rz[:, :hid], rz[:, hid:]
            n = jnp.tanh(xt[:, 2 * hid:] + r * (hg[:, 2 * hid:] + bhn))
            h = (1.0 - z) * n + z * h
            outs.append(h)
        return outs

    def kernel(*refs):
        out_ref = refs[-1]
        it = iter(refs[:-1])
        x_ref = next(it)
        conv_p = [tuple(next(it) for _ in range(6)) for _ in range(2)]
        enc_p = [tuple(next(it) for _ in range(4)) for _ in range(n_layers)]
        dec_p = [tuple(next(it) for _ in range(4)) for _ in range(n_layers)]

        # conv stack on the time-major slab
        x = x_ref[...]                                  # (T*B, inp_dim)
        for wp in conv_p:
            x = conv_relu_bn(x, wp[0][...], wp[1][...], wp[2][...],
                             wp[3][...], wp[4][...], wp[5][...])

        # --- fused bidirectional GRU encoder ---
        # U     : step-order slab; row-block s = [h_fwd(time s) | h_bwd(time T-1-s)]
        # U_rev : time reversal of U
        # Layer 0 starts from the conv slab (true time order), so U_rev is its
        # explicit reversal; deeper layers reuse the per-step outputs directly.
        U = x
        U_rev = jnp.concatenate(
            [x[(T - 1 - s) * B:(T - s) * B, :] for s in range(T)], axis=0)
        for l in range(n_layers):
            w_in, b_in, whh, bhn = [r[...] for r in enc_p[l]]
            # one wide input projection for both directions; the backward
            # direction's time reversal is encoded in [U | U_rev] plus the
            # host-side row-permuted weight.
            xcat = jnp.concatenate([U, U_rev], axis=1).astype(jnp.bfloat16)
            xg = jnp.dot(xcat, w_in, preferred_element_type=jnp.float32) + b_in
            outs = gru_steps(xg, whh, bhn, 2 * H)       # h = [h_fwd | h_bwd]
            U = jnp.concatenate(outs, axis=0)
            U_rev = jnp.concatenate(outs[::-1], axis=0)

        # encoder output in true time order: row-block t = [h_fwd(t) | h_bwd(t)]
        cur = jnp.concatenate([U[:, :H], U_rev[:, H:]], axis=1)

        # --- unidirectional GRU decoder (hidden size = inp_dim) ---
        for l in range(n_layers):
            w_in, b_in, whh, bhn = [r[...] for r in dec_p[l]]
            xg = jnp.dot(cur.astype(jnp.bfloat16), w_in,
                         preferred_element_type=jnp.float32) + b_in
            outs = gru_steps(xg, whh, bhn, inp_dim)
            cur = jnp.concatenate(outs, axis=0)

        out_ref[...] = cur                              # single contiguous store

    return kernel


# --------------------------------------------------------------------------
# Host-side wrapper: one pallas_call, layout plumbing stays outside the kernel
# --------------------------------------------------------------------------
def forward(x, params, inp_dim, hid_dim, n_layers):
    B, T, _ = x.shape
    x_slab = jnp.transpose(x, (1, 0, 2)).reshape(T * B, inp_dim)   # time-major 2D slab

    kernel = _make_kernel(B, T, inp_dim, hid_dim, n_layers)
    flat = [x_slab] + list(params["conv1"]) + list(params["conv2"])
    for l in range(n_layers):
        flat += list(params["enc"][l])
    for l in range(n_layers):
        flat += list(params["dec"][l])

    out_slab = pl.pallas_call(
        kernel,
        out_shape=jax.ShapeDtypeStruct((T * B, inp_dim), jnp.float32),
        in_specs=[_VMEM] * len(flat),
        out_specs=_VMEM,
    )(*flat)
    return jnp.transpose(out_slab.reshape(T, B, inp_dim), (1, 0, 2))


# --------------------------------------------------------------------------
# Parameter construction: PyTorch-layout randoms, then pre-transformed into
# the kernel's fused / folded layouts (all host-side, done once).
# --------------------------------------------------------------------------
def _pt_gru_dir(key, in_size, hidden):
    """Random GRU weights in PyTorch layout: rows [r; z; n]."""
    k1, k2, k3, k4 = jax.random.split(key, 4)
    s = 0.2
    return (jax.random.normal(k1, (3 * hidden, in_size), jnp.float32) * s,   # w_ih
            jax.random.normal(k2, (3 * hidden, hidden), jnp.float32) * s,    # w_hh
            jax.random.normal(k3, (3 * hidden,), jnp.float32) * s,           # b_ih
            jax.random.normal(k4, (3 * hidden,), jnp.float32) * s)           # b_hh


def _prep_conv_bn(keys, cin, cout, eps=1e-5):
    w = jax.random.normal(next(keys), (cout, cin, 3), jnp.float32) * 0.2
    b = jax.random.normal(next(keys), (cout,), jnp.float32) * 0.1
    gamma = 1.0 + 0.1 * jax.random.normal(next(keys), (cout,), jnp.float32)
    beta = 0.1 * jax.random.normal(next(keys), (cout,), jnp.float32)
    rmean = 0.1 * jax.random.normal(next(keys), (cout,), jnp.float32)
    rvar = 1.0 + 0.5 * jax.random.uniform(next(keys), (cout,), jnp.float32)
    # per-tap matmul weights (cin, cout); tap k=0 pairs with x[t-1]
    taps = tuple(w[:, :, k].T.astype(jnp.bfloat16) for k in range(3))
    scale = gamma / jnp.sqrt(rvar + eps)                # eval-mode BN folded
    shift = beta - rmean * scale
    return taps + (b.reshape(1, cout), scale.reshape(1, cout), shift.reshape(1, cout))


def _prep_enc_layer(fwd, bwd, H, first):
    """Fuse the two directions of one bidirectional GRU layer.

    Kernel gate column layout (width 6H): [r_f, r_b, z_f, z_b, n_f, n_b].
    The kernel feeds xcat = [U | U_rev]; for layer 0 this is [x(s) | x(T-1-s)],
    for deeper layers it is [f(s), b(T-1-s), f(T-1-s), b(s)] (H-wide blocks),
    so the input-weight rows are permuted accordingly.
    """
    wih_f, whh_f, bih_f, bhh_f = fwd
    wih_b, whh_b, bih_b, bhh_b = bwd
    cin = wih_f.shape[1]
    if first:
        fwd_rows = jnp.arange(cin)                       # features of x(s)
        bwd_rows = jnp.arange(cin) + cin                 # features of x(T-1-s)
    else:
        assert cin == 2 * H
        fwd_rows = jnp.concatenate([jnp.arange(H), jnp.arange(H) + 3 * H])      # [f(s), b(s)]
        bwd_rows = jnp.concatenate([jnp.arange(H) + 2 * H, jnp.arange(H) + H])  # [f(T-1-s), b(T-1-s)]

    def gate(w, i):                                      # (cin, H) slice of (3H, cin)
        return w[i * H:(i + 1) * H, :].T

    w_in = jnp.zeros((2 * cin, 6 * H), jnp.float32)
    w_in = w_in.at[fwd_rows, 0 * H:1 * H].set(gate(wih_f, 0))   # r_f
    w_in = w_in.at[bwd_rows, 1 * H:2 * H].set(gate(wih_b, 0))   # r_b
    w_in = w_in.at[fwd_rows, 2 * H:3 * H].set(gate(wih_f, 1))   # z_f
    w_in = w_in.at[bwd_rows, 3 * H:4 * H].set(gate(wih_b, 1))   # z_b
    w_in = w_in.at[fwd_rows, 4 * H:5 * H].set(gate(wih_f, 2))   # n_f
    w_in = w_in.at[bwd_rows, 5 * H:6 * H].set(gate(wih_b, 2))   # n_b

    # block-diagonal recurrent weight for h = [h_fwd | h_bwd]
    w_hh = jnp.zeros((2 * H, 6 * H), jnp.float32)
    w_hh = w_hh.at[0:H,     0 * H:1 * H].set(whh_f[0:H].T)
    w_hh = w_hh.at[H:2 * H, 1 * H:2 * H].set(whh_b[0:H].T)
    w_hh = w_hh.at[0:H,     2 * H:3 * H].set(whh_f[H:2 * H].T)
    w_hh = w_hh.at[H:2 * H, 3 * H:4 * H].set(whh_b[H:2 * H].T)
    w_hh = w_hh.at[0:H,     4 * H:5 * H].set(whh_f[2 * H:].T)
    w_hh = w_hh.at[H:2 * H, 5 * H:6 * H].set(whh_b[2 * H:].T)

    # fold b_ir+b_hr / b_iz+b_hz into the precomputed gate input; keep b_hn apart
    b_in = jnp.concatenate([
        bih_f[0:H] + bhh_f[0:H],         bih_b[0:H] + bhh_b[0:H],
        bih_f[H:2 * H] + bhh_f[H:2 * H], bih_b[H:2 * H] + bhh_b[H:2 * H],
        bih_f[2 * H:],                   bih_b[2 * H:]]).reshape(1, 6 * H)
    bhn = jnp.concatenate([bhh_f[2 * H:], bhh_b[2 * H:]]).reshape(1, 2 * H)
    return (w_in.astype(jnp.bfloat16), b_in, w_hh.astype(jnp.bfloat16), bhn)


def _prep_dec_layer(p, D):
    wih, whh, bih, bhh = p
    b_in = jnp.concatenate([bih[0:D] + bhh[0:D],
                            bih[D:2 * D] + bhh[D:2 * D],
                            bih[2 * D:]]).reshape(1, 3 * D)
    bhn = bhh[2 * D:].reshape(1, D)
    return (wih.T.astype(jnp.bfloat16), b_in, whh.T.astype(jnp.bfloat16), bhn)


def make_params(key, inp_dim, hid_dim, n_layers):
    C = 2 * inp_dim
    keys = iter(jax.random.split(key, 64))
    params = {
        "conv1": _prep_conv_bn(keys, inp_dim, C),
        "conv2": _prep_conv_bn(keys, C, C),
    }
    enc = []
    for l in range(n_layers):
        cin = C if l == 0 else 2 * hid_dim
        fwd = _pt_gru_dir(next(keys), cin, hid_dim)
        bwd = _pt_gru_dir(next(keys), cin, hid_dim)
        enc.append(_prep_enc_layer(fwd, bwd, hid_dim, first=(l == 0)))
    params["enc"] = enc
    dec = []
    for l in range(n_layers):
        cin = 2 * hid_dim if l == 0 else inp_dim
        dec.append(_prep_dec_layer(_pt_gru_dir(next(keys), cin, inp_dim), inp_dim))
    params["dec"] = dec
    return params


if __name__ == "__main__":
    inp_dim, hid_dim, n_layers, dropout = 4, 32, 2, 0.1   # dropout: eval-mode no-op
    B, T = 2, 8

    key = jax.random.PRNGKey(0)
    kx, kp = jax.random.split(key)
    x = jax.random.normal(kx, (B, T, inp_dim), jnp.float32)
    params = make_params(kp, inp_dim, hid_dim, n_layers)

    out = forward(x, params, inp_dim, hid_dim, n_layers)
    out = jax.block_until_ready(out)

    assert out.shape == (B, T, inp_dim), out.shape
    assert bool(jnp.all(jnp.isfinite(out)))
    print("KERNEL_OK")
</pallas_src>

<mosaic_0001>
module attributes {stable_mosaic.version = 11 : i64} {
  func.func @kernel(%arg0: memref<16x4xf32, #tpu.memory_space<vmem>>, %arg1: memref<4x8xbf16, #tpu.memory_space<vmem>>, %arg2: memref<4x8xbf16, #tpu.memory_space<vmem>>, %arg3: memref<4x8xbf16, #tpu.memory_space<vmem>>, %arg4: memref<1x8xf32, #tpu.memory_space<vmem>>, %arg5: memref<1x8xf32, #tpu.memory_space<vmem>>, %arg6: memref<1x8xf32, #tpu.memory_space<vmem>>, %arg7: memref<8x8xbf16, #tpu.memory_space<vmem>>, %arg8: memref<8x8xbf16, #tpu.memory_space<vmem>>, %arg9: memref<8x8xbf16, #tpu.memory_space<vmem>>, %arg10: memref<1x8xf32, #tpu.memory_space<vmem>>, %arg11: memref<1x8xf32, #tpu.memory_space<vmem>>, %arg12: memref<1x8xf32, #tpu.memory_space<vmem>>, %arg13: memref<16x192xbf16, #tpu.memory_space<vmem>>, %arg14: memref<1x192xf32, #tpu.memory_space<vmem>>, %arg15: memref<64x192xbf16, #tpu.memory_space<vmem>>, %arg16: memref<1x64xf32, #tpu.memory_space<vmem>>, %arg17: memref<128x192xbf16, #tpu.memory_space<vmem>>, %arg18: memref<1x192xf32, #tpu.memory_space<vmem>>, %arg19: memref<64x192xbf16, #tpu.memory_space<vmem>>, %arg20: memref<1x64xf32, #tpu.memory_space<vmem>>, %arg21: memref<64x12xbf16, #tpu.memory_space<vmem>>, %arg22: memref<1x12xf32, #tpu.memory_space<vmem>>, %arg23: memref<4x12xbf16, #tpu.memory_space<vmem>>, %arg24: memref<1x4xf32, #tpu.memory_space<vmem>>, %arg25: memref<4x12xbf16, #tpu.memory_space<vmem>>, %arg26: memref<1x12xf32, #tpu.memory_space<vmem>>, %arg27: memref<4x12xbf16, #tpu.memory_space<vmem>>, %arg28: memref<1x4xf32, #tpu.memory_space<vmem>>, %arg29: memref<16x4xf32, #tpu.memory_space<vmem>>) attributes {dimension_semantics = [], scalar_prefetch = 0 : i64, scratch_operands = 0 : i64, tpu.core_type = #tpu.core_type<tc>} {
    %c0 = arith.constant 0 : index
    %c0_0 = arith.constant 0 : index
    %0 = vector.load %arg0[%c0, %c0_0] : memref<16x4xf32, #tpu.memory_space<vmem>>, vector<16x4xf32>
    %c0_1 = arith.constant 0 : index
    %c0_2 = arith.constant 0 : index
    %1 = vector.load %arg1[%c0_1, %c0_2] : memref<4x8xbf16, #tpu.memory_space<vmem>>, vector<4x8xbf16>
    %c0_3 = arith.constant 0 : index
    %c0_4 = arith.constant 0 : index
    %2 = vector.load %arg2[%c0_3, %c0_4] : memref<4x8xbf16, #tpu.memory_space<vmem>>, vector<4x8xbf16>
    %c0_5 = arith.constant 0 : index
    %c0_6 = arith.constant 0 : index
    %3 = vector.load %arg3[%c0_5, %c0_6] : memref<4x8xbf16, #tpu.memory_space<vmem>>, vector<4x8xbf16>
    %c0_7 = arith.constant 0 : index
    %c0_8 = arith.constant 0 : index
    %4 = vector.load %arg4[%c0_7, %c0_8] : memref<1x8xf32, #tpu.memory_space<vmem>>, vector<1x8xf32>
    %c0_9 = arith.constant 0 : index
    %c0_10 = arith.constant 0 : index
    %5 = vector.load %arg5[%c0_9, %c0_10] : memref<1x8xf32, #tpu.memory_space<vmem>>, vector<1x8xf32>
    %c0_11 = arith.constant 0 : index
    %c0_12 = arith.constant 0 : index
    %6 = vector.load %arg6[%c0_11, %c0_12] : memref<1x8xf32, #tpu.memory_space<vmem>>, vector<1x8xf32>
    %cst = arith.constant 0.000000e+00 : f32
    %7 = vector.broadcast %cst : f32 to vector<2x4xf32>
    %8 = vector.extract_strided_slice %0 {offsets = [0, 0], sizes = [14, 4], strides = [1, 1]} : vector<16x4xf32> to vector<14x4xf32>
    %9 = tpu.concatenate %7, %8 in 0 : vector<2x4xf32>, vector<14x4xf32> -> vector<16x4xf32>
    %10 = vector.extract_strided_slice %0 {offsets = [2, 0], sizes = [14, 4], strides = [1, 1]} : vector<16x4xf32> to vector<14x4xf32>
    %11 = tpu.concatenate %10, %7 in 0 : vector<14x4xf32>, vector<2x4xf32> -> vector<16x4xf32>
    %12 = arith.truncf %9 : vector<16x4xf32> to vector<16x4xbf16>
    %cst_13 = arith.constant dense<0.000000e+00> : vector<16x8xf32>
    %13 = tpu.matmul %12, %1, %cst_13 {dimension_numbers = #tpu.dot_dimension_numbers<[1], [0], [0], [1], [0, 0, 1, 1], [], []>} : vector<16x4xbf16>, vector<4x8xbf16>, vector<16x8xf32> -> vector<16x8xf32>
    %14 = arith.truncf %0 : vector<16x4xf32> to vector<16x4xbf16>
    %cst_14 = arith.constant dense<0.000000e+00> : vector<16x8xf32>
    %15 = tpu.matmul %14, %2, %cst_14 {dimension_numbers = #tpu.dot_dimension_numbers<[1], [0], [0], [1], [0, 0, 1, 1], [], []>} : vector<16x4xbf16>, vector<4x8xbf16>, vector<16x8xf32> -> vector<16x8xf32>
    %16 = arith.addf %13, %15 : vector<16x8xf32>
    %17 = arith.truncf %11 : vector<16x4xf32> to vector<16x4xbf16>
    %cst_15 = arith.constant dense<0.000000e+00> : vector<16x8xf32>
    %18 = tpu.matmul %17, %3, %cst_15 {dimension_numbers = #tpu.dot_dimension_numbers<[1], [0], [0], [1], [0, 0, 1, 1], [], []>} : vector<16x4xbf16>, vector<4x8xbf16>, vector<16x8xf32> -> vector<16x8xf32>
    %19 = arith.addf %16, %18 : vector<16x8xf32>
    %20 = vector.broadcast %4 : vector<1x8xf32> to vector<16x8xf32>
    %21 = arith.addf %19, %20 : vector<16x8xf32>
    %cst_16 = arith.constant 0.000000e+00 : f32
    %22 = vector.broadcast %cst_16 : f32 to vector<16x8xf32>
    %23 = arith.maximumf %21, %22 : vector<16x8xf32>
    %24 = vector.broadcast %5 : vector<1x8xf32> to vector<16x8xf32>
    %25 = arith.mulf %23, %24 : vector<16x8xf32>
    %26 = vector.broadcast %6 : vector<1x8xf32> to vector<16x8xf32>
    %27 = arith.addf %25, %26 : vector<16x8xf32>
    %c0_17 = arith.constant 0 : index
    %c0_18 = arith.constant 0 : index
    %28 = vector.load %arg7[%c0_17, %c0_18] : memref<8x8xbf16, #tpu.memory_space<vmem>>, vector<8x8xbf16>
    %c0_19 = arith.constant 0 : index
    %c0_20 = arith.constant 0 : index
    %29 = vector.load %arg8[%c0_19, %c0_20] : memref<8x8xbf16, #tpu.memory_space<vmem>>, vector<8x8xbf16>
    %c0_21 = arith.constant 0 : index
    %c0_22 = arith.constant 0 : index
    %30 = vector.load %arg9[%c0_21, %c0_22] : memref<8x8xbf16, #tpu.memory_space<vmem>>, vector<8x8xbf16>
    %c0_23 = arith.constant 0 : index
    %c0_24 = arith.constant 0 : index
    %31 = vector.load %arg10[%c0_23, %c0_24] : memref<1x8xf32, #tpu.memory_space<vmem>>, vector<1x8xf32>
    %c0_25 = arith.constant 0 : index
    %c0_26 = arith.constant 0 : index
    %32 = vector.load %arg11[%c0_25, %c0_26] : memref<1x8xf32, #tpu.memory_space<vmem>>, vector<1x8xf32>
    %c0_27 = arith.constant 0 : index
    %c0_28 = arith.constant 0 : index
    %33 = vector.load %arg12[%c0_27, %c0_28] : memref<1x8xf32, #tpu.memory_space<vmem>>, vector<1x8xf32>
    %cst_29 = arith.constant 0.000000e+00 : f32
    %34 = vector.broadcast %cst_29 : f32 to vector<2x8xf32>
    %35 = vector.extract_strided_slice %27 {offsets = [0, 0], sizes = [14, 8], strides = [1, 1]} : vector<16x8xf32> to vector<14x8xf32>
    %36 = tpu.concatenate %34, %35 in 0 : vector<2x8xf32>, vector<14x8xf32> -> vector<16x8xf32>
    %37 = vector.extract_strided_slice %27 {offsets = [2, 0], sizes = [14, 8], strides = [1, 1]} : vector<16x8xf32> to vector<14x8xf32>
    %38 = tpu.concatenate %37, %34 in 0 : vector<14x8xf32>, vector<2x8xf32> -> vector<16x8xf32>
    %39 = arith.truncf %36 : vector<16x8xf32> to vector<16x8xbf16>
    %cst_30 = arith.constant dense<0.000000e+00> : vector<16x8xf32>
    %40 = tpu.matmul %39, %28, %cst_30 {dimension_numbers = #tpu.dot_dimension_numbers<[1], [0], [0], [1], [0, 0, 1, 1], [], []>} : vector<16x8xbf16>, vector<8x8xbf16>, vector<16x8xf32> -> vector<16x8xf32>
    %41 = arith.truncf %27 : vector<16x8xf32> to vector<16x8xbf16>
    %cst_31 = arith.constant dense<0.000000e+00> : vector<16x8xf32>
    %42 = tpu.matmul %41, %29, %cst_31 {dimension_numbers = #tpu.dot_dimension_numbers<[1], [0], [0], [1], [0, 0, 1, 1], [], []>} : vector<16x8xbf16>, vector<8x8xbf16>, vector<16x8xf32> -> vector<16x8xf32>
    %43 = arith.addf %40, %42 : vector<16x8xf32>
    %44 = arith.truncf %38 : vector<16x8xf32> to vector<16x8xbf16>
    %cst_32 = arith.constant dense<0.000000e+00> : vector<16x8xf32>
    %45 = tpu.matmul %44, %30, %cst_32 {dimension_numbers = #tpu.dot_dimension_numbers<[1], [0], [0], [1], [0, 0, 1, 1], [], []>} : vector<16x8xbf16>, vector<8x8xbf16>, vector<16x8xf32> -> vector<16x8xf32>
    %46 = arith.addf %43, %45 : vector<16x8xf32>
    %47 = vector.broadcast %31 : vector<1x8xf32> to vector<16x8xf32>
    %48 = arith.addf %46, %47 : vector<16x8xf32>
    %cst_33 = arith.constant 0.000000e+00 : f32
    %49 = vector.broadcast %cst_33 : f32 to vector<16x8xf32>
    %50 = arith.maximumf %48, %49 : vector<16x8xf32>
    %51 = vector.broadcast %32 : vector<1x8xf32> to vector<16x8xf32>
    %52 = arith.mulf %50, %51 : vector<16x8xf32>
    %53 = vector.broadcast %33 : vector<1x8xf32> to vector<16x8xf32>
    %54 = arith.addf %52, %53 : vector<16x8xf32>
    %55 = vector.extract_strided_slice %54 {offsets = [14, 0], sizes = [2, 8], strides = [1, 1]} : vector<16x8xf32> to vector<2x8xf32>
    %56 = vector.extract_strided_slice %54 {offsets = [12, 0], sizes = [2, 8], strides = [1, 1]} : vector<16x8xf32> to vector<2x8xf32>
    %57 = vector.extract_strided_slice %54 {offsets = [10, 0], sizes = [2, 8], strides = [1, 1]} : vector<16x8xf32> to vector<2x8xf32>
    %58 = vector.extract_strided_slice %54 {offsets = [8, 0], sizes = [2, 8], strides = [1, 1]} : vector<16x8xf32> to vector<2x8xf32>
    %59 = vector.extract_strided_slice %54 {offsets = [6, 0], sizes = [2, 8], strides = [1, 1]} : vector<16x8xf32> to vector<2x8xf32>
    %60 = vector.extract_strided_slice %54 {offsets = [4, 0], sizes = [2, 8], strides = [1, 1]} : vector<16x8xf32> to vector<2x8xf32>
    %61 = vector.extract_strided_slice %54 {offsets = [2, 0], sizes = [2, 8], strides = [1, 1]} : vector<16x8xf32> to vector<2x8xf32>
    %62 = vector.extract_strided_slice %54 {offsets = [0, 0], sizes = [2, 8], strides = [1, 1]} : vector<16x8xf32> to vector<2x8xf32>
    %63 = tpu.concatenate %55, %56, %57, %58, %59, %60, %61, %62 in 0 : vector<2x8xf32>, vector<2x8xf32>, vector<2x8xf32>, vector<2x8xf32>, vector<2x8xf32>, vector<2x8xf32>, vector<2x8xf32>, vector<2x8xf32> -> vector<16x8xf32>
    %c0_34 = arith.constant 0 : index
    %c0_35 = arith.constant 0 : index
    %64 = vector.load %arg13[%c0_34, %c0_35] : memref<16x192xbf16, #tpu.memory_space<vmem>>, vector<16x192xbf16>
    %c0_36 = arith.constant 0 : index
    %c0_37 = arith.constant 0 : index
    %65 = vector.load %arg14[%c0_36, %c0_37] : memref<1x192xf32, #tpu.memory_space<vmem>>, vector<1x192xf32>
    %c0_38 = arith.constant 0 : index
    %c0_39 = arith.constant 0 : index
    %66 = vector.load %arg15[%c0_38, %c0_39] : memref<64x192xbf16, #tpu.memory_space<vmem>>, vector<64x192xbf16>
    %c0_40 = arith.constant 0 : index
    %c0_41 = arith.constant 0 : index
    %67 = vector.load %arg16[%c0_40, %c0_41] : memref<1x64xf32, #tpu.memory_space<vmem>>, vector<1x64xf32>
    %68 = tpu.concatenate %54, %63 in 1 : vector<16x8xf32>, vector<16x8xf32> -> vector<16x16xf32>
    %69 = arith.truncf %68 : vector<16x16xf32> to vector<16x16xbf16>
    %cst_42 = arith.constant dense<0.000000e+00> : vector<16x192xf32>
    %70 = tpu.matmul %69, %64, %cst_42 {dimension_numbers = #tpu.dot_dimension_numbers<[1], [0], [0], [1], [0, 0, 1, 1], [], []>} : vector<16x16xbf16>, vector<16x192xbf16>, vector<16x192xf32> -> vector<16x192xf32>
    %71 = vector.broadcast %65 : vector<1x192xf32> to vector<16x192xf32>
    %72 = arith.addf %70, %71 : vector<16x192xf32>
    %cst_43 = arith.constant 0.000000e+00 : f32
    %73 = vector.broadcast %cst_43 : f32 to vector<2x64xf32>
    %74 = vector.extract_strided_slice %72 {offsets = [0, 0], sizes = [2, 192], strides = [1, 1]} : vector<16x192xf32> to vector<2x192xf32>
    %75 = arith.truncf %73 : vector<2x64xf32> to vector<2x64xbf16>
    %cst_44 = arith.constant dense<0.000000e+00> : vector<2x192xf32>
    %76 = tpu.matmul %75, %66, %cst_44 {dimension_numbers = #tpu.dot_dimension_numbers<[1], [0], [0], [1], [0, 0, 1, 1], [], []>} : vector<2x64xbf16>, vector<64x192xbf16>, vector<2x192xf32> -> vector<2x192xf32>
    %77 = vector.extract_strided_slice %74 {offsets = [0, 0], sizes = [2, 128], strides = [1, 1]} : vector<2x192xf32> to vector<2x128xf32>
    %78 = vector.extract_strided_slice %76 {offsets = [0, 0], sizes = [2, 128], strides = [1, 1]} : vector<2x192xf32> to vector<2x128xf32>
    %79 = arith.addf %77, %78 : vector<2x128xf32>
    %80 = arith.negf %79 : vector<2x128xf32>
    %81 = math.exp %80 : vector<2x128xf32>
    %cst_45 = arith.constant 1.000000e+00 : f32
    %82 = vector.broadcast %cst_45 : f32 to vector<2x128xf32>
    %83 = arith.addf %82, %81 : vector<2x128xf32>
    %84 = arith.divf %82, %83 : vector<2x128xf32>
    %85 = vector.extract_strided_slice %84 {offsets = [0, 0], sizes = [2, 64], strides = [1, 1]} : vector<2x128xf32> to vector<2x64xf32>
    %86 = vector.extract_strided_slice %84 {offsets = [0, 64], sizes = [2, 64], strides = [1, 1]} : vector<2x128xf32> to vector<2x64xf32>
    %87 = vector.extract_strided_slice %74 {offsets = [0, 128], sizes = [2, 64], strides = [1, 1]} : vector<2x192xf32> to vector<2x64xf32>
    %88 = vector.extract_strided_slice %76 {offsets = [0, 128], sizes = [2, 64], strides = [1, 1]} : vector<2x192xf32> to vector<2x64xf32>
    %89 = vector.broadcast %67 : vector<1x64xf32> to vector<2x64xf32>
    %90 = arith.addf %88, %89 : vector<2x64xf32>
    %91 = arith.mulf %85, %90 : vector<2x64xf32>
    %92 = arith.addf %87, %91 : vector<2x64xf32>
    %93 = math.tanh %92 : vector<2x64xf32>
    %cst_46 = arith.constant 1.000000e+00 : f32
    %94 = vector.broadcast %cst_46 : f32 to vector<2x64xf32>
    %95 = arith.subf %94, %86 : vector<2x64xf32>
    %96 = arith.mulf %95, %93 : vector<2x64xf32>
    %97 = arith.mulf %86, %73 : vector<2x64xf32>
    %98 = arith.addf %96, %97 : vector<2x64xf32>
    %99 = vector.extract_strided_slice %72 {offsets = [2, 0], sizes = [2, 192], strides = [1, 1]} : vector<16x192xf32> to vector<2x192xf32>
    %100 = arith.truncf %98 : vector<2x64xf32> to vector<2x64xbf16>
    %cst_47 = arith.constant dense<0.000000e+00> : vector<2x192xf32>
    %101 = tpu.matmul %100, %66, %cst_47 {dimension_numbers = #tpu.dot_dimension_numbers<[1], [0], [0], [1], [0, 0, 1, 1], [], []>} : vector<2x64xbf16>, vector<64x192xbf16>, vector<2x192xf32> -> vector<2x192xf32>
    %102 = vector.extract_strided_slice %99 {offsets = [0, 0], sizes = [2, 128], strides = [1, 1]} : vector<2x192xf32> to vector<2x128xf32>
    %103 = vector.extract_strided_slice %101 {offsets = [0, 0], sizes = [2, 128], strides = [1, 1]} : vector<2x192xf32> to vector<2x128xf32>
    %104 = arith.addf %102, %103 : vector<2x128xf32>
    %105 = arith.negf %104 : vector<2x128xf32>
    %106 = math.exp %105 : vector<2x128xf32>
    %cst_48 = arith.constant 1.000000e+00 : f32
    %107 = vector.broadcast %cst_48 : f32 to vector<2x128xf32>
    %108 = arith.addf %107, %106 : vector<2x128xf32>
    %109 = arith.divf %107, %108 : vector<2x128xf32>
    %110 = vector.extract_strided_slice %109 {offsets = [0, 0], sizes = [2, 64], strides = [1, 1]} : vector<2x128xf32> to vector<2x64xf32>
    %111 = vector.extract_strided_slice %109 {offsets = [0, 64], sizes = [2, 64], strides = [1, 1]} : vector<2x128xf32> to vector<2x64xf32>
    %112 = vector.extract_strided_slice %99 {offsets = [0, 128], sizes = [2, 64], strides = [1, 1]} : vector<2x192xf32> to vector<2x64xf32>
    %113 = vector.extract_strided_slice %101 {offsets = [0, 128], sizes = [2, 64], strides = [1, 1]} : vector<2x192xf32> to vector<2x64xf32>
    %114 = vector.broadcast %67 : vector<1x64xf32> to vector<2x64xf32>
    %115 = arith.addf %113, %114 : vector<2x64xf32>
    %116 = arith.mulf %110, %115 : vector<2x64xf32>
    %117 = arith.addf %112, %116 : vector<2x64xf32>
    %118 = math.tanh %117 : vector<2x64xf32>
    %cst_49 = arith.constant 1.000000e+00 : f32
    %119 = vector.broadcast %cst_49 : f32 to vector<2x64xf32>
    %120 = arith.subf %119, %111 : vector<2x64xf32>
    %121 = arith.mulf %120, %118 : vector<2x64xf32>
    %122 = arith.mulf %111, %98 : vector<2x64xf32>
    %123 = arith.addf %121, %122 : vector<2x64xf32>
    %124 = vector.extract_strided_slice %72 {offsets = [4, 0], sizes = [2, 192], strides = [1, 1]} : vector<16x192xf32> to vector<2x192xf32>
    %125 = arith.truncf %123 : vector<2x64xf32> to vector<2x64xbf16>
    %cst_50 = arith.constant dense<0.000000e+00> : vector<2x192xf32>
    %126 = tpu.matmul %125, %66, %cst_50 {dimension_numbers = #tpu.dot_dimension_numbers<[1], [0], [0], [1], [0, 0, 1, 1], [], []>} : vector<2x64xbf16>, vector<64x192xbf16>, vector<2x192xf32> -> vector<2x192xf32>
    %127 = vector.extract_strided_slice %124 {offsets = [0, 0], sizes = [2, 128], strides = [1, 1]} : vector<2x192xf32> to vector<2x128xf32>
    %128 = vector.extract_strided_slice %126 {offsets = [0, 0], sizes = [2, 128], strides = [1, 1]} : vector<2x192xf32> to vector<2x128xf32>
    %129 = arith.addf %127, %128 : vector<2x128xf32>
    %130 = arith.negf %129 : vector<2x128xf32>
    %131 = math.exp %130 : vector<2x128xf32>
    %cst_51 = arith.constant 1.000000e+00 : f32
    %132 = vector.broadcast %cst_51 : f32 to vector<2x128xf32>
    %133 = arith.addf %132, %131 : vector<2x128xf32>
    %134 = arith.divf %132, %133 : vector<2x128xf32>
    %135 = vector.extract_strided_slice %134 {offsets = [0, 0], sizes = [2, 64], strides = [1, 1]} : vector<2x128xf32> to vector<2x64xf32>
    %136 = vector.extract_strided_slice %134 {offsets = [0, 64], sizes = [2, 64], strides = [1, 1]} : vector<2x128xf32> to vector<2x64xf32>
    %137 = vector.extract_strided_slice %124 {offsets = [0, 128], sizes = [2, 64], strides = [1, 1]} : vector<2x192xf32> to vector<2x64xf32>
    %138 = vector.extract_strided_slice %126 {offsets = [0, 128], sizes = [2, 64], strides = [1, 1]} : vector<2x192xf32> to vector<2x64xf32>
    %139 = vector.broadcast %67 : vector<1x64xf32> to vector<2x64xf32>
    %140 = arith.addf %138, %139 : vector<2x64xf32>
    %141 = arith.mulf %135, %140 : vector<2x64xf32>
    %142 = arith.addf %137, %141 : vector<2x64xf32>
    %143 = math.tanh %142 : vector<2x64xf32>
    %cst_52 = arith.constant 1.000000e+00 : f32
    %144 = vector.broadcast %cst_52 : f32 to vector<2x64xf32>
    %145 = arith.subf %144, %136 : vector<2x64xf32>
    %146 = arith.mulf %145, %143 : vector<2x64xf32>
    %147 = arith.mulf %136, %123 : vector<2x64xf32>
    %148 = arith.addf %146, %147 : vector<2x64xf32>
    %149 = vector.extract_strided_slice %72 {offsets = [6, 0], sizes = [2, 192], strides = [1, 1]} : vector<16x192xf32> to vector<2x192xf32>
    %150 = arith.truncf %148 : vector<2x64xf32> to vector<2x64xbf16>
    %cst_53 = arith.constant dense<0.000000e+00> : vector<2x192xf32>
    %151 = tpu.matmul %150, %66, %cst_53 {dimension_numbers = #tpu.dot_dimension_numbers<[1], [0], [0], [1], [0, 0, 1, 1], [], []>} : vector<2x64xbf16>, vector<64x192xbf16>, vector<2x192xf32> -> vector<2x192xf32>
    %152 = vector.extract_strided_slice %149 {offsets = [0, 0], sizes = [2, 128], strides = [1, 1]} : vector<2x192xf32> to vector<2x128xf32>
    %153 = vector.extract_strided_slice %151 {offsets = [0, 0], sizes = [2, 128], strides = [1, 1]} : vector<2x192xf32> to vector<2x128xf32>
    %154 = arith.addf %152, %153 : vector<2x128xf32>
    %155 = arith.negf %154 : vector<2x128xf32>
    %156 = math.exp %155 : vector<2x128xf32>
    %cst_54 = arith.constant 1.000000e+00 : f32
    %157 = vector.broadcast %cst_54 : f32 to vector<2x128xf32>
    %158 = arith.addf %157, %156 : vector<2x128xf32>
    %159 = arith.divf %157, %158 : vector<2x128xf32>
    %160 = vector.extract_strided_slice %159 {offsets = [0, 0], sizes = [2, 64], strides = [1, 1]} : vector<2x128xf32> to vector<2x64xf32>
    %161 = vector.extract_strided_slice %159 {offsets = [0, 64], sizes = [2, 64], strides = [1, 1]} : vector<2x128xf32> to vector<2x64xf32>
    %162 = vector.extract_strided_slice %149 {offsets = [0, 128], sizes = [2, 64], strides = [1, 1]} : vector<2x192xf32> to vector<2x64xf32>
    %163 = vector.extract_strided_slice %151 {offsets = [0, 128], sizes = [2, 64], strides = [1, 1]} : vector<2x192xf32> to vector<2x64xf32>
    %164 = vector.broadcast %67 : vector<1x64xf32> to vector<2x64xf32>
    %165 = arith.addf %163, %164 : vector<2x64xf32>
    %166 = arith.mulf %160, %165 : vector<2x64xf32>
    %167 = arith.addf %162, %166 : vector<2x64xf32>
    %168 = math.tanh %167 : vector<2x64xf32>
    %cst_55 = arith.constant 1.000000e+00 : f32
    %169 = vector.broadcast %cst_55 : f32 to vector<2x64xf32>
    %170 = arith.subf %169, %161 : vector<2x64xf32>
    %171 = arith.mulf %170, %168 : vector<2x64xf32>
    %172 = arith.mulf %161, %148 : vector<2x64xf32>
    %173 = arith.addf %171, %172 : vector<2x64xf32>
    %174 = vector.extract_strided_slice %72 {offsets = [8, 0], sizes = [2, 192], strides = [1, 1]} : vector<16x192xf32> to vector<2x192xf32>
    %175 = arith.truncf %173 : vector<2x64xf32> to vector<2x64xbf16>
    %cst_56 = arith.constant dense<0.000000e+00> : vector<2x192xf32>
    %176 = tpu.matmul %175, %66, %cst_56 {dimension_numbers = #tpu.dot_dimension_numbers<[1], [0], [0], [1], [0, 0, 1, 1], [], []>} : vector<2x64xbf16>, vector<64x192xbf16>, vector<2x192xf32> -> vector<2x192xf32>
    %177 = vector.extract_strided_slice %174 {offsets = [0, 0], sizes = [2, 128], strides = [1, 1]} : vector<2x192xf32> to vector<2x128xf32>
    %178 = vector.extract_strided_slice %176 {offsets = [0, 0], sizes = [2, 128], strides = [1, 1]} : vector<2x192xf32> to vector<2x128xf32>
    %179 = arith.addf %177, %178 : vector<2x128xf32>
    %180 = arith.negf %179 : vector<2x128xf32>
    %181 = math.exp %180 : vector<2x128xf32>
    %cst_57 = arith.constant 1.000000e+00 : f32
    %182 = vector.broadcast %cst_57 : f32 to vector<2x128xf32>
    %183 = arith.addf %182, %181 : vector<2x128xf32>
    %184 = arith.divf %182, %183 : vector<2x128xf32>
    %185 = vector.extract_strided_slice %184 {offsets = [0, 0], sizes = [2, 64], strides = [1, 1]} : vector<2x128xf32> to vector<2x64xf32>
    %186 = vector.extract_strided_slice %184 {offsets = [0, 64], sizes = [2, 64], strides = [1, 1]} : vector<2x128xf32> to vector<2x64xf32>
    %187 = vector.extract_strided_slice %174 {offsets = [0, 128], sizes = [2, 64], strides = [1, 1]} : vector<2x192xf32> to vector<2x64xf32>
    %188 = vector.extract_strided_slice %176 {offsets = [0, 128], sizes = [2, 64], strides = [1, 1]} : vector<2x192xf32> to vector<2x64xf32>
    %189 = vector.broadcast %67 : vector<1x64xf32> to vector<2x64xf32>
    %190 = arith.addf %188, %189 : vector<2x64xf32>
    %191 = arith.mulf %185, %190 : vector<2x64xf32>
    %192 = arith.addf %187, %191 : vector<2x64xf32>
    %193 = math.tanh %192 : vector<2x64xf32>
    %cst_58 = arith.constant 1.000000e+00 : f32
    %194 = vector.broadcast %cst_58 : f32 to vector<2x64xf32>
    %195 = arith.subf %194, %186 : vector<2x64xf32>
    %196 = arith.mulf %195, %193 : vector<2x64xf32>
    %197 = arith.mulf %186, %173 : vector<2x64xf32>
    %198 = arith.addf %196, %197 : vector<2x64xf32>
    %199 = vector.extract_strided_slice %72 {offsets = [10, 0], sizes = [2, 192], strides = [1, 1]} : vector<16x192xf32> to vector<2x192xf32>
    %200 = arith.truncf %198 : vector<2x64xf32> to vector<2x64xbf16>
    %cst_59 = arith.constant dense<0.000000e+00> : vector<2x192xf32>
    %201 = tpu.matmul %200, %66, %cst_59 {dimension_numbers = #tpu.dot_dimension_numbers<[1], [0], [0], [1], [0, 0, 1, 1], [], []>} : vector<2x64xbf16>, vector<64x192xbf16>, vector<2x192xf32> -> vector<2x192xf32>
    %202 = vector.extract_strided_slice %199 {offsets = [0, 0], sizes = [2, 128], strides = [1, 1]} : vector<2x192xf32> to vector<2x128xf32>
    %203 = vector.extract_strided_slice %201 {offsets = [0, 0], sizes = [2, 128], strides = [1, 1]} : vector<2x192xf32> to vector<2x128xf32>
    %204 = arith.addf %202, %203 : vector<2x128xf32>
    %205 = arith.negf %204 : vector<2x128xf32>
    %206 = math.exp %205 : vector<2x128xf32>
    %cst_60 = arith.constant 1.000000e+00 : f32
    %207 = vector.broadcast %cst_60 : f32 to vector<2x128xf32>
    %208 = arith.addf %207, %206 : vector<2x128xf32>
    %209 = arith.divf %207, %208 : vector<2x128xf32>
    %210 = vector.extract_strided_slice %209 {offsets = [0, 0], sizes = [2, 64], strides = [1, 1]} : vector<2x128xf32> to vector<2x64xf32>
    %211 = vector.extract_strided_slice %209 {offsets = [0, 64], sizes = [2, 64], strides = [1, 1]} : vector<2x128xf32> to vector<2x64xf32>
    %212 = vector.extract_strided_slice %199 {offsets = [0, 128], sizes = [2, 64], strides = [1, 1]} : vector<2x192xf32> to vector<2x64xf32>
    %213 = vector.extract_strided_slice %201 {offsets = [0, 128], sizes = [2, 64], strides = [1, 1]} : vector<2x192xf32> to vector<2x64xf32>
    %214 = vector.broadcast %67 : vector<1x64xf32> to vector<2x64xf32>
    %215 = arith.addf %213, %214 : vector<2x64xf32>
    %216 = arith.mulf %210, %215 : vector<2x64xf32>
    %217 = arith.addf %212, %216 : vector<2x64xf32>
    %218 = math.tanh %217 : vector<2x64xf32>
    %cst_61 = arith.constant 1.000000e+00 : f32
    %219 = vector.broadcast %cst_61 : f32 to vector<2x64xf32>
    %220 = arith.subf %219, %211 : vector<2x64xf32>
    %221 = arith.mulf %220, %218 : vector<2x64xf32>
    %222 = arith.mulf %211, %198 : vector<2x64xf32>
    %223 = arith.addf %221, %222 : vector<2x64xf32>
    %224 = vector.extract_strided_slice %72 {offsets = [12, 0], sizes = [2, 192], strides = [1, 1]} : vector<16x192xf32> to vector<2x192xf32>
    %225 = arith.truncf %223 : vector<2x64xf32> to vector<2x64xbf16>
    %cst_62 = arith.constant dense<0.000000e+00> : vector<2x192xf32>
    %226 = tpu.matmul %225, %66, %cst_62 {dimension_numbers = #tpu.dot_dimension_numbers<[1], [0], [0], [1], [0, 0, 1, 1], [], []>} : vector<2x64xbf16>, vector<64x192xbf16>, vector<2x192xf32> -> vector<2x192xf32>
    %227 = vector.extract_strided_slice %224 {offsets = [0, 0], sizes = [2, 128], strides = [1, 1]} : vector<2x192xf32> to vector<2x128xf32>
    %228 = vector.extract_strided_slice %226 {offsets = [0, 0], sizes = [2, 128], strides = [1, 1]} : vector<2x192xf32> to vector<2x128xf32>
    %229 = arith.addf %227, %228 : vector<2x128xf32>
    %230 = arith.negf %229 : vector<2x128xf32>
    %231 = math.exp %230 : vector<2x128xf32>
    %cst_63 = arith.constant 1.000000e+00 : f32
    %232 = vector.broadcast %cst_63 : f32 to vector<2x128xf32>
    %233 = arith.addf %232, %231 : vector<2x128xf32>
    %234 = arith.divf %232, %233 : vector<2x128xf32>
    %235 = vector.extract_strided_slice %234 {offsets = [0, 0], sizes = [2, 64], strides = [1, 1]} : vector<2x128xf32> to vector<2x64xf32>
    %236 = vector.extract_strided_slice %234 {offsets = [0, 64], sizes = [2, 64], strides = [1, 1]} : vector<2x128xf32> to vector<2x64xf32>
    %237 = vector.extract_strided_slice %224 {offsets = [0, 128], sizes = [2, 64], strides = [1, 1]} : vector<2x192xf32> to vector<2x64xf32>
    %238 = vector.extract_strided_slice %226 {offsets = [0, 128], sizes = [2, 64], strides = [1, 1]} : vector<2x192xf32> to vector<2x64xf32>
    %239 = vector.broadcast %67 : vector<1x64xf32> to vector<2x64xf32>
    %240 = arith.addf %238, %239 : vector<2x64xf32>
    %241 = arith.mulf %235, %240 : vector<2x64xf32>
    %242 = arith.addf %237, %241 : vector<2x64xf32>
    %243 = math.tanh %242 : vector<2x64xf32>
    %cst_64 = arith.constant 1.000000e+00 : f32
    %244 = vector.broadcast %cst_64 : f32 to vector<2x64xf32>
    %245 = arith.subf %244, %236 : vector<2x64xf32>
    %246 = arith.mulf %245, %243 : vector<2x64xf32>
    %247 = arith.mulf %236, %223 : vector<2x64xf32>
    %248 = arith.addf %246, %247 : vector<2x64xf32>
    %249 = vector.extract_strided_slice %72 {offsets = [14, 0], sizes = [2, 192], strides = [1, 1]} : vector<16x192xf32> to vector<2x192xf32>
    %250 = arith.truncf %248 : vector<2x64xf32> to vector<2x64xbf16>
    %cst_65 = arith.constant dense<0.000000e+00> : vector<2x192xf32>
    %251 = tpu.matmul %250, %66, %cst_65 {dimension_numbers = #tpu.dot_dimension_numbers<[1], [0], [0], [1], [0, 0, 1, 1], [], []>} : vector<2x64xbf16>, vector<64x192xbf16>, vector<2x192xf32> -> vector<2x192xf32>
    %252 = vector.extract_strided_slice %249 {offsets = [0, 0], sizes = [2, 128], strides = [1, 1]} : vector<2x192xf32> to vector<2x128xf32>
    %253 = vector.extract_strided_slice %251 {offsets = [0, 0], sizes = [2, 128], strides = [1, 1]} : vector<2x192xf32> to vector<2x128xf32>
    %254 = arith.addf %252, %253 : vector<2x128xf32>
    %255 = arith.negf %254 : vector<2x128xf32>
    %256 = math.exp %255 : vector<2x128xf32>
    %cst_66 = arith.constant 1.000000e+00 : f32
    %257 = vector.broadcast %cst_66 : f32 to vector<2x128xf32>
    %258 = arith.addf %257, %256 : vector<2x128xf32>
    %259 = arith.divf %257, %258 : vector<2x128xf32>
    %260 = vector.extract_strided_slice %259 {offsets = [0, 0], sizes = [2, 64], strides = [1, 1]} : vector<2x128xf32> to vector<2x64xf32>
    %261 = vector.extract_strided_slice %259 {offsets = [0, 64], sizes = [2, 64], strides = [1, 1]} : vector<2x128xf32> to vector<2x64xf32>
    %262 = vector.extract_strided_slice %249 {offsets = [0, 128], sizes = [2, 64], strides = [1, 1]} : vector<2x192xf32> to vector<2x64xf32>
    %263 = vector.extract_strided_slice %251 {offsets = [0, 128], sizes = [2, 64], strides = [1, 1]} : vector<2x192xf32> to vector<2x64xf32>
    %264 = vector.broadcast %67 : vector<1x64xf32> to vector<2x64xf32>
    %265 = arith.addf %263, %264 : vector<2x64xf32>
    %266 = arith.mulf %260, %265 : vector<2x64xf32>
    %267 = arith.addf %262, %266 : vector<2x64xf32>
    %268 = math.tanh %267 : vector<2x64xf32>
    %cst_67 = arith.constant 1.000000e+00 : f32
    %269 = vector.broadcast %cst_67 : f32 to vector<2x64xf32>
    %270 = arith.subf %269, %261 : vector<2x64xf32>
    %271 = arith.mulf %270, %268 : vector<2x64xf32>
    %272 = arith.mulf %261, %248 : vector<2x64xf32>
    %273 = arith.addf %271, %272 : vector<2x64xf32>
    %274 = tpu.concatenate %98, %123, %148, %173, %198, %223, %248, %273 in 0 : vector<2x64xf32>, vector<2x64xf32>, vector<2x64xf32>, vector<2x64xf32>, vector<2x64xf32>, vector<2x64xf32>, vector<2x64xf32>, vector<2x64xf32> -> vector<16x64xf32>
    %275 = tpu.concatenate %273, %248, %223, %198, %173, %148, %123, %98 in 0 : vector<2x64xf32>, vector<2x64xf32>, vector<2x64xf32>, vector<2x64xf32>, vector<2x64xf32>, vector<2x64xf32>, vector<2x64xf32>, vector<2x64xf32> -> vector<16x64xf32>
    %c0_68 = arith.constant 0 : index
    %c0_69 = arith.constant 0 : index
    %276 = vector.load %arg17[%c0_68, %c0_69] : memref<128x192xbf16, #tpu.memory_space<vmem>>, vector<128x192xbf16>
    %c0_70 = arith.constant 0 : index
    %c0_71 = arith.constant 0 : index
    %277 = vector.load %arg18[%c0_70, %c0_71] : memref<1x192xf32, #tpu.memory_space<vmem>>, vector<1x192xf32>
    %c0_72 = arith.constant 0 : index
    %c0_73 = arith.constant 0 : index
    %278 = vector.load %arg19[%c0_72, %c0_73] : memref<64x192xbf16, #tpu.memory_space<vmem>>, vector<64x192xbf16>
    %c0_74 = arith.constant 0 : index
    %c0_75 = arith.constant 0 : index
    %279 = vector.load %arg20[%c0_74, %c0_75] : memref<1x64xf32, #tpu.memory_space<vmem>>, vector<1x64xf32>
    %280 = tpu.concatenate %274, %275 in 1 : vector<16x64xf32>, vector<16x64xf32> -> vector<16x128xf32>
    %281 = arith.truncf %280 : vector<16x128xf32> to vector<16x128xbf16>
    %cst_76 = arith.constant dense<0.000000e+00> : vector<16x192xf32>
    %282 = tpu.matmul %281, %276, %cst_76 {dimension_numbers = #tpu.dot_dimension_numbers<[1], [0], [0], [1], [0, 0, 1, 1], [], []>} : vector<16x128xbf16>, vector<128x192xbf16>, vector<16x192xf32> -> vector<16x192xf32>
    %283 = vector.broadcast %277 : vector<1x192xf32> to vector<16x192xf32>
    %284 = arith.addf %282, %283 : vector<16x192xf32>
    %cst_77 = arith.constant 0.000000e+00 : f32
    %285 = vector.broadcast %cst_77 : f32 to vector<2x64xf32>
    %286 = vector.extract_strided_slice %284 {offsets = [0, 0], sizes = [2, 192], strides = [1, 1]} : vector<16x192xf32> to vector<2x192xf32>
    %287 = arith.truncf %285 : vector<2x64xf32> to vector<2x64xbf16>
    %cst_78 = arith.constant dense<0.000000e+00> : vector<2x192xf32>
    %288 = tpu.matmul %287, %278, %cst_78 {dimension_numbers = #tpu.dot_dimension_numbers<[1], [0], [0], [1], [0, 0, 1, 1], [], []>} : vector<2x64xbf16>, vector<64x192xbf16>, vector<2x192xf32> -> vector<2x192xf32>
    %289 = vector.extract_strided_slice %286 {offsets = [0, 0], sizes = [2, 128], strides = [1, 1]} : vector<2x192xf32> to vector<2x128xf32>
    %290 = vector.extract_strided_slice %288 {offsets = [0, 0], sizes = [2, 128], strides = [1, 1]} : vector<2x192xf32> to vector<2x128xf32>
    %291 = arith.addf %289, %290 : vector<2x128xf32>
    %292 = arith.negf %291 : vector<2x128xf32>
    %293 = math.exp %292 : vector<2x128xf32>
    %cst_79 = arith.constant 1.000000e+00 : f32
    %294 = vector.broadcast %cst_79 : f32 to vector<2x128xf32>
    %295 = arith.addf %294, %293 : vector<2x128xf32>
    %296 = arith.divf %294, %295 : vector<2x128xf32>
    %297 = vector.extract_strided_slice %296 {offsets = [0, 0], sizes = [2, 64], strides = [1, 1]} : vector<2x128xf32> to vector<2x64xf32>
    %298 = vector.extract_strided_slice %296 {offsets = [0, 64], sizes = [2, 64], strides = [1, 1]} : vector<2x128xf32> to vector<2x64xf32>
    %299 = vector.extract_strided_slice %286 {offsets = [0, 128], sizes = [2, 64], strides = [1, 1]} : vector<2x192xf32> to vector<2x64xf32>
    %300 = vector.extract_strided_slice %288 {offsets = [0, 128], sizes = [2, 64], strides = [1, 1]} : vector<2x192xf32> to vector<2x64xf32>
    %301 = vector.broadcast %279 : vector<1x64xf32> to vector<2x64xf32>
    %302 = arith.addf %300, %301 : vector<2x64xf32>
    %303 = arith.mulf %297, %302 : vector<2x64xf32>
    %304 = arith.addf %299, %303 : vector<2x64xf32>
    %305 = math.tanh %304 : vector<2x64xf32>
    %cst_80 = arith.constant 1.000000e+00 : f32
    %306 = vector.broadcast %cst_80 : f32 to vector<2x64xf32>
    %307 = arith.subf %306, %298 : vector<2x64xf32>
    %308 = arith.mulf %307, %305 : vector<2x64xf32>
    %309 = arith.mulf %298, %285 : vector<2x64xf32>
    %310 = arith.addf %308, %309 : vector<2x64xf32>
    %311 = vector.extract_strided_slice %284 {offsets = [2, 0], sizes = [2, 192], strides = [1, 1]} : vector<16x192xf32> to vector<2x192xf32>
    %312 = arith.truncf %310 : vector<2x64xf32> to vector<2x64xbf16>
    %cst_81 = arith.constant dense<0.000000e+00> : vector<2x192xf32>
    %313 = tpu.matmul %312, %278, %cst_81 {dimension_numbers = #tpu.dot_dimension_numbers<[1], [0], [0], [1], [0, 0, 1, 1], [], []>} : vector<2x64xbf16>, vector<64x192xbf16>, vector<2x192xf32> -> vector<2x192xf32>
    %314 = vector.extract_strided_slice %311 {offsets = [0, 0], sizes = [2, 128], strides = [1, 1]} : vector<2x192xf32> to vector<2x128xf32>
    %315 = vector.extract_strided_slice %313 {offsets = [0, 0], sizes = [2, 128], strides = [1, 1]} : vector<2x192xf32> to vector<2x128xf32>
    %316 = arith.addf %314, %315 : vector<2x128xf32>
    %317 = arith.negf %316 : vector<2x128xf32>
    %318 = math.exp %317 : vector<2x128xf32>
    %cst_82 = arith.constant 1.000000e+00 : f32
    %319 = vector.broadcast %cst_82 : f32 to vector<2x128xf32>
    %320 = arith.addf %319, %318 : vector<2x128xf32>
    %321 = arith.divf %319, %320 : vector<2x128xf32>
    %322 = vector.extract_strided_slice %321 {offsets = [0, 0], sizes = [2, 64], strides = [1, 1]} : vector<2x128xf32> to vector<2x64xf32>
    %323 = vector.extract_strided_slice %321 {offsets = [0, 64], sizes = [2, 64], strides = [1, 1]} : vector<2x128xf32> to vector<2x64xf32>
    %324 = vector.extract_strided_slice %311 {offsets = [0, 128], sizes = [2, 64], strides = [1, 1]} : vector<2x192xf32> to vector<2x64xf32>
    %325 = vector.extract_strided_slice %313 {offsets = [0, 128], sizes = [2, 64], strides = [1, 1]} : vector<2x192xf32> to vector<2x64xf32>
    %326 = vector.broadcast %279 : vector<1x64xf32> to vector<2x64xf32>
    %327 = arith.addf %325, %326 : vector<2x64xf32>
    %328 = arith.mulf %322, %327 : vector<2x64xf32>
    %329 = arith.addf %324, %328 : vector<2x64xf32>
    %330 = math.tanh %329 : vector<2x64xf32>
    %cst_83 = arith.constant 1.000000e+00 : f32
    %331 = vector.broadcast %cst_83 : f32 to vector<2x64xf32>
    %332 = arith.subf %331, %323 : vector<2x64xf32>
    %333 = arith.mulf %332, %330 : vector<2x64xf32>
    %334 = arith.mulf %323, %310 : vector<2x64xf32>
    %335 = arith.addf %333, %334 : vector<2x64xf32>
    %336 = vector.extract_strided_slice %284 {offsets = [4, 0], sizes = [2, 192], strides = [1, 1]} : vector<16x192xf32> to vector<2x192xf32>
    %337 = arith.truncf %335 : vector<2x64xf32> to vector<2x64xbf16>
    %cst_84 = arith.constant dense<0.000000e+00> : vector<2x192xf32>
    %338 = tpu.matmul %337, %278, %cst_84 {dimension_numbers = #tpu.dot_dimension_numbers<[1], [0], [0], [1], [0, 0, 1, 1], [], []>} : vector<2x64xbf16>, vector<64x192xbf16>, vector<2x192xf32> -> vector<2x192xf32>
    %339 = vector.extract_strided_slice %336 {offsets = [0, 0], sizes = [2, 128], strides = [1, 1]} : vector<2x192xf32> to vector<2x128xf32>
    %340 = vector.extract_strided_slice %338 {offsets = [0, 0], sizes = [2, 128], strides = [1, 1]} : vector<2x192xf32> to vector<2x128xf32>
    %341 = arith.addf %339, %340 : vector<2x128xf32>
    %342 = arith.negf %341 : vector<2x128xf32>
    %343 = math.exp %342 : vector<2x128xf32>
    %cst_85 = arith.constant 1.000000e+00 : f32
    %344 = vector.broadcast %cst_85 : f32 to vector<2x128xf32>
    %345 = arith.addf %344, %343 : vector<2x128xf32>
    %346 = arith.divf %344, %345 : vector<2x128xf32>
    %347 = vector.extract_strided_slice %346 {offsets = [0, 0], sizes = [2, 64], strides = [1, 1]} : vector<2x128xf32> to vector<2x64xf32>
    %348 = vector.extract_strided_slice %346 {offsets = [0, 64], sizes = [2, 64], strides = [1, 1]} : vector<2x128xf32> to vector<2x64xf32>
    %349 = vector.extract_strided_slice %336 {offsets = [0, 128], sizes = [2, 64], strides = [1, 1]} : vector<2x192xf32> to vector<2x64xf32>
    %350 = vector.extract_strided_slice %338 {offsets = [0, 128], sizes = [2, 64], strides = [1, 1]} : vector<2x192xf32> to vector<2x64xf32>
    %351 = vector.broadcast %279 : vector<1x64xf32> to vector<2x64xf32>
    %352 = arith.addf %350, %351 : vector<2x64xf32>
    %353 = arith.mulf %347, %352 : vector<2x64xf32>
    %354 = arith.addf %349, %353 : vector<2x64xf32>
    %355 = math.tanh %354 : vector<2x64xf32>
    %cst_86 = arith.constant 1.000000e+00 : f32
    %356 = vector.broadcast %cst_86 : f32 to vector<2x64xf32>
    %357 = arith.subf %356, %348 : vector<2x64xf32>
    %358 = arith.mulf %357, %355 : vector<2x64xf32>
    %359 = arith.mulf %348, %335 : vector<2x64xf32>
    %360 = arith.addf %358, %359 : vector<2x64xf32>
    %361 = vector.extract_strided_slice %284 {offsets = [6, 0], sizes = [2, 192], strides = [1, 1]} : vector<16x192xf32> to vector<2x192xf32>
    %362 = arith.truncf %360 : vector<2x64xf32> to vector<2x64xbf16>
    %cst_87 = arith.constant dense<0.000000e+00> : vector<2x192xf32>
    %363 = tpu.matmul %362, %278, %cst_87 {dimension_numbers = #tpu.dot_dimension_numbers<[1], [0], [0], [1], [0, 0, 1, 1], [], []>} : vector<2x64xbf16>, vector<64x192xbf16>, vector<2x192xf32> -> vector<2x192xf32>
    %364 = vector.extract_strided_slice %361 {offsets = [0, 0], sizes = [2, 128], strides = [1, 1]} : vector<2x192xf32> to vector<2x128xf32>
    %365 = vector.extract_strided_slice %363 {offsets = [0, 0], sizes = [2, 128], strides = [1, 1]} : vector<2x192xf32> to vector<2x128xf32>
    %366 = arith.addf %364, %365 : vector<2x128xf32>
    %367 = arith.negf %366 : vector<2x128xf32>
    %368 = math.exp %367 : vector<2x128xf32>
    %cst_88 = arith.constant 1.000000e+00 : f32
    %369 = vector.broadcast %cst_88 : f32 to vector<2x128xf32>
    %370 = arith.addf %369, %368 : vector<2x128xf32>
    %371 = arith.divf %369, %370 : vector<2x128xf32>
    %372 = vector.extract_strided_slice %371 {offsets = [0, 0], sizes = [2, 64], strides = [1, 1]} : vector<2x128xf32> to vector<2x64xf32>
    %373 = vector.extract_strided_slice %371 {offsets = [0, 64], sizes = [2, 64], strides = [1, 1]} : vector<2x128xf32> to vector<2x64xf32>
    %374 = vector.extract_strided_slice %361 {offsets = [0, 128], sizes = [2, 64], strides = [1, 1]} : vector<2x192xf32> to vector<2x64xf32>
    %375 = vector.extract_strided_slice %363 {offsets = [0, 128], sizes = [2, 64], strides = [1, 1]} : vector<2x192xf32> to vector<2x64xf32>
    %376 = vector.broadcast %279 : vector<1x64xf32> to vector<2x64xf32>
    %377 = arith.addf %375, %376 : vector<2x64xf32>
    %378 = arith.mulf %372, %377 : vector<2x64xf32>
    %379 = arith.addf %374, %378 : vector<2x64xf32>
    %380 = math.tanh %379 : vector<2x64xf32>
    %cst_89 = arith.constant 1.000000e+00 : f32
    %381 = vector.broadcast %cst_89 : f32 to vector<2x64xf32>
    %382 = arith.subf %381, %373 : vector<2x64xf32>
    %383 = arith.mulf %382, %380 : vector<2x64xf32>
    %384 = arith.mulf %373, %360 : vector<2x64xf32>
    %385 = arith.addf %383, %384 : vector<2x64xf32>
    %386 = vector.extract_strided_slice %284 {offsets = [8, 0], sizes = [2, 192], strides = [1, 1]} : vector<16x192xf32> to vector<2x192xf32>
    %387 = arith.truncf %385 : vector<2x64xf32> to vector<2x64xbf16>
    %cst_90 = arith.constant dense<0.000000e+00> : vector<2x192xf32>
    %388 = tpu.matmul %387, %278, %cst_90 {dimension_numbers = #tpu.dot_dimension_numbers<[1], [0], [0], [1], [0, 0, 1, 1], [], []>} : vector<2x64xbf16>, vector<64x192xbf16>, vector<2x192xf32> -> vector<2x192xf32>
    %389 = vector.extract_strided_slice %386 {offsets = [0, 0], sizes = [2, 128], strides = [1, 1]} : vector<2x192xf32> to vector<2x128xf32>
    %390 = vector.extract_strided_slice %388 {offsets = [0, 0], sizes = [2, 128], strides = [1, 1]} : vector<2x192xf32> to vector<2x128xf32>
    %391 = arith.addf %389, %390 : vector<2x128xf32>
    %392 = arith.negf %391 : vector<2x128xf32>
    %393 = math.exp %392 : vector<2x128xf32>
    %cst_91 = arith.constant 1.000000e+00 : f32
    %394 = vector.broadcast %cst_91 : f32 to vector<2x128xf32>
    %395 = arith.addf %394, %393 : vector<2x128xf32>
    %396 = arith.divf %394, %395 : vector<2x128xf32>
    %397 = vector.extract_strided_slice %396 {offsets = [0, 0], sizes = [2, 64], strides = [1, 1]} : vector<2x128xf32> to vector<2x64xf32>
    %398 = vector.extract_strided_slice %396 {offsets = [0, 64], sizes = [2, 64], strides = [1, 1]} : vector<2x128xf32> to vector<2x64xf32>
    %399 = vector.extract_strided_slice %386 {offsets = [0, 128], sizes = [2, 64], strides = [1, 1]} : vector<2x192xf32> to vector<2x64xf32>
    %400 = vector.extract_strided_slice %388 {offsets = [0, 128], sizes = [2, 64], strides = [1, 1]} : vector<2x192xf32> to vector<2x64xf32>
    %401 = vector.broadcast %279 : vector<1x64xf32> to vector<2x64xf32>
    %402 = arith.addf %400, %401 : vector<2x64xf32>
    %403 = arith.mulf %397, %402 : vector<2x64xf32>
    %404 = arith.addf %399, %403 : vector<2x64xf32>
    %405 = math.tanh %404 : vector<2x64xf32>
    %cst_92 = arith.constant 1.000000e+00 : f32
    %406 = vector.broadcast %cst_92 : f32 to vector<2x64xf32>
    %407 = arith.subf %406, %398 : vector<2x64xf32>
    %408 = arith.mulf %407, %405 : vector<2x64xf32>
    %409 = arith.mulf %398, %385 : vector<2x64xf32>
    %410 = arith.addf %408, %409 : vector<2x64xf32>
    %411 = vector.extract_strided_slice %284 {offsets = [10, 0], sizes = [2, 192], strides = [1, 1]} : vector<16x192xf32> to vector<2x192xf32>
    %412 = arith.truncf %410 : vector<2x64xf32> to vector<2x64xbf16>
    %cst_93 = arith.constant dense<0.000000e+00> : vector<2x192xf32>
    %413 = tpu.matmul %412, %278, %cst_93 {dimension_numbers = #tpu.dot_dimension_numbers<[1], [0], [0], [1], [0, 0, 1, 1], [], []>} : vector<2x64xbf16>, vector<64x192xbf16>, vector<2x192xf32> -> vector<2x192xf32>
    %414 = vector.extract_strided_slice %411 {offsets = [0, 0], sizes = [2, 128], strides = [1, 1]} : vector<2x192xf32> to vector<2x128xf32>
    %415 = vector.extract_strided_slice %413 {offsets = [0, 0], sizes = [2, 128], strides = [1, 1]} : vector<2x192xf32> to vector<2x128xf32>
    %416 = arith.addf %414, %415 : vector<2x128xf32>
    %417 = arith.negf %416 : vector<2x128xf32>
    %418 = math.exp %417 : vector<2x128xf32>
    %cst_94 = arith.constant 1.000000e+00 : f32
    %419 = vector.broadcast %cst_94 : f32 to vector<2x128xf32>
    %420 = arith.addf %419, %418 : vector<2x128xf32>
    %421 = arith.divf %419, %420 : vector<2x128xf32>
    %422 = vector.extract_strided_slice %421 {offsets = [0, 0], sizes = [2, 64], strides = [1, 1]} : vector<2x128xf32> to vector<2x64xf32>
    %423 = vector.extract_strided_slice %421 {offsets = [0, 64], sizes = [2, 64], strides = [1, 1]} : vector<2x128xf32> to vector<2x64xf32>
    %424 = vector.extract_strided_slice %411 {offsets = [0, 128], sizes = [2, 64], strides = [1, 1]} : vector<2x192xf32> to vector<2x64xf32>
    %425 = vector.extract_strided_slice %413 {offsets = [0, 128], sizes = [2, 64], strides = [1, 1]} : vector<2x192xf32> to vector<2x64xf32>
    %426 = vector.broadcast %279 : vector<1x64xf32> to vector<2x64xf32>
    %427 = arith.addf %425, %426 : vector<2x64xf32>
    %428 = arith.mulf %422, %427 : vector<2x64xf32>
    %429 = arith.addf %424, %428 : vector<2x64xf32>
    %430 = math.tanh %429 : vector<2x64xf32>
    %cst_95 = arith.constant 1.000000e+00 : f32
    %431 = vector.broadcast %cst_95 : f32 to vector<2x64xf32>
    %432 = arith.subf %431, %423 : vector<2x64xf32>
    %433 = arith.mulf %432, %430 : vector<2x64xf32>
    %434 = arith.mulf %423, %410 : vector<2x64xf32>
    %435 = arith.addf %433, %434 : vector<2x64xf32>
    %436 = vector.extract_strided_slice %284 {offsets = [12, 0], sizes = [2, 192], strides = [1, 1]} : vector<16x192xf32> to vector<2x192xf32>
    %437 = arith.truncf %435 : vector<2x64xf32> to vector<2x64xbf16>
    %cst_96 = arith.constant dense<0.000000e+00> : vector<2x192xf32>
    %438 = tpu.matmul %437, %278, %cst_96 {dimension_numbers = #tpu.dot_dimension_numbers<[1], [0], [0], [1], [0, 0, 1, 1], [], []>} : vector<2x64xbf16>, vector<64x192xbf16>, vector<2x192xf32> -> vector<2x192xf32>
    %439 = vector.extract_strided_slice %436 {offsets = [0, 0], sizes = [2, 128], strides = [1, 1]} : vector<2x192xf32> to vector<2x128xf32>
    %440 = vector.extract_strided_slice %438 {offsets = [0, 0], sizes = [2, 128], strides = [1, 1]} : vector<2x192xf32> to vector<2x128xf32>
    %441 = arith.addf %439, %440 : vector<2x128xf32>
    %442 = arith.negf %441 : vector<2x128xf32>
    %443 = math.exp %442 : vector<2x128xf32>
    %cst_97 = arith.constant 1.000000e+00 : f32
    %444 = vector.broadcast %cst_97 : f32 to vector<2x128xf32>
    %445 = arith.addf %444, %443 : vector<2x128xf32>
    %446 = arith.divf %444, %445 : vector<2x128xf32>
    %447 = vector.extract_strided_slice %446 {offsets = [0, 0], sizes = [2, 64], strides = [1, 1]} : vector<2x128xf32> to vector<2x64xf32>
    %448 = vector.extract_strided_slice %446 {offsets = [0, 64], sizes = [2, 64], strides = [1, 1]} : vector<2x128xf32> to vector<2x64xf32>
    %449 = vector.extract_strided_slice %436 {offsets = [0, 128], sizes = [2, 64], strides = [1, 1]} : vector<2x192xf32> to vector<2x64xf32>
    %450 = vector.extract_strided_slice %438 {offsets = [0, 128], sizes = [2, 64], strides = [1, 1]} : vector<2x192xf32> to vector<2x64xf32>
    %451 = vector.broadcast %279 : vector<1x64xf32> to vector<2x64xf32>
    %452 = arith.addf %450, %451 : vector<2x64xf32>
    %453 = arith.mulf %447, %452 : vector<2x64xf32>
    %454 = arith.addf %449, %453 : vector<2x64xf32>
    %455 = math.tanh %454 : vector<2x64xf32>
    %cst_98 = arith.constant 1.000000e+00 : f32
    %456 = vector.broadcast %cst_98 : f32 to vector<2x64xf32>
    %457 = arith.subf %456, %448 : vector<2x64xf32>
    %458 = arith.mulf %457, %455 : vector<2x64xf32>
    %459 = arith.mulf %448, %435 : vector<2x64xf32>
    %460 = arith.addf %458, %459 : vector<2x64xf32>
    %461 = vector.extract_strided_slice %284 {offsets = [14, 0], sizes = [2, 192], strides = [1, 1]} : vector<16x192xf32> to vector<2x192xf32>
    %462 = arith.truncf %460 : vector<2x64xf32> to vector<2x64xbf16>
    %cst_99 = arith.constant dense<0.000000e+00> : vector<2x192xf32>
    %463 = tpu.matmul %462, %278, %cst_99 {dimension_numbers = #tpu.dot_dimension_numbers<[1], [0], [0], [1], [0, 0, 1, 1], [], []>} : vector<2x64xbf16>, vector<64x192xbf16>, vector<2x192xf32> -> vector<2x192xf32>
    %464 = vector.extract_strided_slice %461 {offsets = [0, 0], sizes = [2, 128], strides = [1, 1]} : vector<2x192xf32> to vector<2x128xf32>
    %465 = vector.extract_strided_slice %463 {offsets = [0, 0], sizes = [2, 128], strides = [1, 1]} : vector<2x192xf32> to vector<2x128xf32>
    %466 = arith.addf %464, %465 : vector<2x128xf32>
    %467 = arith.negf %466 : vector<2x128xf32>
    %468 = math.exp %467 : vector<2x128xf32>
    %cst_100 = arith.constant 1.000000e+00 : f32
    %469 = vector.broadcast %cst_100 : f32 to vector<2x128xf32>
    %470 = arith.addf %469, %468 : vector<2x128xf32>
    %471 = arith.divf %469, %470 : vector<2x128xf32>
    %472 = vector.extract_strided_slice %471 {offsets = [0, 0], sizes = [2, 64], strides = [1, 1]} : vector<2x128xf32> to vector<2x64xf32>
    %473 = vector.extract_strided_slice %471 {offsets = [0, 64], sizes = [2, 64], strides = [1, 1]} : vector<2x128xf32> to vector<2x64xf32>
    %474 = vector.extract_strided_slice %461 {offsets = [0, 128], sizes = [2, 64], strides = [1, 1]} : vector<2x192xf32> to vector<2x64xf32>
    %475 = vector.extract_strided_slice %463 {offsets = [0, 128], sizes = [2, 64], strides = [1, 1]} : vector<2x192xf32> to vector<2x64xf32>
    %476 = vector.broadcast %279 : vector<1x64xf32> to vector<2x64xf32>
    %477 = arith.addf %475, %476 : vector<2x64xf32>
    %478 = arith.mulf %472, %477 : vector<2x64xf32>
    %479 = arith.addf %474, %478 : vector<2x64xf32>
    %480 = math.tanh %479 : vector<2x64xf32>
    %cst_101 = arith.constant 1.000000e+00 : f32
    %481 = vector.broadcast %cst_101 : f32 to vector<2x64xf32>
    %482 = arith.subf %481, %473 : vector<2x64xf32>
    %483 = arith.mulf %482, %480 : vector<2x64xf32>
    %484 = arith.mulf %473, %460 : vector<2x64xf32>
    %485 = arith.addf %483, %484 : vector<2x64xf32>
    %486 = tpu.concatenate %310, %335, %360, %385, %410, %435, %460, %485 in 0 : vector<2x64xf32>, vector<2x64xf32>, vector<2x64xf32>, vector<2x64xf32>, vector<2x64xf32>, vector<2x64xf32>, vector<2x64xf32>, vector<2x64xf32> -> vector<16x64xf32>
    %487 = tpu.concatenate %485, %460, %435, %410, %385, %360, %335, %310 in 0 : vector<2x64xf32>, vector<2x64xf32>, vector<2x64xf32>, vector<2x64xf32>, vector<2x64xf32>, vector<2x64xf32>, vector<2x64xf32>, vector<2x64xf32> -> vector<16x64xf32>
    %488 = vector.extract_strided_slice %486 {offsets = [0, 0], sizes = [16, 32], strides = [1, 1]} : vector<16x64xf32> to vector<16x32xf32>
    %489 = vector.extract_strided_slice %487 {offsets = [0, 32], sizes = [16, 32], strides = [1, 1]} : vector<16x64xf32> to vector<16x32xf32>
    %490 = tpu.concatenate %488, %489 in 1 : vector<16x32xf32>, vector<16x32xf32> -> vector<16x64xf32>
    %c0_102 = arith.constant 0 : index
    %c0_103 = arith.constant 0 : index
    %491 = vector.load %arg21[%c0_102, %c0_103] : memref<64x12xbf16, #tpu.memory_space<vmem>>, vector<64x12xbf16>
    %c0_104 = arith.constant 0 : index
    %c0_105 = arith.constant 0 : index
    %492 = vector.load %arg22[%c0_104, %c0_105] : memref<1x12xf32, #tpu.memory_space<vmem>>, vector<1x12xf32>
    %c0_106 = arith.constant 0 : index
    %c0_107 = arith.constant 0 : index
    %493 = vector.load %arg23[%c0_106, %c0_107] : memref<4x12xbf16, #tpu.memory_space<vmem>>, vector<4x12xbf16>
    %c0_108 = arith.constant 0 : index
    %c0_109 = arith.constant 0 : index
    %494 = vector.load %arg24[%c0_108, %c0_109] : memref<1x4xf32, #tpu.memory_space<vmem>>, vector<1x4xf32>
    %495 = arith.truncf %490 : vector<16x64xf32> to vector<16x64xbf16>
    %cst_110 = arith.constant dense<0.000000e+00> : vector<16x12xf32>
    %496 = tpu.matmul %495, %491, %cst_110 {dimension_numbers = #tpu.dot_dimension_numbers<[1], [0], [0], [1], [0, 0, 1, 1], [], []>} : vector<16x64xbf16>, vector<64x12xbf16>, vector<16x12xf32> -> vector<16x12xf32>
    %497 = vector.broadcast %492 : vector<1x12xf32> to vector<16x12xf32>
    %498 = arith.addf %496, %497 : vector<16x12xf32>
    %cst_111 = arith.constant 0.000000e+00 : f32
    %499 = vector.broadcast %cst_111 : f32 to vector<2x4xf32>
    %500 = vector.extract_strided_slice %498 {offsets = [0, 0], sizes = [2, 12], strides = [1, 1]} : vector<16x12xf32> to vector<2x12xf32>
    %501 = arith.truncf %499 : vector<2x4xf32> to vector<2x4xbf16>
    %cst_112 = arith.constant dense<0.000000e+00> : vector<2x12xf32>
    %502 = tpu.matmul %501, %493, %cst_112 {dimension_numbers = #tpu.dot_dimension_numbers<[1], [0], [0], [1], [0, 0, 1, 1], [], []>} : vector<2x4xbf16>, vector<4x12xbf16>, vector<2x12xf32> -> vector<2x12xf32>
    %503 = vector.extract_strided_slice %500 {offsets = [0, 0], sizes = [2, 8], strides = [1, 1]} : vector<2x12xf32> to vector<2x8xf32>
    %504 = vector.extract_strided_slice %502 {offsets = [0, 0], sizes = [2, 8], strides = [1, 1]} : vector<2x12xf32> to vector<2x8xf32>
    %505 = arith.addf %503, %504 : vector<2x8xf32>
    %506 = arith.negf %505 : vector<2x8xf32>
    %507 = math.exp %506 : vector<2x8xf32>
    %cst_113 = arith.constant 1.000000e+00 : f32
    %508 = vector.broadcast %cst_113 : f32 to vector<2x8xf32>
    %509 = arith.addf %508, %507 : vector<2x8xf32>
    %510 = arith.divf %508, %509 : vector<2x8xf32>
    %511 = vector.extract_strided_slice %510 {offsets = [0, 0], sizes = [2, 4], strides = [1, 1]} : vector<2x8xf32> to vector<2x4xf32>
    %512 = vector.extract_strided_slice %510 {offsets = [0, 4], sizes = [2, 4], strides = [1, 1]} : vector<2x8xf32> to vector<2x4xf32>
    %513 = vector.extract_strided_slice %500 {offsets = [0, 8], sizes = [2, 4], strides = [1, 1]} : vector<2x12xf32> to vector<2x4xf32>
    %514 = vector.extract_strided_slice %502 {offsets = [0, 8], sizes = [2, 4], strides = [1, 1]} : vector<2x12xf32> to vector<2x4xf32>
    %515 = vector.broadcast %494 : vector<1x4xf32> to vector<2x4xf32>
    %516 = arith.addf %514, %515 : vector<2x4xf32>
    %517 = arith.mulf %511, %516 : vector<2x4xf32>
    %518 = arith.addf %513, %517 : vector<2x4xf32>
    %519 = math.tanh %518 : vector<2x4xf32>
    %cst_114 = arith.constant 1.000000e+00 : f32
    %520 = vector.broadcast %cst_114 : f32 to vector<2x4xf32>
    %521 = arith.subf %520, %512 : vector<2x4xf32>
    %522 = arith.mulf %521, %519 : vector<2x4xf32>
    %523 = arith.mulf %512, %499 : vector<2x4xf32>
    %524 = arith.addf %522, %523 : vector<2x4xf32>
    %525 = vector.extract_strided_slice %498 {offsets = [2, 0], sizes = [2, 12], strides = [1, 1]} : vector<16x12xf32> to vector<2x12xf32>
    %526 = arith.truncf %524 : vector<2x4xf32> to vector<2x4xbf16>
    %cst_115 = arith.constant dense<0.000000e+00> : vector<2x12xf32>
    %527 = tpu.matmul %526, %493, %cst_115 {dimension_numbers = #tpu.dot_dimension_numbers<[1], [0], [0], [1], [0, 0, 1, 1], [], []>} : vector<2x4xbf16>, vector<4x12xbf16>, vector<2x12xf32> -> vector<2x12xf32>
    %528 = vector.extract_strided_slice %525 {offsets = [0, 0], sizes = [2, 8], strides = [1, 1]} : vector<2x12xf32> to vector<2x8xf32>
    %529 = vector.extract_strided_slice %527 {offsets = [0, 0], sizes = [2, 8], strides = [1, 1]} : vector<2x12xf32> to vector<2x8xf32>
    %530 = arith.addf %528, %529 : vector<2x8xf32>
    %531 = arith.negf %530 : vector<2x8xf32>
    %532 = math.exp %531 : vector<2x8xf32>
    %cst_116 = arith.constant 1.000000e+00 : f32
    %533 = vector.broadcast %cst_116 : f32 to vector<2x8xf32>
    %534 = arith.addf %533, %532 : vector<2x8xf32>
    %535 = arith.divf %533, %534 : vector<2x8xf32>
    %536 = vector.extract_strided_slice %535 {offsets = [0, 0], sizes = [2, 4], strides = [1, 1]} : vector<2x8xf32> to vector<2x4xf32>
    %537 = vector.extract_strided_slice %535 {offsets = [0, 4], sizes = [2, 4], strides = [1, 1]} : vector<2x8xf32> to vector<2x4xf32>
    %538 = vector.extract_strided_slice %525 {offsets = [0, 8], sizes = [2, 4], strides = [1, 1]} : vector<2x12xf32> to vector<2x4xf32>
    %539 = vector.extract_strided_slice %527 {offsets = [0, 8], sizes = [2, 4], strides = [1, 1]} : vector<2x12xf32> to vector<2x4xf32>
    %540 = vector.broadcast %494 : vector<1x4xf32> to vector<2x4xf32>
    %541 = arith.addf %539, %540 : vector<2x4xf32>
    %542 = arith.mulf %536, %541 : vector<2x4xf32>
    %543 = arith.addf %538, %542 : vector<2x4xf32>
    %544 = math.tanh %543 : vector<2x4xf32>
    %cst_117 = arith.constant 1.000000e+00 : f32
    %545 = vector.broadcast %cst_117 : f32 to vector<2x4xf32>
    %546 = arith.subf %545, %537 : vector<2x4xf32>
    %547 = arith.mulf %546, %544 : vector<2x4xf32>
    %548 = arith.mulf %537, %524 : vector<2x4xf32>
    %549 = arith.addf %547, %548 : vector<2x4xf32>
    %550 = vector.extract_strided_slice %498 {offsets = [4, 0], sizes = [2, 12], strides = [1, 1]} : vector<16x12xf32> to vector<2x12xf32>
    %551 = arith.truncf %549 : vector<2x4xf32> to vector<2x4xbf16>
    %cst_118 = arith.constant dense<0.000000e+00> : vector<2x12xf32>
    %552 = tpu.matmul %551, %493, %cst_118 {dimension_numbers = #tpu.dot_dimension_numbers<[1], [0], [0], [1], [0, 0, 1, 1], [], []>} : vector<2x4xbf16>, vector<4x12xbf16>, vector<2x12xf32> -> vector<2x12xf32>
    %553 = vector.extract_strided_slice %550 {offsets = [0, 0], sizes = [2, 8], strides = [1, 1]} : vector<2x12xf32> to vector<2x8xf32>
    %554 = vector.extract_strided_slice %552 {offsets = [0, 0], sizes = [2, 8], strides = [1, 1]} : vector<2x12xf32> to vector<2x8xf32>
    %555 = arith.addf %553, %554 : vector<2x8xf32>
    %556 = arith.negf %555 : vector<2x8xf32>
    %557 = math.exp %556 : vector<2x8xf32>
    %cst_119 = arith.constant 1.000000e+00 : f32
    %558 = vector.broadcast %cst_119 : f32 to vector<2x8xf32>
    %559 = arith.addf %558, %557 : vector<2x8xf32>
    %560 = arith.divf %558, %559 : vector<2x8xf32>
    %561 = vector.extract_strided_slice %560 {offsets = [0, 0], sizes = [2, 4], strides = [1, 1]} : vector<2x8xf32> to vector<2x4xf32>
    %562 = vector.extract_strided_slice %560 {offsets = [0, 4], sizes = [2, 4], strides = [1, 1]} : vector<2x8xf32> to vector<2x4xf32>
    %563 = vector.extract_strided_slice %550 {offsets = [0, 8], sizes = [2, 4], strides = [1, 1]} : vector<2x12xf32> to vector<2x4xf32>
    %564 = vector.extract_strided_slice %552 {offsets = [0, 8], sizes = [2, 4], strides = [1, 1]} : vector<2x12xf32> to vector<2x4xf32>
    %565 = vector.broadcast %494 : vector<1x4xf32> to vector<2x4xf32>
    %566 = arith.addf %564, %565 : vector<2x4xf32>
    %567 = arith.mulf %561, %566 : vector<2x4xf32>
    %568 = arith.addf %563, %567 : vector<2x4xf32>
    %569 = math.tanh %568 : vector<2x4xf32>
    %cst_120 = arith.constant 1.000000e+00 : f32
    %570 = vector.broadcast %cst_120 : f32 to vector<2x4xf32>
    %571 = arith.subf %570, %562 : vector<2x4xf32>
    %572 = arith.mulf %571, %569 : vector<2x4xf32>
    %573 = arith.mulf %562, %549 : vector<2x4xf32>
    %574 = arith.addf %572, %573 : vector<2x4xf32>
    %575 = vector.extract_strided_slice %498 {offsets = [6, 0], sizes = [2, 12], strides = [1, 1]} : vector<16x12xf32> to vector<2x12xf32>
    %576 = arith.truncf %574 : vector<2x4xf32> to vector<2x4xbf16>
    %cst_121 = arith.constant dense<0.000000e+00> : vector<2x12xf32>
    %577 = tpu.matmul %576, %493, %cst_121 {dimension_numbers = #tpu.dot_dimension_numbers<[1], [0], [0], [1], [0, 0, 1, 1], [], []>} : vector<2x4xbf16>, vector<4x12xbf16>, vector<2x12xf32> -> vector<2x12xf32>
    %578 = vector.extract_strided_slice %575 {offsets = [0, 0], sizes = [2, 8], strides = [1, 1]} : vector<2x12xf32> to vector<2x8xf32>
    %579 = vector.extract_strided_slice %577 {offsets = [0, 0], sizes = [2, 8], strides = [1, 1]} : vector<2x12xf32> to vector<2x8xf32>
    %580 = arith.addf %578, %579 : vector<2x8xf32>
    %581 = arith.negf %580 : vector<2x8xf32>
    %582 = math.exp %581 : vector<2x8xf32>
    %cst_122 = arith.constant 1.000000e+00 : f32
    %583 = vector.broadcast %cst_122 : f32 to vector<2x8xf32>
    %584 = arith.addf %583, %582 : vector<2x8xf32>
    %585 = arith.divf %583, %584 : vector<2x8xf32>
    %586 = vector.extract_strided_slice %585 {offsets = [0, 0], sizes = [2, 4], strides = [1, 1]} : vector<2x8xf32> to vector<2x4xf32>
    %587 = vector.extract_strided_slice %585 {offsets = [0, 4], sizes = [2, 4], strides = [1, 1]} : vector<2x8xf32> to vector<2x4xf32>
    %588 = vector.extract_strided_slice %575 {offsets = [0, 8], sizes = [2, 4], strides = [1, 1]} : vector<2x12xf32> to vector<2x4xf32>
    %589 = vector.extract_strided_slice %577 {offsets = [0, 8], sizes = [2, 4], strides = [1, 1]} : vector<2x12xf32> to vector<2x4xf32>
    %590 = vector.broadcast %494 : vector<1x4xf32> to vector<2x4xf32>
    %591 = arith.addf %589, %590 : vector<2x4xf32>
    %592 = arith.mulf %586, %591 : vector<2x4xf32>
    %593 = arith.addf %588, %592 : vector<2x4xf32>
    %594 = math.tanh %593 : vector<2x4xf32>
    %cst_123 = arith.constant 1.000000e+00 : f32
    %595 = vector.broadcast %cst_123 : f32 to vector<2x4xf32>
    %596 = arith.subf %595, %587 : vector<2x4xf32>
    %597 = arith.mulf %596, %594 : vector<2x4xf32>
    %598 = arith.mulf %587, %574 : vector<2x4xf32>
    %599 = arith.addf %597, %598 : vector<2x4xf32>
    %600 = vector.extract_strided_slice %498 {offsets = [8, 0], sizes = [2, 12], strides = [1, 1]} : vector<16x12xf32> to vector<2x12xf32>
    %601 = arith.truncf %599 : vector<2x4xf32> to vector<2x4xbf16>
    %cst_124 = arith.constant dense<0.000000e+00> : vector<2x12xf32>
    %602 = tpu.matmul %601, %493, %cst_124 {dimension_numbers = #tpu.dot_dimension_numbers<[1], [0], [0], [1], [0, 0, 1, 1], [], []>} : vector<2x4xbf16>, vector<4x12xbf16>, vector<2x12xf32> -> vector<2x12xf32>
    %603 = vector.extract_strided_slice %600 {offsets = [0, 0], sizes = [2, 8], strides = [1, 1]} : vector<2x12xf32> to vector<2x8xf32>
    %604 = vector.extract_strided_slice %602 {offsets = [0, 0], sizes = [2, 8], strides = [1, 1]} : vector<2x12xf32> to vector<2x8xf32>
    %605 = arith.addf %603, %604 : vector<2x8xf32>
    %606 = arith.negf %605 : vector<2x8xf32>
    %607 = math.exp %606 : vector<2x8xf32>
    %cst_125 = arith.constant 1.000000e+00 : f32
    %608 = vector.broadcast %cst_125 : f32 to vector<2x8xf32>
    %609 = arith.addf %608, %607 : vector<2x8xf32>
    %610 = arith.divf %608, %609 : vector<2x8xf32>
    %611 = vector.extract_strided_slice %610 {offsets = [0, 0], sizes = [2, 4], strides = [1, 1]} : vector<2x8xf32> to vector<2x4xf32>
    %612 = vector.extract_strided_slice %610 {offsets = [0, 4], sizes = [2, 4], strides = [1, 1]} : vector<2x8xf32> to vector<2x4xf32>
    %613 = vector.extract_strided_slice %600 {offsets = [0, 8], sizes = [2, 4], strides = [1, 1]} : vector<2x12xf32> to vector<2x4xf32>
    %614 = vector.extract_strided_slice %602 {offsets = [0, 8], sizes = [2, 4], strides = [1, 1]} : vector<2x12xf32> to vector<2x4xf32>
    %615 = vector.broadcast %494 : vector<1x4xf32> to vector<2x4xf32>
    %616 = arith.addf %614, %615 : vector<2x4xf32>
    %617 = arith.mulf %611, %616 : vector<2x4xf32>
    %618 = arith.addf %613, %617 : vector<2x4xf32>
    %619 = math.tanh %618 : vector<2x4xf32>
    %cst_126 = arith.constant 1.000000e+00 : f32
    %620 = vector.broadcast %cst_126 : f32 to vector<2x4xf32>
    %621 = arith.subf %620, %612 : vector<2x4xf32>
    %622 = arith.mulf %621, %619 : vector<2x4xf32>
    %623 = arith.mulf %612, %599 : vector<2x4xf32>
    %624 = arith.addf %622, %623 : vector<2x4xf32>
    %625 = vector.extract_strided_slice %498 {offsets = [10, 0], sizes = [2, 12], strides = [1, 1]} : vector<16x12xf32> to vector<2x12xf32>
    %626 = arith.truncf %624 : vector<2x4xf32> to vector<2x4xbf16>
    %cst_127 = arith.constant dense<0.000000e+00> : vector<2x12xf32>
    %627 = tpu.matmul %626, %493, %cst_127 {dimension_numbers = #tpu.dot_dimension_numbers<[1], [0], [0], [1], [0, 0, 1, 1], [], []>} : vector<2x4xbf16>, vector<4x12xbf16>, vector<2x12xf32> -> vector<2x12xf32>
    %628 = vector.extract_strided_slice %625 {offsets = [0, 0], sizes = [2, 8], strides = [1, 1]} : vector<2x12xf32> to vector<2x8xf32>
    %629 = vector.extract_strided_slice %627 {offsets = [0, 0], sizes = [2, 8], strides = [1, 1]} : vector<2x12xf32> to vector<2x8xf32>
    %630 = arith.addf %628, %629 : vector<2x8xf32>
    %631 = arith.negf %630 : vector<2x8xf32>
    %632 = math.exp %631 : vector<2x8xf32>
    %cst_128 = arith.constant 1.000000e+00 : f32
    %633 = vector.broadcast %cst_128 : f32 to vector<2x8xf32>
    %634 = arith.addf %633, %632 : vector<2x8xf32>
    %635 = arith.divf %633, %634 : vector<2x8xf32>
    %636 = vector.extract_strided_slice %635 {offsets = [0, 0], sizes = [2, 4], strides = [1, 1]} : vector<2x8xf32> to vector<2x4xf32>
    %637 = vector.extract_strided_slice %635 {offsets = [0, 4], sizes = [2, 4], strides = [1, 1]} : vector<2x8xf32> to vector<2x4xf32>
    %638 = vector.extract_strided_slice %625 {offsets = [0, 8], sizes = [2, 4], strides = [1, 1]} : vector<2x12xf32> to vector<2x4xf32>
    %639 = vector.extract_strided_slice %627 {offsets = [0, 8], sizes = [2, 4], strides = [1, 1]} : vector<2x12xf32> to vector<2x4xf32>
    %640 = vector.broadcast %494 : vector<1x4xf32> to vector<2x4xf32>
    %641 = arith.addf %639, %640 : vector<2x4xf32>
    %642 = arith.mulf %636, %641 : vector<2x4xf32>
    %643 = arith.addf %638, %642 : vector<2x4xf32>
    %644 = math.tanh %643 : vector<2x4xf32>
    %cst_129 = arith.constant 1.000000e+00 : f32
    %645 = vector.broadcast %cst_129 : f32 to vector<2x4xf32>
    %646 = arith.subf %645, %637 : vector<2x4xf32>
    %647 = arith.mulf %646, %644 : vector<2x4xf32>
    %648 = arith.mulf %637, %624 : vector<2x4xf32>
    %649 = arith.addf %647, %648 : vector<2x4xf32>
    %650 = vector.extract_strided_slice %498 {offsets = [12, 0], sizes = [2, 12], strides = [1, 1]} : vector<16x12xf32> to vector<2x12xf32>
    %651 = arith.truncf %649 : vector<2x4xf32> to vector<2x4xbf16>
    %cst_130 = arith.constant dense<0.000000e+00> : vector<2x12xf32>
    %652 = tpu.matmul %651, %493, %cst_130 {dimension_numbers = #tpu.dot_dimension_numbers<[1], [0], [0], [1], [0, 0, 1, 1], [], []>} : vector<2x4xbf16>, vector<4x12xbf16>, vector<2x12xf32> -> vector<2x12xf32>
    %653 = vector.extract_strided_slice %650 {offsets = [0, 0], sizes = [2, 8], strides = [1, 1]} : vector<2x12xf32> to vector<2x8xf32>
    %654 = vector.extract_strided_slice %652 {offsets = [0, 0], sizes = [2, 8], strides = [1, 1]} : vector<2x12xf32> to vector<2x8xf32>
    %655 = arith.addf %653, %654 : vector<2x8xf32>
    %656 = arith.negf %655 : vector<2x8xf32>
    %657 = math.exp %656 : vector<2x8xf32>
    %cst_131 = arith.constant 1.000000e+00 : f32
    %658 = vector.broadcast %cst_131 : f32 to vector<2x8xf32>
    %659 = arith.addf %658, %657 : vector<2x8xf32>
    %660 = arith.divf %658, %659 : vector<2x8xf32>
    %661 = vector.extract_strided_slice %660 {offsets = [0, 0], sizes = [2, 4], strides = [1, 1]} : vector<2x8xf32> to vector<2x4xf32>
    %662 = vector.extract_strided_slice %660 {offsets = [0, 4], sizes = [2, 4], strides = [1, 1]} : vector<2x8xf32> to vector<2x4xf32>
    %663 = vector.extract_strided_slice %650 {offsets = [0, 8], sizes = [2, 4], strides = [1, 1]} : vector<2x12xf32> to vector<2x4xf32>
    %664 = vector.extract_strided_slice %652 {offsets = [0, 8], sizes = [2, 4], strides = [1, 1]} : vector<2x12xf32> to vector<2x4xf32>
    %665 = vector.broadcast %494 : vector<1x4xf32> to vector<2x4xf32>
    %666 = arith.addf %664, %665 : vector<2x4xf32>
    %667 = arith.mulf %661, %666 : vector<2x4xf32>
    %668 = arith.addf %663, %667 : vector<2x4xf32>
    %669 = math.tanh %668 : vector<2x4xf32>
    %cst_132 = arith.constant 1.000000e+00 : f32
    %670 = vector.broadcast %cst_132 : f32 to vector<2x4xf32>
    %671 = arith.subf %670, %662 : vector<2x4xf32>
    %672 = arith.mulf %671, %669 : vector<2x4xf32>
    %673 = arith.mulf %662, %649 : vector<2x4xf32>
    %674 = arith.addf %672, %673 : vector<2x4xf32>
    %675 = vector.extract_strided_slice %498 {offsets = [14, 0], sizes = [2, 12], strides = [1, 1]} : vector<16x12xf32> to vector<2x12xf32>
    %676 = arith.truncf %674 : vector<2x4xf32> to vector<2x4xbf16>
    %cst_133 = arith.constant dense<0.000000e+00> : vector<2x12xf32>
    %677 = tpu.matmul %676, %493, %cst_133 {dimension_numbers = #tpu.dot_dimension_numbers<[1], [0], [0], [1], [0, 0, 1, 1], [], []>} : vector<2x4xbf16>, vector<4x12xbf16>, vector<2x12xf32> -> vector<2x12xf32>
    %678 = vector.extract_strided_slice %675 {offsets = [0, 0], sizes = [2, 8], strides = [1, 1]} : vector<2x12xf32> to vector<2x8xf32>
    %679 = vector.extract_strided_slice %677 {offsets = [0, 0], sizes = [2, 8], strides = [1, 1]} : vector<2x12xf32> to vector<2x8xf32>
    %680 = arith.addf %678, %679 : vector<2x8xf32>
    %681 = arith.negf %680 : vector<2x8xf32>
    %682 = math.exp %681 : vector<2x8xf32>
    %cst_134 = arith.constant 1.000000e+00 : f32
    %683 = vector.broadcast %cst_134 : f32 to vector<2x8xf32>
    %684 = arith.addf %683, %682 : vector<2x8xf32>
    %685 = arith.divf %683, %684 : vector<2x8xf32>
    %686 = vector.extract_strided_slice %685 {offsets = [0, 0], sizes = [2, 4], strides = [1, 1]} : vector<2x8xf32> to vector<2x4xf32>
    %687 = vector.extract_strided_slice %685 {offsets = [0, 4], sizes = [2, 4], strides = [1, 1]} : vector<2x8xf32> to vector<2x4xf32>
    %688 = vector.extract_strided_slice %675 {offsets = [0, 8], sizes = [2, 4], strides = [1, 1]} : vector<2x12xf32> to vector<2x4xf32>
    %689 = vector.extract_strided_slice %677 {offsets = [0, 8], sizes = [2, 4], strides = [1, 1]} : vector<2x12xf32> to vector<2x4xf32>
    %690 = vector.broadcast %494 : vector<1x4xf32> to vector<2x4xf32>
    %691 = arith.addf %689, %690 : vector<2x4xf32>
    %692 = arith.mulf %686, %691 : vector<2x4xf32>
    %693 = arith.addf %688, %692 : vector<2x4xf32>
    %694 = math.tanh %693 : vector<2x4xf32>
    %cst_135 = arith.constant 1.000000e+00 : f32
    %695 = vector.broadcast %cst_135 : f32 to vector<2x4xf32>
    %696 = arith.subf %695, %687 : vector<2x4xf32>
    %697 = arith.mulf %696, %694 : vector<2x4xf32>
    %698 = arith.mulf %687, %674 : vector<2x4xf32>
    %699 = arith.addf %697, %698 : vector<2x4xf32>
    %700 = tpu.concatenate %524, %549, %574, %599, %624, %649, %674, %699 in 0 : vector<2x4xf32>, vector<2x4xf32>, vector<2x4xf32>, vector<2x4xf32>, vector<2x4xf32>, vector<2x4xf32>, vector<2x4xf32>, vector<2x4xf32> -> vector<16x4xf32>
    %c0_136 = arith.constant 0 : index
    %c0_137 = arith.constant 0 : index
    %701 = vector.load %arg25[%c0_136, %c0_137] : memref<4x12xbf16, #tpu.memory_space<vmem>>, vector<4x12xbf16>
    %c0_138 = arith.constant 0 : index
    %c0_139 = arith.constant 0 : index
    %702 = vector.load %arg26[%c0_138, %c0_139] : memref<1x12xf32, #tpu.memory_space<vmem>>, vector<1x12xf32>
    %c0_140 = arith.constant 0 : index
    %c0_141 = arith.constant 0 : index
    %703 = vector.load %arg27[%c0_140, %c0_141] : memref<4x12xbf16, #tpu.memory_space<vmem>>, vector<4x12xbf16>
    %c0_142 = arith.constant 0 : index
    %c0_143 = arith.constant 0 : index
    %704 = vector.load %arg28[%c0_142, %c0_143] : memref<1x4xf32, #tpu.memory_space<vmem>>, vector<1x4xf32>
    %705 = arith.truncf %700 : vector<16x4xf32> to vector<16x4xbf16>
    %cst_144 = arith.constant dense<0.000000e+00> : vector<16x12xf32>
    %706 = tpu.matmul %705, %701, %cst_144 {dimension_numbers = #tpu.dot_dimension_numbers<[1], [0], [0], [1], [0, 0, 1, 1], [], []>} : vector<16x4xbf16>, vector<4x12xbf16>, vector<16x12xf32> -> vector<16x12xf32>
    %707 = vector.broadcast %702 : vector<1x12xf32> to vector<16x12xf32>
    %708 = arith.addf %706, %707 : vector<16x12xf32>
    %cst_145 = arith.constant 0.000000e+00 : f32
    %709 = vector.broadcast %cst_145 : f32 to vector<2x4xf32>
    %710 = vector.extract_strided_slice %708 {offsets = [0, 0], sizes = [2, 12], strides = [1, 1]} : vector<16x12xf32> to vector<2x12xf32>
    %711 = arith.truncf %709 : vector<2x4xf32> to vector<2x4xbf16>
    %cst_146 = arith.constant dense<0.000000e+00> : vector<2x12xf32>
    %712 = tpu.matmul %711, %703, %cst_146 {dimension_numbers = #tpu.dot_dimension_numbers<[1], [0], [0], [1], [0, 0, 1, 1], [], []>} : vector<2x4xbf16>, vector<4x12xbf16>, vector<2x12xf32> -> vector<2x12xf32>
    %713 = vector.extract_strided_slice %710 {offsets = [0, 0], sizes = [2, 8], strides = [1, 1]} : vector<2x12xf32> to vector<2x8xf32>
    %714 = vector.extract_strided_slice %712 {offsets = [0, 0], sizes = [2, 8], strides = [1, 1]} : vector<2x12xf32> to vector<2x8xf32>
    %715 = arith.addf %713, %714 : vector<2x8xf32>
    %716 = arith.negf %715 : vector<2x8xf32>
    %717 = math.exp %716 : vector<2x8xf32>
    %cst_147 = arith.constant 1.000000e+00 : f32
    %718 = vector.broadcast %cst_147 : f32 to vector<2x8xf32>
    %719 = arith.addf %718, %717 : vector<2x8xf32>
    %720 = arith.divf %718, %719 : vector<2x8xf32>
    %721 = vector.extract_strided_slice %720 {offsets = [0, 0], sizes = [2, 4], strides = [1, 1]} : vector<2x8xf32> to vector<2x4xf32>
    %722 = vector.extract_strided_slice %720 {offsets = [0, 4], sizes = [2, 4], strides = [1, 1]} : vector<2x8xf32> to vector<2x4xf32>
    %723 = vector.extract_strided_slice %710 {offsets = [0, 8], sizes = [2, 4], strides = [1, 1]} : vector<2x12xf32> to vector<2x4xf32>
    %724 = vector.extract_strided_slice %712 {offsets = [0, 8], sizes = [2, 4], strides = [1, 1]} : vector<2x12xf32> to vector<2x4xf32>
    %725 = vector.broadcast %704 : vector<1x4xf32> to vector<2x4xf32>
    %726 = arith.addf %724, %725 : vector<2x4xf32>
    %727 = arith.mulf %721, %726 : vector<2x4xf32>
    %728 = arith.addf %723, %727 : vector<2x4xf32>
    %729 = math.tanh %728 : vector<2x4xf32>
    %cst_148 = arith.constant 1.000000e+00 : f32
    %730 = vector.broadcast %cst_148 : f32 to vector<2x4xf32>
    %731 = arith.subf %730, %722 : vector<2x4xf32>
    %732 = arith.mulf %731, %729 : vector<2x4xf32>
    %733 = arith.mulf %722, %709 : vector<2x4xf32>
    %734 = arith.addf %732, %733 : vector<2x4xf32>
    %735 = vector.extract_strided_slice %708 {offsets = [2, 0], sizes = [2, 12], strides = [1, 1]} : vector<16x12xf32> to vector<2x12xf32>
    %736 = arith.truncf %734 : vector<2x4xf32> to vector<2x4xbf16>
    %cst_149 = arith.constant dense<0.000000e+00> : vector<2x12xf32>
    %737 = tpu.matmul %736, %703, %cst_149 {dimension_numbers = #tpu.dot_dimension_numbers<[1], [0], [0], [1], [0, 0, 1, 1], [], []>} : vector<2x4xbf16>, vector<4x12xbf16>, vector<2x12xf32> -> vector<2x12xf32>
    %738 = vector.extract_strided_slice %735 {offsets = [0, 0], sizes = [2, 8], strides = [1, 1]} : vector<2x12xf32> to vector<2x8xf32>
    %739 = vector.extract_strided_slice %737 {offsets = [0, 0], sizes = [2, 8], strides = [1, 1]} : vector<2x12xf32> to vector<2x8xf32>
    %740 = arith.addf %738, %739 : vector<2x8xf32>
    %741 = arith.negf %740 : vector<2x8xf32>
    %742 = math.exp %741 : vector<2x8xf32>
    %cst_150 = arith.constant 1.000000e+00 : f32
    %743 = vector.broadcast %cst_150 : f32 to vector<2x8xf32>
    %744 = arith.addf %743, %742 : vector<2x8xf32>
    %745 = arith.divf %743, %744 : vector<2x8xf32>
    %746 = vector.extract_strided_slice %745 {offsets = [0, 0], sizes = [2, 4], strides = [1, 1]} : vector<2x8xf32> to vector<2x4xf32>
    %747 = vector.extract_strided_slice %745 {offsets = [0, 4], sizes = [2, 4], strides = [1, 1]} : vector<2x8xf32> to vector<2x4xf32>
    %748 = vector.extract_strided_slice %735 {offsets = [0, 8], sizes = [2, 4], strides = [1, 1]} : vector<2x12xf32> to vector<2x4xf32>
    %749 = vector.extract_strided_slice %737 {offsets = [0, 8], sizes = [2, 4], strides = [1, 1]} : vector<2x12xf32> to vector<2x4xf32>
    %750 = vector.broadcast %704 : vector<1x4xf32> to vector<2x4xf32>
    %751 = arith.addf %749, %750 : vector<2x4xf32>
    %752 = arith.mulf %746, %751 : vector<2x4xf32>
    %753 = arith.addf %748, %752 : vector<2x4xf32>
    %754 = math.tanh %753 : vector<2x4xf32>
    %cst_151 = arith.constant 1.000000e+00 : f32
    %755 = vector.broadcast %cst_151 : f32 to vector<2x4xf32>
    %756 = arith.subf %755, %747 : vector<2x4xf32>
    %757 = arith.mulf %756, %754 : vector<2x4xf32>
    %758 = arith.mulf %747, %734 : vector<2x4xf32>
    %759 = arith.addf %757, %758 : vector<2x4xf32>
    %760 = vector.extract_strided_slice %708 {offsets = [4, 0], sizes = [2, 12], strides = [1, 1]} : vector<16x12xf32> to vector<2x12xf32>
    %761 = arith.truncf %759 : vector<2x4xf32> to vector<2x4xbf16>
    %cst_152 = arith.constant dense<0.000000e+00> : vector<2x12xf32>
    %762 = tpu.matmul %761, %703, %cst_152 {dimension_numbers = #tpu.dot_dimension_numbers<[1], [0], [0], [1], [0, 0, 1, 1], [], []>} : vector<2x4xbf16>, vector<4x12xbf16>, vector<2x12xf32> -> vector<2x12xf32>
    %763 = vector.extract_strided_slice %760 {offsets = [0, 0], sizes = [2, 8], strides = [1, 1]} : vector<2x12xf32> to vector<2x8xf32>
    %764 = vector.extract_strided_slice %762 {offsets = [0, 0], sizes = [2, 8], strides = [1, 1]} : vector<2x12xf32> to vector<2x8xf32>
    %765 = arith.addf %763, %764 : vector<2x8xf32>
    %766 = arith.negf %765 : vector<2x8xf32>
    %767 = math.exp %766 : vector<2x8xf32>
    %cst_153 = arith.constant 1.000000e+00 : f32
    %768 = vector.broadcast %cst_153 : f32 to vector<2x8xf32>
    %769 = arith.addf %768, %767 : vector<2x8xf32>
    %770 = arith.divf %768, %769 : vector<2x8xf32>
    %771 = vector.extract_strided_slice %770 {offsets = [0, 0], sizes = [2, 4], strides = [1, 1]} : vector<2x8xf32> to vector<2x4xf32>
    %772 = vector.extract_strided_slice %770 {offsets = [0, 4], sizes = [2, 4], strides = [1, 1]} : vector<2x8xf32> to vector<2x4xf32>
    %773 = vector.extract_strided_slice %760 {offsets = [0, 8], sizes = [2, 4], strides = [1, 1]} : vector<2x12xf32> to vector<2x4xf32>
    %774 = vector.extract_strided_slice %762 {offsets = [0, 8], sizes = [2, 4], strides = [1, 1]} : vector<2x12xf32> to vector<2x4xf32>
    %775 = vector.broadcast %704 : vector<1x4xf32> to vector<2x4xf32>
    %776 = arith.addf %774, %775 : vector<2x4xf32>
    %777 = arith.mulf %771, %776 : vector<2x4xf32>
    %778 = arith.addf %773, %777 : vector<2x4xf32>
    %779 = math.tanh %778 : vector<2x4xf32>
    %cst_154 = arith.constant 1.000000e+00 : f32
    %780 = vector.broadcast %cst_154 : f32 to vector<2x4xf32>
    %781 = arith.subf %780, %772 : vector<2x4xf32>
    %782 = arith.mulf %781, %779 : vector<2x4xf32>
    %783 = arith.mulf %772, %759 : vector<2x4xf32>
    %784 = arith.addf %782, %783 : vector<2x4xf32>
    %785 = vector.extract_strided_slice %708 {offsets = [6, 0], sizes = [2, 12], strides = [1, 1]} : vector<16x12xf32> to vector<2x12xf32>
    %786 = arith.truncf %784 : vector<2x4xf32> to vector<2x4xbf16>
    %cst_155 = arith.constant dense<0.000000e+00> : vector<2x12xf32>
    %787 = tpu.matmul %786, %703, %cst_155 {dimension_numbers = #tpu.dot_dimension_numbers<[1], [0], [0], [1], [0, 0, 1, 1], [], []>} : vector<2x4xbf16>, vector<4x12xbf16>, vector<2x12xf32> -> vector<2x12xf32>
    %788 = vector.extract_strided_slice %785 {offsets = [0, 0], sizes = [2, 8], strides = [1, 1]} : vector<2x12xf32> to vector<2x8xf32>
    %789 = vector.extract_strided_slice %787 {offsets = [0, 0], sizes = [2, 8], strides = [1, 1]} : vector<2x12xf32> to vector<2x8xf32>
    %790 = arith.addf %788, %789 : vector<2x8xf32>
    %791 = arith.negf %790 : vector<2x8xf32>
    %792 = math.exp %791 : vector<2x8xf32>
    %cst_156 = arith.constant 1.000000e+00 : f32
    %793 = vector.broadcast %cst_156 : f32 to vector<2x8xf32>
    %794 = arith.addf %793, %792 : vector<2x8xf32>
    %795 = arith.divf %793, %794 : vector<2x8xf32>
    %796 = vector.extract_strided_slice %795 {offsets = [0, 0], sizes = [2, 4], strides = [1, 1]} : vector<2x8xf32> to vector<2x4xf32>
    %797 = vector.extract_strided_slice %795 {offsets = [0, 4], sizes = [2, 4], strides = [1, 1]} : vector<2x8xf32> to vector<2x4xf32>
    %798 = vector.extract_strided_slice %785 {offsets = [0, 8], sizes = [2, 4], strides = [1, 1]} : vector<2x12xf32> to vector<2x4xf32>
    %799 = vector.extract_strided_slice %787 {offsets = [0, 8], sizes = [2, 4], strides = [1, 1]} : vector<2x12xf32> to vector<2x4xf32>
    %800 = vector.broadcast %704 : vector<1x4xf32> to vector<2x4xf32>
    %801 = arith.addf %799, %800 : vector<2x4xf32>
    %802 = arith.mulf %796, %801 : vector<2x4xf32>
    %803 = arith.addf %798, %802 : vector<2x4xf32>
    %804 = math.tanh %803 : vector<2x4xf32>
    %cst_157 = arith.constant 1.000000e+00 : f32
    %805 = vector.broadcast %cst_157 : f32 to vector<2x4xf32>
    %806 = arith.subf %805, %797 : vector<2x4xf32>
    %807 = arith.mulf %806, %804 : vector<2x4xf32>
    %808 = arith.mulf %797, %784 : vector<2x4xf32>
    %809 = arith.addf %807, %808 : vector<2x4xf32>
    %810 = vector.extract_strided_slice %708 {offsets = [8, 0], sizes = [2, 12], strides = [1, 1]} : vector<16x12xf32> to vector<2x12xf32>
    %811 = arith.truncf %809 : vector<2x4xf32> to vector<2x4xbf16>
    %cst_158 = arith.constant dense<0.000000e+00> : vector<2x12xf32>
    %812 = tpu.matmul %811, %703, %cst_158 {dimension_numbers = #tpu.dot_dimension_numbers<[1], [0], [0], [1], [0, 0, 1, 1], [], []>} : vector<2x4xbf16>, vector<4x12xbf16>, vector<2x12xf32> -> vector<2x12xf32>
    %813 = vector.extract_strided_slice %810 {offsets = [0, 0], sizes = [2, 8], strides = [1, 1]} : vector<2x12xf32> to vector<2x8xf32>
    %814 = vector.extract_strided_slice %812 {offsets = [0, 0], sizes = [2, 8], strides = [1, 1]} : vector<2x12xf32> to vector<2x8xf32>
    %815 = arith.addf %813, %814 : vector<2x8xf32>
    %816 = arith.negf %815 : vector<2x8xf32>
    %817 = math.exp %816 : vector<2x8xf32>
    %cst_159 = arith.constant 1.000000e+00 : f32
    %818 = vector.broadcast %cst_159 : f32 to vector<2x8xf32>
    %819 = arith.addf %818, %817 : vector<2x8xf32>
    %820 = arith.divf %818, %819 : vector<2x8xf32>
    %821 = vector.extract_strided_slice %820 {offsets = [0, 0], sizes = [2, 4], strides = [1, 1]} : vector<2x8xf32> to vector<2x4xf32>
    %822 = vector.extract_strided_slice %820 {offsets = [0, 4], sizes = [2, 4], strides = [1, 1]} : vector<2x8xf32> to vector<2x4xf32>
    %823 = vector.extract_strided_slice %810 {offsets = [0, 8], sizes = [2, 4], strides = [1, 1]} : vector<2x12xf32> to vector<2x4xf32>
    %824 = vector.extract_strided_slice %812 {offsets = [0, 8], sizes = [2, 4], strides = [1, 1]} : vector<2x12xf32> to vector<2x4xf32>
    %825 = vector.broadcast %704 : vector<1x4xf32> to vector<2x4xf32>
    %826 = arith.addf %824, %825 : vector<2x4xf32>
    %827 = arith.mulf %821, %826 : vector<2x4xf32>
    %828 = arith.addf %823, %827 : vector<2x4xf32>
    %829 = math.tanh %828 : vector<2x4xf32>
    %cst_160 = arith.constant 1.000000e+00 : f32
    %830 = vector.broadcast %cst_160 : f32 to vector<2x4xf32>
    %831 = arith.subf %830, %822 : vector<2x4xf32>
    %832 = arith.mulf %831, %829 : vector<2x4xf32>
    %833 = arith.mulf %822, %809 : vector<2x4xf32>
    %834 = arith.addf %832, %833 : vector<2x4xf32>
    %835 = vector.extract_strided_slice %708 {offsets = [10, 0], sizes = [2, 12], strides = [1, 1]} : vector<16x12xf32> to vector<2x12xf32>
    %836 = arith.truncf %834 : vector<2x4xf32> to vector<2x4xbf16>
    %cst_161 = arith.constant dense<0.000000e+00> : vector<2x12xf32>
    %837 = tpu.matmul %836, %703, %cst_161 {dimension_numbers = #tpu.dot_dimension_numbers<[1], [0], [0], [1], [0, 0, 1, 1], [], []>} : vector<2x4xbf16>, vector<4x12xbf16>, vector<2x12xf32> -> vector<2x12xf32>
    %838 = vector.extract_strided_slice %835 {offsets = [0, 0], sizes = [2, 8], strides = [1, 1]} : vector<2x12xf32> to vector<2x8xf32>
    %839 = vector.extract_strided_slice %837 {offsets = [0, 0], sizes = [2, 8], strides = [1, 1]} : vector<2x12xf32> to vector<2x8xf32>
    %840 = arith.addf %838, %839 : vector<2x8xf32>
    %841 = arith.negf %840 : vector<2x8xf32>
    %842 = math.exp %841 : vector<2x8xf32>
    %cst_162 = arith.constant 1.000000e+00 : f32
    %843 = vector.broadcast %cst_162 : f32 to vector<2x8xf32>
    %844 = arith.addf %843, %842 : vector<2x8xf32>
    %845 = arith.divf %843, %844 : vector<2x8xf32>
    %846 = vector.extract_strided_slice %845 {offsets = [0, 0], sizes = [2, 4], strides = [1, 1]} : vector<2x8xf32> to vector<2x4xf32>
    %847 = vector.extract_strided_slice %845 {offsets = [0, 4], sizes = [2, 4], strides = [1, 1]} : vector<2x8xf32> to vector<2x4xf32>
    %848 = vector.extract_strided_slice %835 {offsets = [0, 8], sizes = [2, 4], strides = [1, 1]} : vector<2x12xf32> to vector<2x4xf32>
    %849 = vector.extract_strided_slice %837 {offsets = [0, 8], sizes = [2, 4], strides = [1, 1]} : vector<2x12xf32> to vector<2x4xf32>
    %850 = vector.broadcast %704 : vector<1x4xf32> to vector<2x4xf32>
    %851 = arith.addf %849, %850 : vector<2x4xf32>
    %852 = arith.mulf %846, %851 : vector<2x4xf32>
    %853 = arith.addf %848, %852 : vector<2x4xf32>
    %854 = math.tanh %853 : vector<2x4xf32>
    %cst_163 = arith.constant 1.000000e+00 : f32
    %855 = vector.broadcast %cst_163 : f32 to vector<2x4xf32>
    %856 = arith.subf %855, %847 : vector<2x4xf32>
    %857 = arith.mulf %856, %854 : vector<2x4xf32>
    %858 = arith.mulf %847, %834 : vector<2x4xf32>
    %859 = arith.addf %857, %858 : vector<2x4xf32>
    %860 = vector.extract_strided_slice %708 {offsets = [12, 0], sizes = [2, 12], strides = [1, 1]} : vector<16x12xf32> to vector<2x12xf32>
    %861 = arith.truncf %859 : vector<2x4xf32> to vector<2x4xbf16>
    %cst_164 = arith.constant dense<0.000000e+00> : vector<2x12xf32>
    %862 = tpu.matmul %861, %703, %cst_164 {dimension_numbers = #tpu.dot_dimension_numbers<[1], [0], [0], [1], [0, 0, 1, 1], [], []>} : vector<2x4xbf16>, vector<4x12xbf16>, vector<2x12xf32> -> vector<2x12xf32>
    %863 = vector.extract_strided_slice %860 {offsets = [0, 0], sizes = [2, 8], strides = [1, 1]} : vector<2x12xf32> to vector<2x8xf32>
    %864 = vector.extract_strided_slice %862 {offsets = [0, 0], sizes = [2, 8], strides = [1, 1]} : vector<2x12xf32> to vector<2x8xf32>
    %865 = arith.addf %863, %864 : vector<2x8xf32>
    %866 = arith.negf %865 : vector<2x8xf32>
    %867 = math.exp %866 : vector<2x8xf32>
    %cst_165 = arith.constant 1.000000e+00 : f32
    %868 = vector.broadcast %cst_165 : f32 to vector<2x8xf32>
    %869 = arith.addf %868, %867 : vector<2x8xf32>
    %870 = arith.divf %868, %869 : vector<2x8xf32>
    %871 = vector.extract_strided_slice %870 {offsets = [0, 0], sizes = [2, 4], strides = [1, 1]} : vector<2x8xf32> to vector<2x4xf32>
    %872 = vector.extract_strided_slice %870 {offsets = [0, 4], sizes = [2, 4], strides = [1, 1]} : vector<2x8xf32> to vector<2x4xf32>
    %873 = vector.extract_strided_slice %860 {offsets = [0, 8], sizes = [2, 4], strides = [1, 1]} : vector<2x12xf32> to vector<2x4xf32>
    %874 = vector.extract_strided_slice %862 {offsets = [0, 8], sizes = [2, 4], strides = [1, 1]} : vector<2x12xf32> to vector<2x4xf32>
    %875 = vector.broadcast %704 : vector<1x4xf32> to vector<2x4xf32>
    %876 = arith.addf %874, %875 : vector<2x4xf32>
    %877 = arith.mulf %871, %876 : vector<2x4xf32>
    %878 = arith.addf %873, %877 : vector<2x4xf32>
    %879 = math.tanh %878 : vector<2x4xf32>
    %cst_166 = arith.constant 1.000000e+00 : f32
    %880 = vector.broadcast %cst_166 : f32 to vector<2x4xf32>
    %881 = arith.subf %880, %872 : vector<2x4xf32>
    %882 = arith.mulf %881, %879 : vector<2x4xf32>
    %883 = arith.mulf %872, %859 : vector<2x4xf32>
    %884 = arith.addf %882, %883 : vector<2x4xf32>
    %885 = vector.extract_strided_slice %708 {offsets = [14, 0], sizes = [2, 12], strides = [1, 1]} : vector<16x12xf32> to vector<2x12xf32>
    %886 = arith.truncf %884 : vector<2x4xf32> to vector<2x4xbf16>
    %cst_167 = arith.constant dense<0.000000e+00> : vector<2x12xf32>
    %887 = tpu.matmul %886, %703, %cst_167 {dimension_numbers = #tpu.dot_dimension_numbers<[1], [0], [0], [1], [0, 0, 1, 1], [], []>} : vector<2x4xbf16>, vector<4x12xbf16>, vector<2x12xf32> -> vector<2x12xf32>
    %888 = vector.extract_strided_slice %885 {offsets = [0, 0], sizes = [2, 8], strides = [1, 1]} : vector<2x12xf32> to vector<2x8xf32>
    %889 = vector.extract_strided_slice %887 {offsets = [0, 0], sizes = [2, 8], strides = [1, 1]} : vector<2x12xf32> to vector<2x8xf32>
    %890 = arith.addf %888, %889 : vector<2x8xf32>
    %891 = arith.negf %890 : vector<2x8xf32>
    %892 = math.exp %891 : vector<2x8xf32>
    %cst_168 = arith.constant 1.000000e+00 : f32
    %893 = vector.broadcast %cst_168 : f32 to vector<2x8xf32>
    %894 = arith.addf %893, %892 : vector<2x8xf32>
    %895 = arith.divf %893, %894 : vector<2x8xf32>
    %896 = vector.extract_strided_slice %895 {offsets = [0, 0], sizes = [2, 4], strides = [1, 1]} : vector<2x8xf32> to vector<2x4xf32>
    %897 = vector.extract_strided_slice %895 {offsets = [0, 4], sizes = [2, 4], strides = [1, 1]} : vector<2x8xf32> to vector<2x4xf32>
    %898 = vector.extract_strided_slice %885 {offsets = [0, 8], sizes = [2, 4], strides = [1, 1]} : vector<2x12xf32> to vector<2x4xf32>
    %899 = vector.extract_strided_slice %887 {offsets = [0, 8], sizes = [2, 4], strides = [1, 1]} : vector<2x12xf32> to vector<2x4xf32>
    %900 = vector.broadcast %704 : vector<1x4xf32> to vector<2x4xf32>
    %901 = arith.addf %899, %900 : vector<2x4xf32>
    %902 = arith.mulf %896, %901 : vector<2x4xf32>
    %903 = arith.addf %898, %902 : vector<2x4xf32>
    %904 = math.tanh %903 : vector<2x4xf32>
    %cst_169 = arith.constant 1.000000e+00 : f32
    %905 = vector.broadcast %cst_169 : f32 to vector<2x4xf32>
    %906 = arith.subf %905, %897 : vector<2x4xf32>
    %907 = arith.mulf %906, %904 : vector<2x4xf32>
    %908 = arith.mulf %897, %884 : vector<2x4xf32>
    %909 = arith.addf %907, %908 : vector<2x4xf32>
    %910 = tpu.concatenate %734, %759, %784, %809, %834, %859, %884, %909 in 0 : vector<2x4xf32>, vector<2x4xf32>, vector<2x4xf32>, vector<2x4xf32>, vector<2x4xf32>, vector<2x4xf32>, vector<2x4xf32>, vector<2x4xf32> -> vector<16x4xf32>
    %c0_170 = arith.constant 0 : index
    %c0_171 = arith.constant 0 : index
    %911 = vector.load %arg29[%c0_170, %c0_171] : memref<16x4xf32, #tpu.memory_space<vmem>>, vector<16x4xf32>
    tpu.vector_store %arg29[%c0_170, %c0_171], %910 {strides = array<i32>} : memref<16x4xf32, #tpu.memory_space<vmem>>, vector<16x4xf32>,
    return
  }
}

</mosaic_0001>

<bundles_post_ra>
// kernel: tpu_custom_call.1
= control target key start
LH: loop header
LB: loop body
LE: loop exit
PB: predicated region body
PF: predicated region fallthrough
CT: control target
= control target key end

     0   :  { %s3612_s3 = smov 2   ;;  %s3613_s7 = smov 1   ;;  %vm133_vm0 = vcmask 1041408   ;;  %vm149_vm1 = vcmask 31744   ;;  %vm140_vm2 = vcmask 1045504   ;;  %vm256_vm3 = vcmask 1043456   ;;  %s4563_s0 = inlined_call_operand.smem [shape: u32[30], index: -1, kind: input, shape index: {}] }
   0x1   :  { %s3053_s6 = sld [smem:[%s4563_s0 + %s3612_s3]]   ;;  %s3614_s11 = smov 3   ;;  %vm252_vm4 = vcmask 64512   ;;  %vm388_vm5 = vcmask 130048   ;;  %vm460_vm10 = vcmask 523264  }
   0x2   :  { %s3052_s10 = sld [smem:[%s4563_s0 + %s3613_s7]]   ;;  %s3615_s18 = smov 4  }
   0x3   :  { %s3054_s14 = sld [smem:[%s4563_s0 + %s3614_s11]]   ;;  %s3616_s22 = smov 5  }
   0x4   :  { %s1_s17 = sld [smem:[%s4563_s0]]   ;;  %s3617_s26 = smov 6  }
   0x5   :  { %s3055_s21 = sld [smem:[%s4563_s0 + %s3615_s18]]   ;;  %s3618_s30 = smov 8  }
   0x6   :  { %s3056_s25 = sld [smem:[%s4563_s0 + %s3616_s22]]   ;;  %s3619_s4 = smov 7  }
   0x7   :  { %v126_v0 = vld [vmem:[%s3053_s6] sm:$0x3]  ;;  %s3681_s29 = sld [smem:[%s4563_s0 + %s3617_s26]]   ;;  %s3620_s8 = smov 9  }
   0x8   :  { %v154_v1 = vsel %vm133_vm0, %v126_v0, 0  ;;  %v125_v2 = vld [vmem:[%s3052_s10] sm:$0x3]  ;;  %s3059_s3 = sld [smem:[%s4563_s0 + %s3618_s30]]   ;;  %s3621_s12 = smov 10  }
   0x9   :  { %163 = vmatpush.bf16.msra.mxu0 %v154_v1  ;;  %v174_v3 = vsel %vm133_vm0, %v125_v2, 0  ;;  %v127_v4 = vld [vmem:[%s3054_s14] sm:$0x3]  ;;  %s3058_s7 = sld [smem:[%s4563_s0 + %s3619_s4]]   ;;  %s3622_s16 = smov 11  }
   0xa   :  { %183 = vmatpush.bf16.msra.mxu1 %v174_v3  ;;  %v195_v5 = vsel %vm133_vm0, %v127_v4, 0  ;;  %v123_v6 = vld [vmem:[%s1_s17] sm:$0xff]  ;;  %v124_v7 = vld [vmem:[%s1_s17 + $0x8] sm:$0xff]  ;;  %s3060_s11 = sld [smem:[%s4563_s0 + %s3620_s8]]   ;;  %s3623_s20 = smov 12  }
   0xb   :  { %204 = vmatpush.bf16.msra.mxu2 %v195_v5  ;;  %v135_v8 = vrot.slane %v124_v7, 6  ;;  %v141_v9 = vrot.slane %v123_v6, 2  ;;  %v148_v10 = vpack.c.bf16 %v124_v7, %v123_v6  ;;  %v134_v11 = vrot.slane %v123_v6, 6  ;;  %v3408_v28 = vld [vmem:[%s3055_s21] ss:$0 sm:$0xff]  ;;  %s3061_s15 = sld [smem:[%s4563_s0 + %s3621_s12]]   ;;  %s3624_s24 = smov 13  }
   0xc   :  { %v142_v12 = vrot.slane %v124_v7, 2  ;;  %v3409_v35 = vld [vmem:[%s3056_s25] ss:$0 sm:$0xff]  ;;  %s3708_s19 = sld [smem:[%s4563_s0 + %s3622_s16]]   ;;  %s3625_s28 = smov 15  }
   0xd   :  { %3081 = vmatmul.msk.bf16.vlgmr.msra.gmra.mxu0 %vm149_vm1, %v148_v10  ;;  %v136_v13 = vsel %vm133_vm0, %v134_v11, %v135_v8  ;;  %v139_v14 = vsel %vm133_vm0, 0.0, %v134_v11  ;;  %v3410_v39 = vld [vmem:[%s3681_s29] ss:$0 sm:$0xff]  ;;  %s3713_s23 = sld [smem:[%s4563_s0 + %s3623_s20]]   ;;  %s3630_s12 = smov 17  }
   0xe   :  { %v147_v15 = vpack.c.bf16 %v136_v13, %v139_v14  ;;  %v143_v16 = vsel %vm140_vm2, %v141_v9, %v142_v12  ;;  %v146_v17 = vsel %vm140_vm2, %v142_v12, 0.0  ;;  %v231_v19 = vld [vmem:[%s3059_s3] sm:$0xf]  ;;  %s3720_s27 = sld [smem:[%s4563_s0 + %s3624_s24]]   ;;  %s3627_s3 = smov 16  }
   0xf   :  { %v190_v18 = vpack.c.bf16 %v146_v17, %v143_v16  ;;  %v258_v20 = vsel %vm256_vm3, %v231_v19, 0  ;;  %v230_v21 = vld [vmem:[%s3058_s7] sm:$0xf]  ;;  %s3725_s2 = sld [smem:[%s4563_s0 + %s3625_s28]]   ;;  %s3628_s7 = smov 14  }
  0x10   :  { %3082 = vmatmul.msk.bf16.vlgmr.msra.gmra.mxu1 %vm149_vm1, %v147_v15  ;;  %267 = vmatpush.bf16.msra.mxu3 %v258_v20  ;;  %v232_v22 = vld [vmem:[%s3060_s11] sm:$0xf]  ;;  %v278_v23 = vsel %vm256_vm3, %v230_v21, 0  ;;  %s3067_s6 = sld [smem:[%s4563_s0 + %s3627_s3]]   ;;  %s3629_s11 = smov 64  }
  0x11   :  { %3083 = vmatmul.msk.bf16.vlgmr.msra.gmra.mxu2 %vm149_vm1, %v190_v18  ;;  %v299_v24 = vsel %vm256_vm3, %v232_v22, 0  ;;  %287 = vmatpush.bf16.msrb.mxu0 %v278_v23  ;;  %v3411_v6 = vld [vmem:[%s3061_s15] ss:$0 sm:$0xff]  ;;  %s3065_s10 = sld [smem:[%s4563_s0 + %s3628_s7]]   ;;  %s3631_s16 = smov 19  }
  0x12   :  { %308 = vmatpush.bf16.msrb.mxu1 %v299_v24  ;;  %v3412_v12 = vld [vmem:[%s3708_s19] ss:$0 sm:$0xff]  ;;  %s3998_s15 = sld [smem:[%s4563_s0 + %s3630_s12]]   ;;  %s3632_s20 = smov 20  }
  0x13   :  { %v3413_v14 = vld [vmem:[%s3713_s23] ss:$0 sm:$0xff]  ;;  %s4003_s19 = sld [smem:[%s4563_s0 + %s3631_s16]]   ;;  %s3633_s24 = smov 18  }
  0x14   :  { %v3089_v57 = vld [vmem:[%s3720_s27] sm:$0xf]  ;;  %v3318_v58 = vld [vmem:[%s3720_s27 + $0x4] sm:$0xf0]  ;;  %s3071_s23 = sld [smem:[%s4563_s0 + %s3632_s20]]   ;;  %s3634_s28 = smov 24  }
  0x15   :  { %v3123_v59 = vld [vmem:[%s3725_s2 + $0x30] sm:$0xf]  ;;  %v3090_v60 = vor.u32 %v3318_v58, %v3089_v57  ;;  %v3326_v61 = vld [vmem:[%s3725_s2 + $0x34] sm:$0xf0]  ;;  %v3115_v62 = vld [vmem:[%s3725_s2 + $0x20] sm:$0xf] }
  0x16   :  { %v3324_v63 = vld [vmem:[%s3725_s2 + $0x24] sm:$0xf0]  ;;  %v3733_v1 = vor.u32 %v3326_v61, %v3123_v59  ;;  %v3107_v7 = vld [vmem:[%s3725_s2 + $0x10] sm:$0xf]  ;;  %v3322_v8 = vld [vmem:[%s3725_s2 + $0x14] sm:$0xf0] }
  0x17   :  { %399 = vmatpush.bf16.msrb.mxu2 %v3090_v60  ;;  %v3736_v4 = vor.u32 %v3324_v63, %v3115_v62  ;;  %v3742_v10 = vor.u32 %v3322_v8, %v3107_v7  ;;  %s3635_s3 = smov 23   ;;  %s3636_s7 = smov 22  }
  0x18   :  { %468 = vmatpush.bf16.msra.mxu0 %v3733_v1  ;;  %s3637_s12 = smov 21   ;;  %s3639_s16 = smov 124  }
  0x19   :  { %s3640_s17 = smov 28   ;;  %s3641_s21 = smov 27  }
  0x1a   :  { %s3079_s20 = sld [smem:[%s4563_s0 + %s3640_s17]]   ;;  %s3642_s25 = smov 25  }
  0x1b   :  { %536 = vmatpush.bf16.msra.mxu2 %v3733_v1  ;;  %s3643_s29 = smov 26   ;;  %s3644_s4 = smov 29  }
  0x1c   :  { %469 = vmatpush.bf16.msra.mxu0 %v3736_v4 }
  0x1f   :  { %537 = vmatpush.bf16.msra.mxu2 %v3736_v4 }
  0x20   :  { %470 = vmatpush.bf16.msra.mxu0 %v3742_v10 }
  0x23   :  { %538 = vmatpush.bf16.msra.mxu2 %v3742_v10 }
  0x8a   :  { %v165_v25 = vpop.f32.mrf.mxu0 }
  0x8d   :  { %v185_v26 = vpop.f32.mrf.mxu1 }
  0x8e   :  { %v186_v27 = vadd.f32 %v185_v26, %v165_v25 }
  0x92   :  { %v167_v32 = vpop.f32.mrf.mxu0 }
  0x94   :  { %v206_v29 = vpop.f32.mrf.mxu2 }
  0x95   :  { %v211_v30 = vadd.f32 %v206_v29, %v186_v27  ;;  %v187_v33 = vpop.f32.mrf.mxu1 }
  0x96   :  { %v188_v36 = vadd.f32 %v187_v33, %v167_v32 }
  0x97   :  { %v216_v31 = vadd.f32 %v3408_v28, %v211_v30 }
  0x99   :  { %v218_v34 = vmax.f32 %v216_v31, 0.0 }
  0x9b   :  { %v223_v38 = vmul.f32 %v3409_v35, %v218_v34 }
  0x9c   :  { %v208_v37 = vpop.f32.mrf.mxu2 }
  0x9d   :  { %v212_v40 = vadd.f32 %v208_v37, %v188_v36  ;;  %v228_v42 = vadd.f32 %v3410_v39, %v223_v38  ;;  %v3317_v37 = vld [vmem:[%s3720_s27 + $0x4] sm:$0xf]  ;;  %v3091_v38 = vld [vmem:[%s3720_s27 + $0x8] sm:$0xf0]  ;;  %s3069_s27 = sld [smem:[%s4563_s0 + %s3633_s24]]  }
  0x9e   :  { %s3078_s24 = sld [smem:[%s4563_s0 + %s3641_s21]]  }
  0x9f   :  { %v217_v41 = vadd.f32 %v3408_v28, %v212_v40  ;;  %v238_v46 = vrot.slane %v228_v42, 6  ;;  %v244_v47 = vrot.slane %v228_v42, 2  ;;  %v3094_v40 = vor.u32 %v3317_v37, %v3091_v38 }
  0xa1   :  { %v219_v43 = vmax.f32 %v217_v41, 0.0  ;;  %v243_v52 = vsel %vm133_vm0, 0.0, %v238_v46  ;;  %v3320_v41 = vld [vmem:[%s3725_s2 + $0x4] sm:$0xf0]  ;;  %413 = vmatpush.bf16.msrb.mxu3 %v3094_v40 }
  0xa3   :  { %v224_v44 = vmul.f32 %v3409_v35, %v219_v43  ;;  %v3325_v43 = vld [vmem:[%s3725_s2 + $0x34] sm:$0xf] }
  0xa5   :  { %v229_v45 = vadd.f32 %v3410_v39, %v224_v44  ;;  %v3099_v39 = vld [vmem:[%s3725_s2] sm:$0xf]  ;;  %v3125_v44 = vld [vmem:[%s3725_s2 + $0x38] sm:$0xf0] }
  0xa7   :  { %v239_v48 = vrot.slane %v229_v45, 6  ;;  %v251_v49 = vpack.c.bf16 %v229_v45, %v228_v42  ;;  %v245_v50 = vrot.slane %v229_v45, 2  ;;  %v3764_v42 = vor.u32 %v3320_v41, %v3099_v39  ;;  %v3323_v45 = vld [vmem:[%s3725_s2 + $0x24] sm:$0xf] }
  0xa9   :  { %3084 = vmatmul.msk.bf16.vlgmr.msra.gmra.mxu3 %vm252_vm4, %v251_v49  ;;  %v240_v51 = vsel %vm133_vm0, %v238_v46, %v239_v48  ;;  %v246_v53 = vsel %vm140_vm2, %v244_v47, %v245_v50  ;;  %v249_v54 = vsel %vm140_vm2, %v245_v50, 0.0  ;;  %471 = vmatpush.bf16.msra.mxu0 %v3764_v42  ;;  %v3626_v46 = vmov 0   ;;  %v3117_v48 = vld [vmem:[%s3725_s2 + $0x28] sm:$0xf0]  ;;  %v3321_v50 = vld [vmem:[%s3725_s2 + $0x14] sm:$0xf] }
  0xaa   :  { %v250_v55 = vpack.c.bf16 %v240_v51, %v243_v52  ;;  %v294_v56 = vpack.c.bf16 %v249_v54, %v246_v53  ;;  %539 = vmatpush.bf16.msra.mxu2 %v3764_v42  ;;  %v3773_v47 = vor.u32 %v3325_v43, %v3125_v44  ;;  %v3777_v49 = vor.u32 %v3323_v45, %v3117_v48  ;;  %v3109_v51 = vld [vmem:[%s3725_s2 + $0x18] sm:$0xf0]  ;;  %v3319_v53 = vld [vmem:[%s3725_s2 + $0x4] sm:$0xf]  ;;  %v3101_v54 = vld [vmem:[%s3725_s2 + $0x8] sm:$0xf0]  ;;  %s3075_s2 = sld [smem:[%s4563_s0 + %s3634_s28]]  }
  0xab   :  { %v3784_v52 = vor.u32 %v3321_v50, %v3109_v51  ;;  %s3076_s28 = sld [smem:[%s4563_s0 + %s3642_s25]]  }
  0xac   :  { %3085 = vmatmul.msk.bf16.vlgmr.msrb.gmra.mxu0 %vm252_vm4, %v250_v55  ;;  %3086 = vmatmul.msk.bf16.vlgmr.msrb.gmra.mxu1 %vm252_vm4, %v294_v56  ;;  %v3791_v55 = vor.u32 %v3319_v53, %v3101_v54 }
  0xad   :  { %611 = vmatpush.bf16.msrb.mxu0 %v3733_v1  ;;  %481 = vmatpush.bf16.msra.mxu1 %v3773_v47 }
  0xae   :  { %549 = vmatpush.bf16.msra.mxu3 %v3773_v47 }
  0xb1   :  { %612 = vmatpush.bf16.msrb.mxu0 %v3736_v4  ;;  %482 = vmatpush.bf16.msra.mxu1 %v3777_v49 }
  0xb2   :  { %550 = vmatpush.bf16.msra.mxu3 %v3777_v49 }
  0xb5   :  { %613 = vmatpush.bf16.msrb.mxu0 %v3742_v10  ;;  %483 = vmatpush.bf16.msra.mxu1 %v3784_v52 }
  0xb6   :  { %551 = vmatpush.bf16.msra.mxu3 %v3784_v52 }
  0xb9   :  { %614 = vmatpush.bf16.msrb.mxu0 %v3764_v42  ;;  %484 = vmatpush.bf16.msra.mxu1 %v3791_v55 }
  0xba   :  { %552 = vmatpush.bf16.msra.mxu3 %v3791_v55 }
  0xbc   :  { %472 = vmatmul.bf16.vlgmr.msra.gmra.mxu0 %v3626_v46  ;;  %485 = vmatmul.bf16.vlgmr.msra.gmra.mxu1 %v3626_v46 }
  0xbd   :  { %761 = vmatpush.bf16.msra.mxu0 %v3733_v1  ;;  %624 = vmatpush.bf16.msrb.mxu1 %v3773_v47 }
  0xc1   :  { %762 = vmatpush.bf16.msra.mxu0 %v3736_v4  ;;  %625 = vmatpush.bf16.msrb.mxu1 %v3777_v49 }
  0xc5   :  { %763 = vmatpush.bf16.msra.mxu0 %v3742_v10  ;;  %626 = vmatpush.bf16.msrb.mxu1 %v3784_v52 }
  0xc9   :  { %764 = vmatpush.bf16.msra.mxu0 %v3764_v42  ;;  %627 = vmatpush.bf16.msrb.mxu1 %v3791_v55 }
  0xcd   :  { %774 = vmatpush.bf16.msra.mxu1 %v3773_v47 }
  0xd1   :  { %775 = vmatpush.bf16.msra.mxu1 %v3777_v49 }
  0xd5   :  { %776 = vmatpush.bf16.msra.mxu1 %v3784_v52 }
  0xd9   :  { %777 = vmatpush.bf16.msra.mxu1 %v3791_v55 }
 0x129   :  { %v289_v0 = vpop.f32.mrf.mxu0  ;;  %v310_v2 = vpop.f32.mrf.mxu1 }
 0x12c   :  { %v269_v3 = vpop.f32.mrf.mxu3 }
 0x12d   :  { %v290_v5 = vadd.f32 %v289_v0, %v269_v3  ;;  %v3827_v3 = vld [vmem:[%s3065_s10] sm:$0x3]  ;;  %s4322_s10 = sld [smem:[%s4563_s0 + %s3636_s7]]  }
 0x12e   :  { %s3080_s7 = sld [smem:[%s4563_s0 + %s3644_s4]]  }
 0x12f   :  { %v315_v9 = vadd.f32 %v310_v2, %v290_v5  ;;  %v374_v5 = vperm.slane %v3827_v3, 0 }
 0x131   :  { %v320_v11 = vadd.f32 %v3411_v6, %v315_v9  ;;  %v291_v15 = vpop.f32.mrf.mxu0  ;;  %v312_v19 = vpop.f32.mrf.mxu1 }
 0x133   :  { %v322_v13 = vmax.f32 %v320_v11, 0.0 }
 0x134   :  { %v271_v16 = vpop.f32.mrf.mxu3 }
 0x135   :  { %v327_v17 = vmul.f32 %v3412_v12, %v322_v13  ;;  %v292_v18 = vadd.f32 %v291_v15, %v271_v16  ;;  %v3835_v16 = vld [vmem:[%s3067_s6] ss:$0 sm:$0xff]  ;;  %s3074_s6 = sld [smem:[%s4563_s0 + %s3635_s3]]  }
 0x136   :  { %s3077_s3 = sld [smem:[%s4563_s0 + %s3643_s29]]  }
 0x137   :  { %v3749_v20 = vadd.f32 %v3413_v14, %v327_v17  ;;  %v316_v21 = vadd.f32 %v312_v19, %v292_v18 }
 0x139   :  { %v321_v22 = vadd.f32 %v3411_v6, %v316_v21  ;;  %v340_v24 = vrot.slane %v3749_v20, 6  ;;  %v342_v25 = vrot.slane %v3749_v20, 2  ;;  %v473_v62 = vpop.f32.mrf.mxu0  ;;  %v486_v0 = vpop.f32.mrf.mxu1 }
 0x13b   :  { %v323_v23 = vmax.f32 %v321_v22, 0.0  ;;  %v347_v28 = vsel %vm133_vm0, %v340_v24, %v342_v25  ;;  %v513_v22 = vadd.f32 %v3835_v16, %v486_v0 }
 0x13c   :  { %v348_v31 = vsel %vm256_vm3, %v347_v28, %v340_v24 }
 0x13d   :  { %v328_v26 = vmul.f32 %v3412_v12, %v323_v23  ;;  %v349_v35 = vsel %vm140_vm2, %v348_v31, %v342_v25 }
 0x13f   :  { %v333_v27 = vadd.f32 %v3413_v14, %v328_v26 }
 0x141   :  { %v335_v29 = vrot.slane %v333_v27, 6  ;;  %v337_v30 = vrot.slane %v333_v27, 2  ;;  %v475_v63 = vpop.f32.mrf.mxu0  ;;  %v488_v2 = vpop.f32.mrf.mxu1 }
 0x143   :  { %v344_v32 = vsel %vm133_vm0, %v335_v29, %v337_v30 }
 0x144   :  { %v345_v33 = vsel %vm256_vm3, %v344_v32, %v335_v29 }
 0x145   :  { %v346_v34 = vsel %vm140_vm2, %v345_v33, %v337_v30 }
 0x146   :  { %v3388_v36 = vpack.i.bf16 %v349_v35, %v346_v34 }
 0x148   :  { %3389 = vrot.lane.b32.xlu0 %v3388_v36, %s3618_s30 }
 0x1ba   :  { %v3390_v56 = vpop.permute.xlu0 %3389 }
 0x1bb   :  { %v3392_v57 = vunpack.i.h.bf16 %v3390_v56  ;;  %v3391_v58 = vunpack.i.l.bf16 %v3390_v56 }
 0x1bd   :  { %v371_v59 = vsel %vm252_vm4, %v333_v27, %v3392_v57  ;;  %v370_v60 = vsel %vm252_vm4, %v3749_v20, %v3391_v58  ;;  %v375_v20 = vperm.slane %v3827_v3, 1 }
 0x1be   :  { %v372_v61 = vpack.c.bf16 %v371_v59, %v370_v60 }
 0x1c0   :  { %3095 = vmatmul.msk.bf16.vlgmr.msrb.gmra.mxu2 %vm388_vm5, %v372_v61  ;;  %3096 = vmatmul.msk.bf16.vlgmr.msrb.gmra.mxu3 %vm388_vm5, %v372_v61 }
 0x1c1   :  { %686 = vmatpush.bf16.msrb.mxu2 %v3733_v1  ;;  %699 = vmatpush.bf16.msrb.mxu3 %v3773_v47 }
 0x1c5   :  { %687 = vmatpush.bf16.msrb.mxu2 %v3736_v4  ;;  %700 = vmatpush.bf16.msrb.mxu3 %v3777_v49 }
 0x1c9   :  { %688 = vmatpush.bf16.msrb.mxu2 %v3742_v10  ;;  %701 = vmatpush.bf16.msrb.mxu3 %v3784_v52 }
 0x1cd   :  { %689 = vmatpush.bf16.msrb.mxu2 %v3764_v42  ;;  %702 = vmatpush.bf16.msrb.mxu3 %v3791_v55 }
 0x243   :  { %v401_v6 = vpop.f32.mrf.mxu2  ;;  %v415_v23 = vpop.f32.mrf.mxu3 }
 0x244   :  { %v3832_v7 = vadd.f32 %v401_v6, %v374_v5  ;;  %v3841_v27 = vadd.f32 %v415_v23, %v375_v20 }
 0x246   :  { %v490_v8 = vadd.f32 %v473_v62, %v3832_v7 }
 0x248   :  { %v3129_v9 = vmul.f32 -1.442695, %v490_v8 }
 0x24a   :  { %3420 = vpow2.f32 %v3129_v9 }
 0x24b   :  { %v3860_v38 = vpop.f32.mrf.mxu2  ;;  %v3862_v39 = vpop.f32.mrf.mxu3 }
 0x250   :  { %v3421_v11 = vpop.eup %3420 }
 0x251   :  { %v494_v12 = vadd.f32 1.0, %v3421_v11 }
 0x253   :  { %3422 = vrcp.f32 %v494_v12  ;;  %v506_v17 = vand.u32 2147483648, %v494_v12  ;;  %v504_v19 = vand.u32 2147483647, %v494_v12  ;;  %vm500_vm7 = vweird.f32 %v494_v12 }
 0x255   :  { %v507_v24 = vor.u32 1.1754944e-38, %v506_v17  ;;  %vm505_vm9 = vcmp.eq.f32.partialorder %v504_v19, 8.507059e+37 }
 0x259   :  { %v3423_v13 = vpop.eup %3422 }
 0x25a   :  { %v496_v14 = vmul.f32 %v3423_v13, %v494_v12  ;;  %vm501_vm6 = vweird.f32 %v3423_v13 }
 0x25b   :  { %vm502_vm8 = vmor %vm500_vm7, %vm501_vm6 }
 0x25c   :  { %v497_v15 = vsub.f32 1.0, %v496_v14 }
 0x25e   :  { %v498_v18 = vmul.f32 %v3423_v13, %v497_v15 }
 0x260   :  { %v499_v21 = vadd.f32 %v3423_v13, %v498_v18 }
 0x262   :  { %v503_v25 = vsel %vm502_vm8, %v3423_v13, %v499_v21 }
 0x263   :  { %v508_v26 = vsel %vm505_vm9, %v507_v24, %v503_v25 }
 0x264   :  { %v514_v28 = vmul.f32 %v513_v22, %v508_v26  ;;  %v517_v31 = vsub.f32 1.0, %v508_v26  ;;  %v523_v33 = vmul.f32 0.0, %v508_v26 }
 0x266   :  { %v515_v29 = vadd.f32 %v514_v28, %v3841_v27 }
 0x268   :  { %3424 = vtanh.f32 %v515_v29 }
 0x26e   :  { %v3425_v30 = vpop.eup %3424 }
 0x26f   :  { %519 = vrot.lane.b32.xlu0 %v3425_v30, %s3629_s11 }
 0x2e1   :  { %v520_v32 = vpop.permute.xlu0 %519 }
 0x2e2   :  { %v522_v34 = vmul.f32 %v520_v32, %v517_v31 }
 0x2e4   :  { %v3845_v35 = vadd.f32 %v523_v33, %v522_v34 }
 0x2e6   :  { %v525_v36 = vpack.c.bf16 %v3845_v35, %v3845_v35  ;;  %v595_v13 = vrot.slane %v3845_v35, 6 }
 0x2e8   :  { %527 = vrot.lane.b32.xlu1 %v525_v36, %s3629_s11 }
 0x35a   :  { %v528_v37 = vpop.permute.xlu1 %527 }
 0x35b   :  { %3130 = vmatmul.msk.bf16.vlgmr.msra.gmra.mxu2 %vm460_vm10, %v528_v37  ;;  %3131 = vmatmul.msk.bf16.vlgmr.msra.gmra.mxu3 %vm460_vm10, %v528_v37 }
 0x35c   :  { %829 = vmatpush.bf16.msra.mxu2 %v3733_v1  ;;  %842 = vmatpush.bf16.msra.mxu3 %v3773_v47 }
 0x360   :  { %830 = vmatpush.bf16.msra.mxu2 %v3736_v4  ;;  %843 = vmatpush.bf16.msra.mxu3 %v3777_v49 }
 0x364   :  { %831 = vmatpush.bf16.msra.mxu2 %v3742_v10  ;;  %844 = vmatpush.bf16.msra.mxu3 %v3784_v52 }
 0x368   :  { %832 = vmatpush.bf16.msra.mxu2 %v3764_v42  ;;  %845 = vmatpush.bf16.msra.mxu3 %v3791_v55 }
 0x3de   :  { %v541_v40 = vpop.f32.mrf.mxu2  ;;  %v554_v41 = vpop.f32.mrf.mxu3 }
 0x3df   :  { %v559_v43 = vrot.slane %v541_v40, 6  ;;  %v581_v61 = vadd.f32 %v3835_v16, %v554_v41 }
 0x3e1   :  { %v561_v44 = vadd.f32 %v559_v43, %v3832_v7  ;;  %v583_v2 = vrot.slane %v581_v61, 6 }
 0x3e3   :  { %v3132_v45 = vmul.f32 -1.442695, %v561_v44 }
 0x3e5   :  { %3426 = vpow2.f32 %v3132_v45 }
 0x3e6   :  { %v543_v48 = vpop.f32.mrf.mxu2  ;;  %v556_v50 = vpop.f32.mrf.mxu3 }
 0x3eb   :  { %v3427_v51 = vpop.eup %3426 }
 0x3ec   :  { %v565_v53 = vadd.f32 1.0, %v3427_v51 }
 0x3ee   :  { %3428 = vrcp.f32 %v565_v53  ;;  %v577_v58 = vand.u32 2147483648, %v565_v53  ;;  %v575_v60 = vand.u32 2147483647, %v565_v53  ;;  %vm571_vm12 = vweird.f32 %v565_v53 }
 0x3f0   :  { %v578_v63 = vor.u32 1.1754944e-38, %v577_v58  ;;  %vm576_vm14 = vcmp.eq.f32.partialorder %v575_v60, 8.507059e+37 }
 0x3f4   :  { %v3429_v54 = vpop.eup %3428 }
 0x3f5   :  { %v567_v56 = vmul.f32 %v3429_v54, %v565_v53  ;;  %vm572_vm11 = vweird.f32 %v3429_v54 }
 0x3f6   :  { %vm573_vm13 = vmor %vm571_vm12, %vm572_vm11 }
 0x3f7   :  { %v568_v57 = vsub.f32 1.0, %v567_v56 }
 0x3f9   :  { %v569_v59 = vmul.f32 %v3429_v54, %v568_v57 }
 0x3fb   :  { %v570_v62 = vadd.f32 %v3429_v54, %v569_v59 }
 0x3fd   :  { %v574_v0 = vsel %vm573_vm13, %v3429_v54, %v570_v62 }
 0x3fe   :  { %v579_v6 = vsel %vm576_vm14, %v578_v63, %v574_v0 }
 0x3ff   :  { %v585_v8 = vmul.f32 %v583_v2, %v579_v6  ;;  %v588_v12 = vsub.f32 1.0, %v579_v6  ;;  %v597_v15 = vmul.f32 %v595_v13, %v579_v6 }
 0x401   :  { %v586_v9 = vadd.f32 %v585_v8, %v3841_v27 }
 0x403   :  { %3430 = vtanh.f32 %v586_v9 }
 0x409   :  { %v3431_v11 = vpop.eup %3430 }
 0x40a   :  { %590 = vrot.lane.b32.xlu1 %v3431_v11, %s3629_s11 }
 0x47c   :  { %v591_v14 = vpop.permute.xlu1 %590 }
 0x47d   :  { %v593_v17 = vmul.f32 %v591_v14, %v588_v12 }
 0x47f   :  { %v3869_v18 = vadd.f32 %v597_v15, %v593_v17 }
 0x481   :  { %v599_v19 = vpack.c.bf16 %v3869_v18, %v3869_v18  ;;  %v670_v58 = vrot.slane %v3869_v18, 6  ;;  %v1042_v63 = vsel %vm133_vm0, %v3845_v35, %v3869_v18 }
 0x483   :  { %v601_v21 = vrot.slane %v599_v19, 1 }
 0x485   :  { %602 = vrot.lane.b32.xlu2 %v601_v21, %s3629_s11 }
 0x4df   :  { %v603_v22 = vpop.permute.xlu2 %602 }
 0x4e0   :  { %3133 = vmatmul.msk.bf16.vlgmr.msrb.gmra.mxu0 %vm460_vm10, %v603_v22  ;;  %3134 = vmatmul.msk.bf16.vlgmr.msrb.gmra.mxu1 %vm460_vm10, %v603_v22 }
 0x4e1   :  { %904 = vmatpush.bf16.msrb.mxu0 %v3733_v1  ;;  %917 = vmatpush.bf16.msrb.mxu1 %v3773_v47 }
 0x4e5   :  { %905 = vmatpush.bf16.msrb.mxu0 %v3736_v4  ;;  %918 = vmatpush.bf16.msrb.mxu1 %v3777_v49 }
 0x4e9   :  { %906 = vmatpush.bf16.msrb.mxu0 %v3742_v10  ;;  %919 = vmatpush.bf16.msrb.mxu1 %v3784_v52 }
 0x4ed   :  { %907 = vmatpush.bf16.msrb.mxu0 %v3764_v42  ;;  %920 = vmatpush.bf16.msrb.mxu1 %v3791_v55 }
 0x55d   :  { %v616_v23 = vpop.f32.mrf.mxu0  ;;  %v629_v24 = vpop.f32.mrf.mxu1 }
 0x55e   :  { %v634_v25 = vrot.slane %v616_v23, 4  ;;  %v656_v43 = vadd.f32 %v3835_v16, %v629_v24 }
 0x560   :  { %v636_v26 = vadd.f32 %v634_v25, %v3832_v7  ;;  %v658_v50 = vrot.slane %v656_v43, 4 }
 0x562   :  { %v3135_v28 = vmul.f32 -1.442695, %v636_v26 }
 0x564   :  { %3432 = vpow2.f32 %v3135_v28 }
 0x565   :  { %v618_v29 = vpop.f32.mrf.mxu0  ;;  %v631_v30 = vpop.f32.mrf.mxu1 }
 0x56a   :  { %v3433_v31 = vpop.eup %3432 }
 0x56b   :  { %v640_v32 = vadd.f32 1.0, %v3433_v31 }
 0x56d   :  { %3434 = vrcp.f32 %v640_v32  ;;  %v652_v37 = vand.u32 2147483648, %v640_v32  ;;  %v650_v41 = vand.u32 2147483647, %v640_v32  ;;  %vm646_vm4 = vweird.f32 %v640_v32 }
 0x56f   :  { %v653_v45 = vor.u32 1.1754944e-38, %v652_v37  ;;  %vm651_vm6 = vcmp.eq.f32.partialorder %v650_v41, 8.507059e+37  ;;  %v3930_v41 = vadd.f32 %v3860_v38, %v374_v5 }
 0x573   :  { %v3435_v33 = vpop.eup %3434 }
 0x574   :  { %v642_v34 = vmul.f32 %v3435_v33, %v640_v32  ;;  %vm647_vm15 = vweird.f32 %v3435_v33 }
 0x575   :  { %vm648_vm5 = vmor %vm646_vm4, %vm647_vm15 }
 0x576   :  { %v643_v36 = vsub.f32 1.0, %v642_v34 }
 0x578   :  { %v644_v40 = vmul.f32 %v3435_v33, %v643_v36 }
 0x57a   :  { %v645_v44 = vadd.f32 %v3435_v33, %v644_v40 }
 0x57c   :  { %v649_v48 = vsel %vm648_vm5, %v3435_v33, %v645_v44 }
 0x57d   :  { %v654_v51 = vsel %vm651_vm6, %v653_v45, %v649_v48 }
 0x57e   :  { %v660_v53 = vmul.f32 %v658_v50, %v654_v51  ;;  %v663_v57 = vsub.f32 1.0, %v654_v51  ;;  %v672_v60 = vmul.f32 %v670_v58, %v654_v51 }
 0x580   :  { %v661_v54 = vadd.f32 %v660_v53, %v3841_v27 }
 0x582   :  { %3436 = vtanh.f32 %v661_v54 }
 0x588   :  { %v3437_v56 = vpop.eup %3436 }
 0x589   :  { %665 = vrot.lane.b32.xlu2 %v3437_v56, %s3629_s11 }
 0x5e3   :  { %v666_v59 = vpop.permute.xlu2 %665 }
 0x5e4   :  { %v668_v61 = vmul.f32 %v666_v59, %v663_v57 }
 0x5e6   :  { %v3891_v62 = vadd.f32 %v672_v60, %v668_v61 }
 0x5e8   :  { %v674_v0 = vpack.c.bf16 %v3891_v62, %v3891_v62  ;;  %v1043_v2 = vsel %vm256_vm3, %v1042_v63, %v3891_v62  ;;  %v745_v24 = vrot.slane %v3891_v62, 6 }
 0x5ea   :  { %v676_v6 = vrot.slane %v674_v0, 2 }
 0x5ec   :  { %677 = vrot.lane.b32.xlu0 %v676_v6, %s3629_s11 }
 0x65e   :  { %v678_v8 = vpop.permute.xlu0 %677 }
 0x65f   :  { %3136 = vmatmul.msk.bf16.vlgmr.msrb.gmra.mxu2 %vm460_vm10, %v678_v8  ;;  %3137 = vmatmul.msk.bf16.vlgmr.msrb.gmra.mxu3 %vm460_vm10, %v678_v8  ;;  %v3937_v8 = vadd.f32 %v3862_v39, %v375_v20 }
 0x660   :  { %979 = vmatpush.bf16.msrb.mxu2 %v3733_v1  ;;  %992 = vmatpush.bf16.msrb.mxu3 %v3773_v47 }
 0x664   :  { %980 = vmatpush.bf16.msrb.mxu2 %v3736_v4  ;;  %993 = vmatpush.bf16.msrb.mxu3 %v3777_v49 }
 0x668   :  { %981 = vmatpush.bf16.msrb.mxu2 %v3742_v10  ;;  %994 = vmatpush.bf16.msrb.mxu3 %v3784_v52 }
 0x66c   :  { %982 = vmatpush.bf16.msrb.mxu2 %v3764_v42  ;;  %995 = vmatpush.bf16.msrb.mxu3 %v3791_v55 }
 0x6e2   :  { %v691_v9 = vpop.f32.mrf.mxu2  ;;  %v704_v11 = vpop.f32.mrf.mxu3 }
 0x6e3   :  { %v709_v12 = vrot.slane %v691_v9, 2  ;;  %v731_v55 = vadd.f32 %v3835_v16, %v704_v11 }
 0x6e5   :  { %v711_v13 = vadd.f32 %v709_v12, %v3832_v7  ;;  %v733_v23 = vrot.slane %v731_v55, 2 }
 0x6e7   :  { %v3138_v1 = vmul.f32 -1.442695, %v711_v13 }
 0x6e9   :  { %3438 = vpow2.f32 %v3138_v1 }
 0x6ea   :  { %v693_v47 = vpop.f32.mrf.mxu2  ;;  %v706_v14 = vpop.f32.mrf.mxu3 }
 0x6ef   :  { %v3439_v4 = vpop.eup %3438 }
 0x6f0   :  { %v715_v15 = vadd.f32 1.0, %v3439_v4 }
 0x6f2   :  { %3440 = vrcp.f32 %v715_v15  ;;  %v727_v52 = vand.u32 2147483648, %v715_v15  ;;  %v725_v42 = vand.u32 2147483647, %v715_v15  ;;  %vm721_vm8 = vweird.f32 %v715_v15 }
 0x6f4   :  { %v728_v7 = vor.u32 1.1754944e-38, %v727_v52  ;;  %vm726_vm11 = vcmp.eq.f32.partialorder %v725_v42, 8.507059e+37 }
 0x6f8   :  { %v3441_v49 = vpop.eup %3440 }
 0x6f9   :  { %v717_v10 = vmul.f32 %v3441_v49, %v715_v15  ;;  %vm722_vm7 = vweird.f32 %v3441_v49 }
 0x6fa   :  { %vm723_vm9 = vmor %vm721_vm8, %vm722_vm7 }
 0x6fb   :  { %v718_v17 = vsub.f32 1.0, %v717_v10 }
 0x6fd   :  { %v719_v19 = vmul.f32 %v3441_v49, %v718_v17 }
 0x6ff   :  { %v720_v21 = vadd.f32 %v3441_v49, %v719_v19 }
 0x701   :  { %v724_v22 = vsel %vm723_vm9, %v3441_v49, %v720_v21 }
 0x702   :  { %v729_v25 = vsel %vm726_vm11, %v728_v7, %v724_v22 }
 0x703   :  { %v735_v26 = vmul.f32 %v733_v23, %v729_v25  ;;  %v747_v28 = vmul.f32 %v745_v24, %v729_v25  ;;  %v738_v31 = vsub.f32 1.0, %v729_v25 }
 0x705   :  { %v736_v29 = vadd.f32 %v735_v26, %v3841_v27 }
 0x707   :  { %3442 = vtanh.f32 %v736_v29 }
 0x70d   :  { %v3443_v30 = vpop.eup %3442 }
 0x70e   :  { %740 = vrot.lane.b32.xlu1 %v3443_v30, %s3629_s11 }
 0x780   :  { %v741_v32 = vpop.permute.xlu1 %740 }
 0x781   :  { %v743_v33 = vmul.f32 %v741_v32, %v738_v31 }
 0x783   :  { %v3916_v34 = vadd.f32 %v747_v28, %v743_v33 }
 0x785   :  { %v749_v36 = vpack.c.bf16 %v3916_v34, %v3916_v34  ;;  %v3922_v37 = vsel %vm140_vm2, %v1043_v2, %v3916_v34  ;;  %v814_v1 = vrot.slane %v3916_v34, 6 }
 0x787   :  { %v751_v40 = vrot.slane %v749_v36, 3 }
 0x789   :  { %752 = vrot.lane.b32.xlu2 %v751_v40, %s3629_s11 }
 0x7e3   :  { %v753_v27 = vpop.permute.xlu2 %752 }
 0x7e4   :  { %3139 = vmatmul.msk.bf16.vlgmr.msra.gmra.mxu0 %vm460_vm10, %v753_v27  ;;  %3140 = vmatmul.msk.bf16.vlgmr.msra.gmra.mxu1 %vm460_vm10, %v753_v27 }
 0x861   :  { %v766_v43 = vpop.f32.mrf.mxu0  ;;  %v779_v44 = vpop.f32.mrf.mxu1 }
 0x862   :  { %v783_v45 = vadd.f32 %v766_v43, %v3930_v41  ;;  %v803_v2 = vadd.f32 %v3835_v16, %v779_v44 }
 0x864   :  { %v3141_v48 = vmul.f32 -1.442695, %v783_v45 }
 0x866   :  { %3444 = vpow2.f32 %v3141_v48 }
 0x869   :  { %v768_v50 = vpop.f32.mrf.mxu0  ;;  %v781_v51 = vpop.f32.mrf.mxu1 }
 0x86c   :  { %v3445_v53 = vpop.eup %3444 }
 0x86d   :  { %v787_v54 = vadd.f32 1.0, %v3445_v53 }
 0x86f   :  { %3446 = vrcp.f32 %v787_v54  ;;  %v799_v60 = vand.u32 2147483648, %v787_v54  ;;  %v797_v63 = vand.u32 2147483647, %v787_v54  ;;  %vm793_vm13 = vweird.f32 %v787_v54 }
 0x871   :  { %v800_v38 = vor.u32 1.1754944e-38, %v799_v60  ;;  %vm798_vm15 = vcmp.eq.f32.partialorder %v797_v63, 8.507059e+37 }
 0x875   :  { %v3447_v56 = vpop.eup %3446 }
 0x876   :  { %v789_v57 = vmul.f32 %v3447_v56, %v787_v54  ;;  %vm794_vm12 = vweird.f32 %v3447_v56 }
 0x877   :  { %vm795_vm14 = vmor %vm793_vm13, %vm794_vm12 }
 0x878   :  { %v790_v59 = vsub.f32 1.0, %v789_v57 }
 0x87a   :  { %v791_v61 = vmul.f32 %v3447_v56, %v790_v59 }
 0x87c   :  { %v792_v5 = vadd.f32 %v3447_v56, %v791_v61 }
 0x87e   :  { %v796_v0 = vsel %vm795_vm14, %v3447_v56, %v792_v5 }
 0x87f   :  { %v801_v6 = vsel %vm798_vm15, %v800_v38, %v796_v0 }
 0x880   :  { %v804_v9 = vmul.f32 %v803_v2, %v801_v6  ;;  %v807_v13 = vsub.f32 1.0, %v801_v6  ;;  %v816_v14 = vmul.f32 %v814_v1, %v801_v6 }
 0x882   :  { %v805_v11 = vadd.f32 %v804_v9, %v3937_v8 }
 0x884   :  { %3448 = vtanh.f32 %v805_v11 }
 0x88a   :  { %v3449_v12 = vpop.eup %3448 }
 0x88b   :  { %809 = vrot.lane.b32.xlu0 %v3449_v12, %s3629_s11 }
 0x8fd   :  { %v810_v47 = vpop.permute.xlu0 %809 }
 0x8fe   :  { %v812_v4 = vmul.f32 %v810_v47, %v807_v13 }
 0x900   :  { %v3944_v15 = vadd.f32 %v816_v14, %v812_v4 }
 0x902   :  { %v818_v3 = vpack.c.bf16 %v3944_v15, %v3944_v15  ;;  %v888_v44 = vrot.slane %v3944_v15, 6 }
 0x904   :  { %820 = vrot.lane.b32.xlu1 %v818_v3, %s3629_s11 }
 0x976   :  { %v821_v20 = vpop.permute.xlu1 %820 }
 0x977   :  { %3142 = vmatmul.msk.bf16.vlgmr.msra.gmra.mxu2 %vm460_vm10, %v821_v20  ;;  %3143 = vmatmul.msk.bf16.vlgmr.msra.gmra.mxu3 %vm460_vm10, %v821_v20 }
 0x9fa   :  { %v834_v39 = vpop.f32.mrf.mxu2  ;;  %v847_v49 = vpop.f32.mrf.mxu3 }
 0x9fb   :  { %v852_v10 = vrot.slane %v834_v39, 6  ;;  %v874_v28 = vadd.f32 %v3835_v16, %v847_v49 }
 0x9fd   :  { %v854_v17 = vadd.f32 %v852_v10, %v3930_v41  ;;  %v876_v32 = vrot.slane %v874_v28, 6 }
 0x9ff   :  { %v3144_v52 = vmul.f32 -1.442695, %v854_v17 }
 0xa01   :  { %3450 = vpow2.f32 %v3144_v52 }
 0xa02   :  { %v836_v19 = vpop.f32.mrf.mxu2  ;;  %v849_v42 = vpop.f32.mrf.mxu3 }
 0xa07   :  { %v3451_v55 = vpop.eup %3450 }
 0xa08   :  { %v858_v21 = vadd.f32 1.0, %v3451_v55 }
 0xa0a   :  { %3452 = vrcp.f32 %v858_v21  ;;  %v870_v24 = vand.u32 2147483648, %v858_v21  ;;  %v868_v26 = vand.u32 2147483647, %v858_v21  ;;  %vm864_vm5 = vweird.f32 %v858_v21 }
 0xa0c   :  { %v871_v30 = vor.u32 1.1754944e-38, %v870_v24  ;;  %vm869_vm7 = vcmp.eq.f32.partialorder %v868_v26, 8.507059e+37 }
 0xa10   :  { %v3453_v7 = vpop.eup %3452 }
 0xa11   :  { %v860_v22 = vmul.f32 %v3453_v7, %v858_v21  ;;  %vm865_vm4 = vweird.f32 %v3453_v7 }
 0xa12   :  { %vm866_vm6 = vmor %vm864_vm5, %vm865_vm4 }
 0xa13   :  { %v861_v23 = vsub.f32 1.0, %v860_v22 }
 0xa15   :  { %v862_v25 = vmul.f32 %v3453_v7, %v861_v23 }
 0xa17   :  { %v863_v29 = vadd.f32 %v3453_v7, %v862_v25 }
 0xa19   :  { %v867_v31 = vsel %vm866_vm6, %v3453_v7, %v863_v29 }
 0xa1a   :  { %v872_v33 = vsel %vm869_vm7, %v871_v30, %v867_v31 }
 0xa1b   :  { %v878_v36 = vmul.f32 %v876_v32, %v872_v33  ;;  %v881_v43 = vsub.f32 1.0, %v872_v33  ;;  %v890_v48 = vmul.f32 %v888_v44, %v872_v33 }
 0xa1d   :  { %v879_v40 = vadd.f32 %v878_v36, %v3937_v8 }
 0xa1f   :  { %3454 = vtanh.f32 %v879_v40 }
 0xa25   :  { %v3455_v27 = vpop.eup %3454 }
 0xa26   :  { %883 = vrot.lane.b32.xlu2 %v3455_v27, %s3629_s11 }
 0xa80   :  { %v884_v45 = vpop.permute.xlu2 %883 }
 0xa81   :  { %v886_v50 = vmul.f32 %v884_v45, %v881_v43 }
 0xa83   :  { %v3956_v51 = vadd.f32 %v890_v48, %v886_v50 }
 0xa85   :  { %v892_v53 = vpack.c.bf16 %v3956_v51, %v3956_v51  ;;  %v963_v42 = vrot.slane %v3956_v51, 6  ;;  %v1045_v23 = vsel %vm133_vm0, %v3944_v15, %v3956_v51 }
 0xa87   :  { %v894_v54 = vrot.slane %v892_v53, 1 }
 0xa89   :  { %895 = vrot.lane.b32.xlu0 %v894_v54, %s3629_s11 }
 0xafb   :  { %v896_v56 = vpop.permute.xlu0 %895 }
 0xafc   :  { %3145 = vmatmul.msk.bf16.vlgmr.msrb.gmra.mxu0 %vm460_vm10, %v896_v56  ;;  %3146 = vmatmul.msk.bf16.vlgmr.msrb.gmra.mxu1 %vm460_vm10, %v896_v56 }
 0xb79   :  { %v909_v57 = vpop.f32.mrf.mxu0  ;;  %v922_v59 = vpop.f32.mrf.mxu1 }
 0xb7a   :  { %v927_v60 = vrot.slane %v909_v57, 4  ;;  %v949_v14 = vadd.f32 %v3835_v16, %v922_v59 }
 0xb7c   :  { %v929_v61 = vadd.f32 %v927_v60, %v3930_v41  ;;  %v951_v39 = vrot.slane %v949_v14, 4  ;;  %v3339_v14 = vld [vmem:[%s3998_s15 + $0x64] sm:$0xf] }
 0xb7e   :  { %v3147_v63 = vmul.f32 -1.442695, %v929_v61 }
 0xb80   :  { %3456 = vpow2.f32 %v3147_v63 }
 0xb81   :  { %v911_v5 = vpop.f32.mrf.mxu0  ;;  %v924_v38 = vpop.f32.mrf.mxu1 }
 0xb86   :  { %v3457_v0 = vpop.eup %3456 }
 0xb87   :  { %v933_v2 = vadd.f32 1.0, %v3457_v0 }
 0xb89   :  { %3458 = vrcp.f32 %v933_v2  ;;  %v945_v12 = vand.u32 2147483648, %v933_v2  ;;  %v943_v47 = vand.u32 2147483647, %v933_v2  ;;  %vm939_vm9 = vweird.f32 %v933_v2 }
 0xb8b   :  { %v946_v3 = vor.u32 1.1754944e-38, %v945_v12  ;;  %vm944_vm12 = vcmp.eq.f32.partialorder %v943_v47, 8.507059e+37  ;;  %v3201_v12 = vld [vmem:[%s3998_s15 + $0x60] sm:$0xf] }
 0xb8f   :  { %v3459_v6 = vpop.eup %3458 }
 0xb90   :  { %v935_v9 = vmul.f32 %v3459_v6, %v933_v2  ;;  %vm940_vm8 = vweird.f32 %v3459_v6  ;;  %v3342_v2 = vld [vmem:[%s3998_s15 + $0x74] sm:$0xf0] }
 0xb91   :  { %vm941_vm11 = vmor %vm939_vm9, %vm940_vm8 }
 0xb92   :  { %v936_v11 = vsub.f32 1.0, %v935_v9 }
 0xb94   :  { %v937_v13 = vmul.f32 %v3459_v6, %v936_v11  ;;  %v3211_v11 = vld [vmem:[%s3998_s15 + $0x78] sm:$0xf0] }
 0xb96   :  { %v938_v4 = vadd.f32 %v3459_v6, %v937_v13  ;;  %v3340_v13 = vld [vmem:[%s3998_s15 + $0x64] sm:$0xf0] }
 0xb98   :  { %v942_v20 = vsel %vm941_vm11, %v3459_v6, %v938_v4  ;;  %v3341_v6 = vld [vmem:[%s3998_s15 + $0x74] sm:$0xf]  ;;  %v3203_v4 = vld [vmem:[%s3998_s15 + $0x68] sm:$0xf0] }
 0xb99   :  { %v947_v49 = vsel %vm944_vm12, %v946_v3, %v942_v20  ;;  %v3214_v47 = vor.u32 %v3341_v6, %v3211_v11  ;;  %v3241_v3 = vld [vmem:[%s4003_s19 + $0x30] sm:$0xf]  ;;  %v3202_v20 = vor.u32 %v3340_v13, %v3201_v12  ;;  %v3163_v6 = vld [vmem:[%s3998_s15 + $0x18] sm:$0xf0] }
 0xb9a   :  { %v953_v10 = vmul.f32 %v951_v39, %v947_v49  ;;  %v956_v19 = vsub.f32 1.0, %v947_v49  ;;  %v965_v21 = vmul.f32 %v963_v42, %v947_v49  ;;  %v3350_v39 = vld [vmem:[%s4003_s19 + $0x34] sm:$0xf0]  ;;  %v3206_v49 = vor.u32 %v3339_v14, %v3203_v4 }
 0xb9b   :  { %1201 = vmatpush.bf16.msra.mxu1 %v3214_v47 }
 0xb9c   :  { %v954_v17 = vadd.f32 %v953_v10, %v3937_v8  ;;  %v4015_v10 = vor.u32 %v3350_v39, %v3241_v3 }
 0xb9e   :  { %3460 = vtanh.f32 %v954_v17  ;;  %v3193_v17 = vld [vmem:[%s3998_s15 + $0x50] sm:$0xf]  ;;  %1259 = vmatpush.bf16.msra.mxu2 %v4015_v10 }
 0xb9f   :  { %1202 = vmatpush.bf16.msra.mxu1 %v3206_v49  ;;  %v3155_v49 = vld [vmem:[%s3998_s15 + $0x8] sm:$0xf0] }
 0xba4   :  { %v3461_v52 = vpop.eup %3460 }
 0xba5   :  { %958 = vrot.lane.b32.xlu1 %v3461_v52, %s3629_s11  ;;  %v3338_v52 = vld [vmem:[%s3998_s15 + $0x54] sm:$0xf0] }
 0xc17   :  { %v959_v55 = vpop.permute.xlu1 %958 }
 0xc18   :  { %v961_v7 = vmul.f32 %v959_v55, %v956_v19  ;;  %v3233_v19 = vld [vmem:[%s4003_s19 + $0x20] sm:$0xf]  ;;  %v3337_v55 = vld [vmem:[%s3998_s15 + $0x54] sm:$0xf] }
 0xc1a   :  { %v3970_v22 = vadd.f32 %v965_v21, %v961_v7  ;;  %v3195_v21 = vld [vmem:[%s3998_s15 + $0x58] sm:$0xf0]  ;;  %v3348_v7 = vld [vmem:[%s4003_s19 + $0x24] sm:$0xf0] }
 0xc1c   :  { %v967_v24 = vpack.c.bf16 %v3970_v22, %v3970_v22  ;;  %v3979_v25 = vsel %vm256_vm3, %v1045_v23, %v3970_v22  ;;  %v1038_v61 = vrot.slane %v3970_v22, 6  ;;  %v4024_v23 = vor.u32 %v3348_v7, %v3233_v19  ;;  %v3243_v19 = vld [vmem:[%s4003_s19 + $0x38] sm:$0xf0]  ;;  %v3235_v7 = vld [vmem:[%s4003_s19 + $0x28] sm:$0xf0] }
 0xc1e   :  { %v969_v26 = vrot.slane %v967_v24, 2  ;;  %v3194_v24 = vor.u32 %v3338_v52, %v3193_v17  ;;  %1260 = vmatpush.bf16.msra.mxu2 %v4024_v23  ;;  %v3349_v52 = vld [vmem:[%s4003_s19 + $0x34] sm:$0xf] }
 0xc20   :  { %970 = vrot.lane.b32.xlu2 %v969_v26, %s3629_s11  ;;  %v3225_v26 = vld [vmem:[%s4003_s19 + $0x10] sm:$0xf] }
 0xc7a   :  { %v971_v28 = vpop.permute.xlu2 %970 }
 0xc7b   :  { %3148 = vmatmul.msk.bf16.vlgmr.msrb.gmra.mxu2 %vm460_vm10, %v971_v28  ;;  %3149 = vmatmul.msk.bf16.vlgmr.msrb.gmra.mxu3 %vm460_vm10, %v971_v28  ;;  %v3346_v28 = vld [vmem:[%s4003_s19 + $0x14] sm:$0xf0] }
 0xcfe   :  { %v984_v29 = vpop.f32.mrf.mxu2  ;;  %v997_v30 = vpop.f32.mrf.mxu3 }
 0xcff   :  { %v1002_v31 = vrot.slane %v984_v29, 2  ;;  %v1024_v56 = vadd.f32 %v3835_v16, %v997_v30  ;;  %v3198_v29 = vor.u32 %v3337_v55, %v3195_v21  ;;  %v3185_v30 = vld [vmem:[%s3998_s15 + $0x40] sm:$0xf]  ;;  %v4077_v55 = vor.u32 %v3349_v52, %v3243_v19  ;;  %v3347_v21 = vld [vmem:[%s4003_s19 + $0x24] sm:$0xf] }
 0xd01   :  { %v1004_v32 = vadd.f32 %v1002_v31, %v3930_v41  ;;  %v1026_v60 = vrot.slane %v1024_v56, 2  ;;  %v3336_v31 = vld [vmem:[%s3998_s15 + $0x44] sm:$0xf0]  ;;  %1203 = vmatpush.bf16.msra.mxu1 %v3198_v29  ;;  %1272 = vmatpush.bf16.msra.mxu3 %v4077_v55 }
 0xd03   :  { %v3150_v33 = vmul.f32 -1.442695, %v1004_v32  ;;  %v3335_v32 = vld [vmem:[%s3998_s15 + $0x44] sm:$0xf] }
 0xd05   :  { %3462 = vpow2.f32 %v3150_v33  ;;  %v3187_v33 = vld [vmem:[%s3998_s15 + $0x48] sm:$0xf0] }
 0xd06   :  { %v986_v36 = vpop.f32.mrf.mxu2  ;;  %v999_v40 = vpop.f32.mrf.mxu3 }
 0xd07   :  { %v4033_v36 = vor.u32 %v3346_v28, %v3225_v26  ;;  %v3186_v40 = vor.u32 %v3336_v31, %v3185_v30  ;;  %v3345_v26 = vld [vmem:[%s4003_s19 + $0x14] sm:$0xf]  ;;  %v3227_v28 = vld [vmem:[%s4003_s19 + $0x18] sm:$0xf0]  ;;  %v3343_v30 = vld [vmem:[%s4003_s19 + $0x4] sm:$0xf] }
 0xd08   :  { %v4089_v29 = vor.u32 %v3345_v26, %v3227_v28  ;;  %v3219_v31 = vld [vmem:[%s4003_s19 + $0x8] sm:$0xf0] }
 0xd09   :  { %1261 = vmatpush.bf16.msra.mxu2 %v4033_v36 }
 0xd0b   :  { %v3463_v27 = vpop.eup %3462 }
 0xd0c   :  { %v1008_v43 = vadd.f32 1.0, %v3463_v27  ;;  %v3217_v27 = vld [vmem:[%s4003_s19] sm:$0xf] }
 0xd0e   :  { %3464 = vrcp.f32 %v1008_v43  ;;  %v1020_v50 = vand.u32 2147483648, %v1008_v43  ;;  %v1018_v54 = vand.u32 2147483647, %v1008_v43  ;;  %vm1014_vm14 = vweird.f32 %v1008_v43 }
 0xd10   :  { %v1021_v41 = vor.u32 1.1754944e-38, %v1020_v50  ;;  %vm1019_vm4 = vcmp.eq.f32.partialorder %v1018_v54, 8.507059e+37  ;;  %v3333_v50 = vld [vmem:[%s3998_s15 + $0x34] sm:$0xf] }
 0xd14   :  { %v3465_v44 = vpop.eup %3464 }
 0xd15   :  { %v1010_v45 = vmul.f32 %v3465_v44, %v1008_v43  ;;  %vm1015_vm13 = vweird.f32 %v3465_v44  ;;  %v3344_v43 = vld [vmem:[%s4003_s19 + $0x4] sm:$0xf0] }
 0xd16   :  { %vm1016_vm15 = vmor %vm1014_vm14, %vm1015_vm13  ;;  %v4042_v54 = vor.u32 %v3344_v43, %v3217_v27 }
 0xd17   :  { %v1011_v48 = vsub.f32 1.0, %v1010_v45  ;;  %v3177_v45 = vld [vmem:[%s3998_s15 + $0x30] sm:$0xf] }
 0xd18   :  { %1262 = vmatpush.bf16.msra.mxu2 %v4042_v54 }
 0xd19   :  { %v1012_v53 = vmul.f32 %v3465_v44, %v1011_v48  ;;  %v3334_v48 = vld [vmem:[%s3998_s15 + $0x34] sm:$0xf0] }
 0xd1a   :  { %v3178_v56 = vor.u32 %v3334_v48, %v3177_v45  ;;  %v1053_v45 = vrot.slane %v3944_v15, 2 }
 0xd1b   :  { %v1013_v57 = vadd.f32 %v3465_v44, %v1012_v53  ;;  %v3179_v53 = vld [vmem:[%s3998_s15 + $0x38] sm:$0xf0]  ;;  %1263 = vmatmul.bf16.vlgmr.msra.gmra.mxu2 %v3626_v46 }
 0xd1c   :  { %1327 = vmatpush.bf16.msrb.mxu2 %v4015_v10 }
 0xd1d   :  { %v1017_v59 = vsel %vm1016_vm15, %v3465_v44, %v1013_v57  ;;  %v3190_v44 = vor.u32 %v3335_v32, %v3187_v33  ;;  %v3182_v57 = vor.u32 %v3333_v50, %v3179_v53  ;;  %v4096_v32 = vor.u32 %v3343_v30, %v3219_v31  ;;  %v4141_v53 = vld [vmem:[%s3069_s27] sm:$0x3] }
 0xd1e   :  { %v3987_v63 = vsel %vm1019_vm4, %v1021_v41, %v1017_v59  ;;  %v3169_v41 = vld [vmem:[%s3998_s15 + $0x20] sm:$0xf]  ;;  %v3332_v59 = vld [vmem:[%s3998_s15 + $0x24] sm:$0xf0]  ;;  %v1055_v33 = vrot.slane %v3891_v62, 2 }
 0xd1f   :  { %v1028_v5 = vmul.f32 %v1026_v60, %v3987_v63  ;;  %v3991_v38 = vmul.f32 %v1038_v61, %v3987_v63  ;;  %1204 = vmatpush.bf16.msra.mxu1 %v3190_v44  ;;  %v3331_v60 = vld [vmem:[%s3998_s15 + $0x24] sm:$0xf]  ;;  %v3171_v61 = vld [vmem:[%s3998_s15 + $0x28] sm:$0xf0]  ;;  %v1057_v44 = vrot.slane %v3845_v35, 2 }
 0xd20   :  { %1328 = vmatpush.bf16.msrb.mxu2 %v4024_v23 }
 0xd21   :  { %v1029_v0 = vadd.f32 %v1028_v5, %v3937_v8  ;;  %v3209_v8 = vld [vmem:[%s3998_s15 + $0x70] sm:$0xf]  ;;  %v3170_v5 = vor.u32 %v3332_v59, %v3169_v41 }
 0xd22   :  { %v3210_v9 = vor.u32 %v3342_v2, %v3209_v8  ;;  %v3330_v8 = vld [vmem:[%s3998_s15 + $0x14] sm:$0xf0]  ;;  %v3329_v2 = vld [vmem:[%s3998_s15 + $0x14] sm:$0xf] }
 0xd23   :  { %3466 = vtanh.f32 %v1029_v0  ;;  %1205 = vmatpush.bf16.msra.mxu1 %v3182_v57  ;;  %v3174_v0 = vor.u32 %v3331_v60, %v3171_v61  ;;  %v3166_v13 = vor.u32 %v3329_v2, %v3163_v6  ;;  %v4149_v6 = vld [vmem:[%s3071_s23] ss:$0 sm:$0xff] }
 0xd24   :  { %1187 = vmatpush.bf16.msra.mxu0 %v3210_v9  ;;  %v1031_v9 = vsub.f32 1.0, %v3987_v63  ;;  %1329 = vmatpush.bf16.msrb.mxu2 %v4033_v36  ;;  %v1051_v63 = vrot.slane %v3970_v22, 2  ;;  %v3153_v22 = vld [vmem:[%s3998_s15] sm:$0xf] }
 0xd27   :  { %1206 = vmatpush.bf16.msra.mxu1 %v3174_v0 }
 0xd28   :  { %1188 = vmatpush.bf16.msra.mxu0 %v3202_v20  ;;  %1330 = vmatpush.bf16.msrb.mxu2 %v4042_v54 }
 0xd29   :  { %v3467_v16 = vpop.eup %3466 }
 0xd2a   :  { %1033 = vrot.lane.b32.xlu0 %v3467_v16, %s3629_s11  ;;  %v3161_v16 = vld [vmem:[%s3998_s15 + $0x10] sm:$0xf] }
 0xd2b   :  { %v3162_v11 = vor.u32 %v3330_v8, %v3161_v16  ;;  %1207 = vmatpush.bf16.msra.mxu1 %v3166_v13  ;;  %v1104_v13 = vperm.slane %v4141_v53, 1 }
 0xd2c   :  { %1189 = vmatpush.bf16.msra.mxu0 %v3194_v24  ;;  %1477 = vmatpush.bf16.msra.mxu2 %v4015_v10  ;;  %v4082_v24 = vor.u32 %v3347_v21, %v3235_v7 }
 0xd2e   :  { %1273 = vmatpush.bf16.msra.mxu3 %v4082_v24 }
 0xd30   :  { %1190 = vmatpush.bf16.msra.mxu0 %v3186_v40  ;;  %1478 = vmatpush.bf16.msra.mxu2 %v4024_v23  ;;  %v1062_v40 = vsel %vm133_vm0, %v814_v1, %v1055_v33 }
 0xd31   :  { %v1063_v43 = vsel %vm256_vm3, %v1062_v40, %v670_v58 }
 0xd32   :  { %1274 = vmatpush.bf16.msra.mxu3 %v4089_v29  ;;  %v1064_v51 = vsel %vm140_vm2, %v1063_v43, %v1057_v44 }
 0xd34   :  { %1191 = vmatpush.bf16.msra.mxu0 %v3178_v56  ;;  %1479 = vmatpush.bf16.msra.mxu2 %v4033_v36  ;;  %v1103_v56 = vperm.slane %v4141_v53, 0 }
 0xd36   :  { %1275 = vmatpush.bf16.msra.mxu3 %v4096_v32 }
 0xd38   :  { %1192 = vmatpush.bf16.msra.mxu0 %v3170_v5  ;;  %1480 = vmatpush.bf16.msra.mxu2 %v4042_v54 }
 0xd39   :  { %1276 = vmatmul.bf16.vlgmr.msra.gmra.mxu3 %v3626_v46 }
 0xd3a   :  { %1340 = vmatpush.bf16.msrb.mxu3 %v4077_v55 }
 0xd3c   :  { %1193 = vmatpush.bf16.msra.mxu0 %v3162_v11 }
 0xd3e   :  { %1341 = vmatpush.bf16.msrb.mxu3 %v4082_v24 }
 0xd42   :  { %1342 = vmatpush.bf16.msrb.mxu3 %v4089_v29 }
 0xd46   :  { %1343 = vmatpush.bf16.msrb.mxu3 %v4096_v32 }
 0xd4a   :  { %1490 = vmatpush.bf16.msra.mxu3 %v4077_v55 }
 0xd4e   :  { %1491 = vmatpush.bf16.msra.mxu3 %v4082_v24 }
 0xd52   :  { %1492 = vmatpush.bf16.msra.mxu3 %v4089_v29 }
 0xd56   :  { %1493 = vmatpush.bf16.msra.mxu3 %v4096_v32 }
 0xd9c   :  { %v1034_v12 = vpop.permute.xlu0 %1033 }
 0xd9d   :  { %v1036_v47 = vmul.f32 %v1034_v12, %v1031_v9 }
 0xd9e   :  { %v1264_v35 = vpop.f32.mrf.mxu2 }
 0xd9f   :  { %v1041_v14 = vadd.f32 %v3991_v38, %v1036_v47 }
 0xda1   :  { %v1049_v4 = vrot.slane %v1041_v14, 6  ;;  %v1047_v3 = vsel %vm140_vm2, %v3979_v25, %v1041_v14  ;;  %v3327_v25 = vld [vmem:[%s3998_s15 + $0x4] sm:$0xf] }
 0xda2   :  { %v3393_v20 = vpack.i.bf16 %v1047_v3, %v3922_v37  ;;  %v3328_v37 = vld [vmem:[%s3998_s15 + $0x4] sm:$0xf0]  ;;  %v3158_v17 = vor.u32 %v3327_v25, %v3155_v49  ;;  %s3072_s15 = sld [smem:[%s4563_s0 + %s3637_s12]]  }
 0xda3   :  { %v1059_v39 = vsel %vm133_vm0, %v1049_v4, %v1051_v63  ;;  %v3154_v38 = vor.u32 %v3328_v37, %v3153_v22 }
 0xda4   :  { %3394 = vrot.lane.b32.xlu1 %v3393_v20, %s3629_s11  ;;  %1208 = vmatpush.bf16.msra.mxu1 %v3158_v17  ;;  %v1060_v27 = vsel %vm256_vm3, %v1059_v39, %v963_v42 }
 0xda5   :  { %1194 = vmatpush.bf16.msra.mxu0 %v3154_v38  ;;  %v1061_v1 = vsel %vm140_vm2, %v1060_v27, %v1053_v45 }
 0xda6   :  { %v1266_v15 = vpop.f32.mrf.mxu2 }
 0xda8   :  { %1415 = vmatpush.bf16.msrb.mxu1 %v4077_v55 }
 0xda9   :  { %1402 = vmatpush.bf16.msrb.mxu0 %v4015_v10 }
 0xdac   :  { %1416 = vmatpush.bf16.msrb.mxu1 %v4082_v24 }
 0xdad   :  { %1403 = vmatpush.bf16.msrb.mxu0 %v4024_v23 }
 0xdb0   :  { %1417 = vmatpush.bf16.msrb.mxu1 %v4089_v29 }
 0xdb1   :  { %1404 = vmatpush.bf16.msrb.mxu0 %v4033_v36 }
 0xdb4   :  { %1418 = vmatpush.bf16.msrb.mxu1 %v4096_v32 }
 0xdb5   :  { %1405 = vmatpush.bf16.msrb.mxu0 %v4042_v54 }
 0xdbc   :  { %v1277_v50 = vpop.f32.mrf.mxu3 }
 0xdbd   :  { %v1304_v14 = vadd.f32 %v4149_v6, %v1277_v50 }
 0xdc4   :  { %v1279_v57 = vpop.f32.mrf.mxu3 }
 0xe16   :  { %v3395_v48 = vpop.permute.xlu1 %3394 }
 0xe17   :  { %v3397_v62 = vunpack.i.h.bf16 %v3395_v48  ;;  %v3396_v34 = vunpack.i.l.bf16 %v3395_v48 }
 0xe19   :  { %v1100_v42 = vsel %vm460_vm10, %v3397_v62, %v1064_v51  ;;  %v1099_v18 = vsel %vm460_vm10, %v3396_v34, %v1061_v1 }
 0xe1a   :  { %v1101_v58 = vpack.c.bf16 %v1100_v42, %v1099_v18 }
 0xe1c   :  { %1195 = vmatmul.bf16.vlgmr.msra.gmra.mxu0 %v1101_v58  ;;  %1209 = vmatmul.bf16.vlgmr.msra.gmra.mxu1 %v1101_v58 }
 0xe1d   :  { %1552 = vmatpush.bf16.msra.mxu0 %v4015_v10  ;;  %1565 = vmatpush.bf16.msra.mxu1 %v4077_v55 }
 0xe21   :  { %1553 = vmatpush.bf16.msra.mxu0 %v4024_v23  ;;  %1566 = vmatpush.bf16.msra.mxu1 %v4082_v24 }
 0xe25   :  { %1554 = vmatpush.bf16.msra.mxu0 %v4033_v36  ;;  %1567 = vmatpush.bf16.msra.mxu1 %v4089_v29 }
 0xe29   :  { %1555 = vmatpush.bf16.msra.mxu0 %v4042_v54  ;;  %1568 = vmatpush.bf16.msra.mxu1 %v4096_v32 }
 0xe99   :  { %v1196_v41 = vpop.f32.mrf.mxu0  ;;  %v1210_v63 = vpop.f32.mrf.mxu1 }
 0xe9a   :  { %v4146_v59 = vadd.f32 %v1196_v41, %v1103_v56  ;;  %v4155_v39 = vadd.f32 %v1210_v63, %v1104_v13 }
 0xe9c   :  { %v1281_v60 = vadd.f32 %v1264_v35, %v4146_v59 }
 0xe9e   :  { %v3247_v61 = vmul.f32 -1.442695, %v1281_v60 }
 0xea0   :  { %3468 = vpow2.f32 %v3247_v61 }
 0xea6   :  { %v3469_v5 = vpop.eup %3468 }
 0xea7   :  { %v1285_v0 = vadd.f32 1.0, %v3469_v5 }
 0xea9   :  { %3470 = vrcp.f32 %v1285_v0  ;;  %v1297_v9 = vand.u32 2147483648, %v1285_v0  ;;  %v1295_v12 = vand.u32 2147483647, %v1285_v0  ;;  %vm1291_vm6 = vweird.f32 %v1285_v0 }
 0xeab   :  { %v1298_v4 = vor.u32 1.1754944e-38, %v1297_v9  ;;  %vm1296_vm8 = vcmp.eq.f32.partialorder %v1295_v12, 8.507059e+37 }
 0xeaf   :  { %v3471_v16 = vpop.eup %3470 }
 0xeb0   :  { %v1287_v8 = vmul.f32 %v3471_v16, %v1285_v0  ;;  %vm1292_vm5 = vweird.f32 %v3471_v16 }
 0xeb1   :  { %vm1293_vm7 = vmor %vm1291_vm6, %vm1292_vm5 }
 0xeb2   :  { %v1288_v2 = vsub.f32 1.0, %v1287_v8 }
 0xeb4   :  { %v1289_v11 = vmul.f32 %v3471_v16, %v1288_v2 }
 0xeb6   :  { %v1290_v47 = vadd.f32 %v3471_v16, %v1289_v11 }
 0xeb8   :  { %v1294_v3 = vsel %vm1293_vm7, %v3471_v16, %v1290_v47  ;;  %v4194_v47 = vpop.f32.mrf.mxu0 }
 0xeb9   :  { %v1299_v20 = vsel %vm1296_vm8, %v1298_v4, %v1294_v3 }
 0xeba   :  { %v1305_v22 = vmul.f32 %v1304_v14, %v1299_v20  ;;  %v1308_v38 = vsub.f32 1.0, %v1299_v20  ;;  %v1314_v17 = vmul.f32 0.0, %v1299_v20  ;;  %v4196_v14 = vpop.f32.mrf.mxu1 }
 0xebc   :  { %v1306_v37 = vadd.f32 %v1305_v22, %v4155_v39 }
 0xebe   :  { %3472 = vtanh.f32 %v1306_v37 }
 0xec4   :  { %v3473_v25 = vpop.eup %3472 }
 0xec5   :  { %1310 = vrot.lane.b32.xlu2 %v3473_v25, %s3629_s11 }
 0xf1f   :  { %v1311_v49 = vpop.permute.xlu2 %1310 }
 0xf20   :  { %v1313_v52 = vmul.f32 %v1311_v49, %v1308_v38 }
 0xf22   :  { %v4159_v19 = vadd.f32 %v1314_v17, %v1313_v52 }
 0xf24   :  { %v1316_v21 = vpack.c.bf16 %v4159_v19, %v4159_v19  ;;  %v1386_v5 = vrot.slane %v4159_v19, 6 }
 0xf26   :  { %1318 = vrot.lane.b32.xlu0 %v1316_v21, %s3629_s11 }
 0xf98   :  { %v1319_v7 = vpop.permute.xlu0 %1318 }
 0xf99   :  { %3248 = vmatmul.msk.bf16.vlgmr.msrb.gmra.mxu2 %vm460_vm10, %v1319_v7  ;;  %3249 = vmatmul.msk.bf16.vlgmr.msrb.gmra.mxu3 %vm460_vm10, %v1319_v7 }
 0xf9a   :  { %1620 = vmatpush.bf16.msrb.mxu2 %v4015_v10  ;;  %1633 = vmatpush.bf16.msrb.mxu3 %v4077_v55 }
 0xf9e   :  { %1621 = vmatpush.bf16.msrb.mxu2 %v4024_v23  ;;  %1634 = vmatpush.bf16.msrb.mxu3 %v4082_v24 }
 0xfa2   :  { %1622 = vmatpush.bf16.msrb.mxu2 %v4033_v36  ;;  %1635 = vmatpush.bf16.msrb.mxu3 %v4089_v29 }
 0xfa6   :  { %1623 = vmatpush.bf16.msrb.mxu2 %v4042_v54  ;;  %1636 = vmatpush.bf16.msrb.mxu3 %v4096_v32 }
0x101c   :  { %v1332_v26 = vpop.f32.mrf.mxu2  ;;  %v1345_v28 = vpop.f32.mrf.mxu3 }
0x101d   :  { %v1350_v30 = vrot.slane %v1332_v26, 6  ;;  %v1372_v42 = vadd.f32 %v4149_v6, %v1345_v28 }
0x101f   :  { %v1352_v31 = vadd.f32 %v1350_v30, %v4146_v59  ;;  %v1374_v15 = vrot.slane %v1372_v42, 6 }
0x1021   :  { %v3250_v33 = vmul.f32 -1.442695, %v1352_v31 }
0x1023   :  { %3474 = vpow2.f32 %v3250_v33 }
0x1024   :  { %v1334_v40 = vpop.f32.mrf.mxu2  ;;  %v1347_v27 = vpop.f32.mrf.mxu3 }
0x1029   :  { %v3475_v43 = vpop.eup %3474 }
0x102a   :  { %v1356_v44 = vadd.f32 1.0, %v3475_v43 }
0x102c   :  { %3476 = vrcp.f32 %v1356_v44  ;;  %v1368_v34 = vand.u32 2147483648, %v1356_v44  ;;  %v1366_v51 = vand.u32 2147483647, %v1356_v44  ;;  %vm1362_vm11 = vweird.f32 %v1356_v44 }
0x102e   :  { %v1369_v58 = vor.u32 1.1754944e-38, %v1368_v34  ;;  %vm1367_vm13 = vcmp.eq.f32.partialorder %v1366_v51, 8.507059e+37 }
0x1032   :  { %v3477_v45 = vpop.eup %3476 }
0x1033   :  { %v1358_v48 = vmul.f32 %v3477_v45, %v1356_v44  ;;  %vm1363_vm9 = vweird.f32 %v3477_v45 }
0x1034   :  { %vm1364_vm12 = vmor %vm1362_vm11, %vm1363_vm9 }
0x1035   :  { %v1359_v62 = vsub.f32 1.0, %v1358_v48 }
0x1037   :  { %v1360_v1 = vmul.f32 %v3477_v45, %v1359_v62 }
0x1039   :  { %v1361_v18 = vadd.f32 %v3477_v45, %v1360_v1 }
0x103b   :  { %v1365_v35 = vsel %vm1364_vm12, %v3477_v45, %v1361_v18 }
0x103c   :  { %v1370_v50 = vsel %vm1367_vm13, %v1369_v58, %v1365_v35 }
0x103d   :  { %v1376_v57 = vmul.f32 %v1374_v15, %v1370_v50  ;;  %v1379_v61 = vsub.f32 1.0, %v1370_v50  ;;  %v1388_v16 = vmul.f32 %v1386_v5, %v1370_v50 }
0x103f   :  { %v1377_v41 = vadd.f32 %v1376_v57, %v4155_v39 }
0x1041   :  { %3478 = vtanh.f32 %v1377_v41 }
0x1047   :  { %v3479_v60 = vpop.eup %3478 }
0x1048   :  { %1381 = vrot.lane.b32.xlu1 %v3479_v60, %s3629_s11 }
0x10ba   :  { %v1382_v0 = vpop.permute.xlu1 %1381 }
0x10bb   :  { %v1384_v8 = vmul.f32 %v1382_v0, %v1379_v61 }
0x10bd   :  { %v4179_v2 = vadd.f32 %v1388_v16, %v1384_v8 }
0x10bf   :  { %v1390_v9 = vpack.c.bf16 %v4179_v2, %v4179_v2  ;;  %v1461_v34 = vrot.slane %v4179_v2, 6  ;;  %v1833_v58 = vsel %vm133_vm0, %v4159_v19, %v4179_v2  ;;  %v3354_v2 = vld [vmem:[%s3072_s15 + $0x18] sm:$0xff] }
0x10c1   :  { %v1392_v11 = vrot.slane %v1390_v9, 1 }
0x10c3   :  { %1393 = vrot.lane.b32.xlu2 %v1392_v11, %s3629_s11 }
0x111d   :  { %v1394_v12 = vpop.permute.xlu2 %1393 }
0x111e   :  { %3251 = vmatmul.msk.bf16.vlgmr.msrb.gmra.mxu0 %vm460_vm10, %v1394_v12  ;;  %3252 = vmatmul.msk.bf16.vlgmr.msrb.gmra.mxu1 %vm460_vm10, %v1394_v12 }
0x111f   :  { %1695 = vmatpush.bf16.msrb.mxu0 %v4015_v10  ;;  %1708 = vmatpush.bf16.msrb.mxu1 %v4077_v55 }
0x1123   :  { %1696 = vmatpush.bf16.msrb.mxu0 %v4024_v23  ;;  %1709 = vmatpush.bf16.msrb.mxu1 %v4082_v24 }
0x1127   :  { %1697 = vmatpush.bf16.msrb.mxu0 %v4033_v36  ;;  %1710 = vmatpush.bf16.msrb.mxu1 %v4089_v29 }
0x112b   :  { %1698 = vmatpush.bf16.msrb.mxu0 %v4042_v54  ;;  %1711 = vmatpush.bf16.msrb.mxu1 %v4096_v32 }
0x119b   :  { %v1407_v63 = vpop.f32.mrf.mxu0  ;;  %v1420_v4 = vpop.f32.mrf.mxu1 }
0x119c   :  { %v1425_v3 = vrot.slane %v1407_v63, 4  ;;  %v1447_v30 = vadd.f32 %v4149_v6, %v1420_v4 }
0x119e   :  { %v1427_v20 = vadd.f32 %v1425_v3, %v4146_v59  ;;  %v1449_v27 = vrot.slane %v1447_v30, 4 }
0x11a0   :  { %v3253_v22 = vmul.f32 -1.442695, %v1427_v20 }
0x11a2   :  { %3480 = vpow2.f32 %v3253_v22 }
0x11a3   :  { %v1409_v37 = vpop.f32.mrf.mxu0  ;;  %v1422_v25 = vpop.f32.mrf.mxu1 }
0x11a8   :  { %v3481_v38 = vpop.eup %3480 }
0x11a9   :  { %v1431_v49 = vadd.f32 1.0, %v3481_v38 }
0x11ab   :  { %3482 = vrcp.f32 %v1431_v49  ;;  %v1443_v7 = vand.u32 2147483648, %v1431_v49  ;;  %v1441_v28 = vand.u32 2147483647, %v1431_v49  ;;  %vm1437_vm15 = vweird.f32 %v1431_v49 }
0x11ad   :  { %v1444_v33 = vor.u32 1.1754944e-38, %v1443_v7  ;;  %vm1442_vm5 = vcmp.eq.f32.partialorder %v1441_v28, 8.507059e+37  ;;  %v4244_v28 = vadd.f32 %v4194_v47, %v1103_v56 }
0x11b1   :  { %v3483_v17 = vpop.eup %3482 }
0x11b2   :  { %v1433_v52 = vmul.f32 %v3483_v17, %v1431_v49  ;;  %vm1438_vm14 = vweird.f32 %v3483_v17 }
0x11b3   :  { %vm1439_vm4 = vmor %vm1437_vm15, %vm1438_vm14 }
0x11b4   :  { %v1434_v21 = vsub.f32 1.0, %v1433_v52 }
0x11b6   :  { %v1435_v26 = vmul.f32 %v3483_v17, %v1434_v21 }
0x11b8   :  { %v1436_v31 = vadd.f32 %v3483_v17, %v1435_v26 }
0x11ba   :  { %v1440_v40 = vsel %vm1439_vm4, %v3483_v17, %v1436_v31 }
0x11bb   :  { %v1445_v43 = vsel %vm1442_vm5, %v1444_v33, %v1440_v40 }
0x11bc   :  { %v1451_v44 = vmul.f32 %v1449_v27, %v1445_v43  ;;  %v1454_v62 = vsub.f32 1.0, %v1445_v43  ;;  %v1463_v51 = vmul.f32 %v1461_v34, %v1445_v43 }
0x11be   :  { %v1452_v45 = vadd.f32 %v1451_v44, %v4155_v39 }
0x11c0   :  { %3484 = vtanh.f32 %v1452_v45 }
0x11c6   :  { %v3485_v48 = vpop.eup %3484 }
0x11c7   :  { %1456 = vrot.lane.b32.xlu0 %v3485_v48, %s3629_s11 }
0x1239   :  { %v1457_v1 = vpop.permute.xlu0 %1456 }
0x123a   :  { %v1459_v42 = vmul.f32 %v1457_v1, %v1454_v62 }
0x123c   :  { %v4205_v18 = vadd.f32 %v1463_v51, %v1459_v42 }
0x123e   :  { %v1465_v35 = vpack.c.bf16 %v4205_v18, %v4205_v18  ;;  %v1834_v15 = vsel %vm256_vm3, %v1833_v58, %v4205_v18  ;;  %v1536_v4 = vrot.slane %v4205_v18, 6 }
0x1240   :  { %v1467_v50 = vrot.slane %v1465_v35, 2 }
0x1242   :  { %1468 = vrot.lane.b32.xlu1 %v1467_v50, %s3629_s11 }
0x12b4   :  { %v1469_v57 = vpop.permute.xlu1 %1468 }
0x12b5   :  { %3254 = vmatmul.msk.bf16.vlgmr.msra.gmra.mxu2 %vm460_vm10, %v1469_v57  ;;  %3255 = vmatmul.msk.bf16.vlgmr.msra.gmra.mxu3 %vm460_vm10, %v1469_v57  ;;  %v4251_v57 = vadd.f32 %v4196_v14, %v1104_v13 }
0x12b6   :  { %1770 = vmatpush.bf16.msra.mxu2 %v4015_v10  ;;  %1783 = vmatpush.bf16.msra.mxu3 %v4077_v55 }
0x12ba   :  { %1771 = vmatpush.bf16.msra.mxu2 %v4024_v23  ;;  %1784 = vmatpush.bf16.msra.mxu3 %v4082_v24 }
0x12be   :  { %1772 = vmatpush.bf16.msra.mxu2 %v4033_v36  ;;  %1785 = vmatpush.bf16.msra.mxu3 %v4089_v29 }
0x12c2   :  { %1773 = vmatpush.bf16.msra.mxu2 %v4042_v54  ;;  %1786 = vmatpush.bf16.msra.mxu3 %v4096_v32 }
0x1338   :  { %v1482_v41 = vpop.f32.mrf.mxu2  ;;  %v1495_v60 = vpop.f32.mrf.mxu3 }
0x1339   :  { %v1500_v61 = vrot.slane %v1482_v41, 2  ;;  %v1522_v32 = vadd.f32 %v4149_v6, %v1495_v60 }
0x133b   :  { %v1502_v5 = vadd.f32 %v1500_v61, %v4146_v59  ;;  %v1524_v63 = vrot.slane %v1522_v32, 2 }
0x133d   :  { %v3256_v10 = vmul.f32 -1.442695, %v1502_v5 }
0x133f   :  { %3486 = vpow2.f32 %v3256_v10 }
0x1340   :  { %v1484_v55 = vpop.f32.mrf.mxu2  ;;  %v1497_v0 = vpop.f32.mrf.mxu3 }
0x1345   :  { %v3487_v23 = vpop.eup %3486 }
0x1346   :  { %v1506_v16 = vadd.f32 1.0, %v3487_v23 }
0x1348   :  { %3488 = vrcp.f32 %v1506_v16  ;;  %v1518_v29 = vand.u32 2147483648, %v1506_v16  ;;  %v1516_v54 = vand.u32 2147483647, %v1506_v16  ;;  %vm1512_vm7 = vweird.f32 %v1506_v16 }
0x134a   :  { %v1519_v59 = vor.u32 1.1754944e-38, %v1518_v29  ;;  %vm1517_vm9 = vcmp.eq.f32.partialorder %v1516_v54, 8.507059e+37 }
0x134e   :  { %v3489_v24 = vpop.eup %3488 }
0x134f   :  { %v1508_v36 = vmul.f32 %v3489_v24, %v1506_v16  ;;  %vm1513_vm6 = vweird.f32 %v3489_v24 }
0x1350   :  { %vm1514_vm8 = vmor %vm1512_vm7, %vm1513_vm6 }
0x1351   :  { %v1509_v8 = vsub.f32 1.0, %v1508_v36 }
0x1353   :  { %v1510_v9 = vmul.f32 %v3489_v24, %v1509_v8 }
0x1355   :  { %v1511_v11 = vadd.f32 %v3489_v24, %v1510_v9 }
0x1357   :  { %v1515_v12 = vsel %vm1514_vm8, %v3489_v24, %v1511_v11 }
0x1358   :  { %v1520_v3 = vsel %vm1517_vm9, %v1519_v59, %v1515_v12 }
0x1359   :  { %v1526_v20 = vmul.f32 %v1524_v63, %v1520_v3  ;;  %v1538_v22 = vmul.f32 %v1536_v4, %v1520_v3  ;;  %v1529_v38 = vsub.f32 1.0, %v1520_v3 }
0x135b   :  { %v1527_v37 = vadd.f32 %v1526_v20, %v4155_v39 }
0x135d   :  { %3490 = vtanh.f32 %v1527_v37 }
0x1363   :  { %v3491_v25 = vpop.eup %3490 }
0x1364   :  { %1531 = vrot.lane.b32.xlu2 %v3491_v25, %s3629_s11 }
0x13be   :  { %v1532_v49 = vpop.permute.xlu2 %1531 }
0x13bf   :  { %v1534_v17 = vmul.f32 %v1532_v49, %v1529_v38 }
0x13c1   :  { %v4230_v52 = vadd.f32 %v1538_v22, %v1534_v17 }
0x13c3   :  { %v1540_v21 = vpack.c.bf16 %v4230_v52, %v4230_v52  ;;  %v4236_v7 = vsel %vm140_vm2, %v1834_v15, %v4230_v52  ;;  %v1605_v10 = vrot.slane %v4230_v52, 6 }
0x13c5   :  { %v1542_v26 = vrot.slane %v1540_v21, 3 }
0x13c7   :  { %1543 = vrot.lane.b32.xlu0 %v1542_v26, %s3629_s11 }
0x1439   :  { %v1544_v39 = vpop.permute.xlu0 %1543 }
0x143a   :  { %3257 = vmatmul.msk.bf16.vlgmr.msra.gmra.mxu0 %vm460_vm10, %v1544_v39  ;;  %3258 = vmatmul.msk.bf16.vlgmr.msra.gmra.mxu1 %vm460_vm10, %v1544_v39 }
0x143b   :  { %1921 = vmatpush.bf16.msra.mxu0 %v3354_v2 }
0x14b7   :  { %v1557_v30 = vpop.f32.mrf.mxu0  ;;  %v1570_v31 = vpop.f32.mrf.mxu1 }
0x14b8   :  { %v1574_v33 = vadd.f32 %v1557_v30, %v4244_v28  ;;  %v1594_v15 = vadd.f32 %v4149_v6, %v1570_v31 }
0x14ba   :  { %v3259_v40 = vmul.f32 -1.442695, %v1574_v33 }
0x14bc   :  { %3492 = vpow2.f32 %v3259_v40 }
0x14bf   :  { %v1559_v27 = vpop.f32.mrf.mxu0  ;;  %v1572_v43 = vpop.f32.mrf.mxu1 }
0x14c2   :  { %v3493_v44 = vpop.eup %3492 }
0x14c3   :  { %v1578_v45 = vadd.f32 1.0, %v3493_v44 }
0x14c5   :  { %3494 = vrcp.f32 %v1578_v45  ;;  %v1590_v51 = vand.u32 2147483648, %v1578_v45  ;;  %v1588_v58 = vand.u32 2147483647, %v1578_v45  ;;  %vm1584_vm12 = vweird.f32 %v1578_v45 }
0x14c7   :  { %v1591_v47 = vor.u32 1.1754944e-38, %v1590_v51  ;;  %vm1589_vm14 = vcmp.eq.f32.partialorder %v1588_v58, 8.507059e+37 }
0x14cb   :  { %v3495_v48 = vpop.eup %3494 }
0x14cc   :  { %v1580_v62 = vmul.f32 %v3495_v48, %v1578_v45  ;;  %vm1585_vm11 = vweird.f32 %v3495_v48 }
0x14cd   :  { %vm1586_vm13 = vmor %vm1584_vm12, %vm1585_vm11 }
0x14ce   :  { %v1581_v1 = vsub.f32 1.0, %v1580_v62 }
0x14d0   :  { %v1582_v42 = vmul.f32 %v3495_v48, %v1581_v1 }
0x14d2   :  { %v1583_v56 = vadd.f32 %v3495_v48, %v1582_v42 }
0x14d4   :  { %v1587_v35 = vsel %vm1586_vm13, %v3495_v48, %v1583_v56 }
0x14d5   :  { %v1592_v50 = vsel %vm1589_vm14, %v1591_v47, %v1587_v35 }
0x14d6   :  { %v1595_v41 = vmul.f32 %v1594_v15, %v1592_v50  ;;  %v1598_v5 = vsub.f32 1.0, %v1592_v50  ;;  %v1607_v0 = vmul.f32 %v1605_v10, %v1592_v50 }
0x14d8   :  { %v1596_v60 = vadd.f32 %v1595_v41, %v4251_v57 }
0x14da   :  { %3496 = vtanh.f32 %v1596_v60 }
0x14e0   :  { %v3497_v61 = vpop.eup %3496 }
0x14e1   :  { %1600 = vrot.lane.b32.xlu1 %v3497_v61, %s3629_s11 }
0x1553   :  { %v1601_v55 = vpop.permute.xlu1 %1600 }
0x1554   :  { %v1603_v23 = vmul.f32 %v1601_v55, %v1598_v5 }
0x1556   :  { %v4258_v16 = vadd.f32 %v1607_v0, %v1603_v23 }
0x1558   :  { %v1609_v53 = vpack.c.bf16 %v4258_v16, %v4258_v16  ;;  %v1679_v31 = vrot.slane %v4258_v16, 6 }
0x155a   :  { %1611 = vrot.lane.b32.xlu2 %v1609_v53, %s3629_s11 }
0x15b4   :  { %v1612_v13 = vpop.permute.xlu2 %1611 }
0x15b5   :  { %3260 = vmatmul.msk.bf16.vlgmr.msrb.gmra.mxu2 %vm460_vm10, %v1612_v13  ;;  %3261 = vmatmul.msk.bf16.vlgmr.msrb.gmra.mxu3 %vm460_vm10, %v1612_v13 }
0x1638   :  { %v1625_v14 = vpop.f32.mrf.mxu2  ;;  %v1638_v24 = vpop.f32.mrf.mxu3 }
0x1639   :  { %v1643_v36 = vrot.slane %v1625_v14, 6  ;;  %v1665_v22 = vadd.f32 %v4149_v6, %v1638_v24 }
0x163b   :  { %v1645_v8 = vadd.f32 %v1643_v36, %v4244_v28  ;;  %v1667_v49 = vrot.slane %v1665_v22, 6 }
0x163d   :  { %v3262_v29 = vmul.f32 -1.442695, %v1645_v8 }
0x163f   :  { %3498 = vpow2.f32 %v3262_v29 }
0x1640   :  { %v1627_v9 = vpop.f32.mrf.mxu2  ;;  %v1640_v54 = vpop.f32.mrf.mxu3 }
0x1645   :  { %v3499_v32 = vpop.eup %3498 }
0x1646   :  { %v1649_v11 = vadd.f32 1.0, %v3499_v32 }
0x1648   :  { %3500 = vrcp.f32 %v1649_v11  ;;  %v1661_v4 = vand.u32 2147483648, %v1649_v11  ;;  %v1659_v20 = vand.u32 2147483647, %v1649_v11  ;;  %vm1655_vm4 = vweird.f32 %v1649_v11 }
0x164a   :  { %v1662_v25 = vor.u32 1.1754944e-38, %v1661_v4  ;;  %vm1660_vm6 = vcmp.eq.f32.partialorder %v1659_v20, 8.507059e+37 }
0x164e   :  { %v3501_v59 = vpop.eup %3500 }
0x164f   :  { %v1651_v12 = vmul.f32 %v3501_v59, %v1649_v11  ;;  %vm1656_vm15 = vweird.f32 %v3501_v59 }
0x1650   :  { %vm1657_vm5 = vmor %vm1655_vm4, %vm1656_vm15  ;;  %vm1872_vm4 = vcmask 261120  }
0x1651   :  { %v1652_v63 = vsub.f32 1.0, %v1651_v12 }
0x1653   :  { %v1653_v3 = vmul.f32 %v3501_v59, %v1652_v63 }
0x1655   :  { %v1654_v37 = vadd.f32 %v3501_v59, %v1653_v3 }
0x1657   :  { %v1658_v38 = vsel %vm1657_vm5, %v3501_v59, %v1654_v37 }
0x1658   :  { %v1663_v17 = vsel %vm1660_vm6, %v1662_v25, %v1658_v38 }
0x1659   :  { %v1669_v21 = vmul.f32 %v1667_v49, %v1663_v17  ;;  %v1672_v30 = vsub.f32 1.0, %v1663_v17  ;;  %v1681_v40 = vmul.f32 %v1679_v31, %v1663_v17 }
0x165b   :  { %v1670_v26 = vadd.f32 %v1669_v21, %v4251_v57 }
0x165d   :  { %3502 = vtanh.f32 %v1670_v26 }
0x1663   :  { %v3503_v39 = vpop.eup %3502 }
0x1664   :  { %1674 = vrot.lane.b32.xlu0 %v3503_v39, %s3629_s11 }
0x16d6   :  { %v1675_v33 = vpop.permute.xlu0 %1674 }
0x16d7   :  { %v1677_v27 = vmul.f32 %v1675_v33, %v1672_v30 }
0x16d9   :  { %v4270_v43 = vadd.f32 %v1681_v40, %v1677_v27 }
0x16db   :  { %v1683_v44 = vpack.c.bf16 %v4270_v43, %v4270_v43  ;;  %v1754_v54 = vrot.slane %v4270_v43, 6  ;;  %v1836_v63 = vsel %vm133_vm0, %v4258_v16, %v4270_v43 }
0x16dd   :  { %v1685_v45 = vrot.slane %v1683_v44, 1 }
0x16df   :  { %1686 = vrot.lane.b32.xlu1 %v1685_v45, %s3629_s11 }
0x1751   :  { %v1687_v48 = vpop.permute.xlu1 %1686 }
0x1752   :  { %3263 = vmatmul.msk.bf16.vlgmr.msrb.gmra.mxu0 %vm460_vm10, %v1687_v48  ;;  %3264 = vmatmul.msk.bf16.vlgmr.msrb.gmra.mxu1 %vm460_vm10, %v1687_v48 }
0x17cf   :  { %v1700_v62 = vpop.f32.mrf.mxu0  ;;  %v1713_v1 = vpop.f32.mrf.mxu1 }
0x17d0   :  { %v1718_v51 = vrot.slane %v1700_v62, 4  ;;  %v1740_v0 = vadd.f32 %v4149_v6, %v1713_v1 }
0x17d2   :  { %v1720_v42 = vadd.f32 %v1718_v51, %v4244_v28  ;;  %v1742_v14 = vrot.slane %v1740_v0, 4 }
0x17d4   :  { %v3265_v58 = vmul.f32 -1.442695, %v1720_v42 }
0x17d6   :  { %3504 = vpow2.f32 %v3265_v58 }
0x17d7   :  { %v1702_v56 = vpop.f32.mrf.mxu0  ;;  %v1715_v47 = vpop.f32.mrf.mxu1 }
0x17dc   :  { %v3505_v35 = vpop.eup %3504 }
0x17dd   :  { %v1724_v15 = vadd.f32 1.0, %v3505_v35 }
0x17df   :  { %3506 = vrcp.f32 %v1724_v15  ;;  %v1736_v61 = vand.u32 2147483648, %v1724_v15  ;;  %v1734_v55 = vand.u32 2147483647, %v1724_v15  ;;  %vm1730_vm8 = vweird.f32 %v1724_v15 }
0x17e1   :  { %v1737_v53 = vor.u32 1.1754944e-38, %v1736_v61  ;;  %vm1735_vm11 = vcmp.eq.f32.partialorder %v1734_v55, 8.507059e+37  ;;  %v1846_v61 = vrot.slane %v4205_v18, 2 }
0x17e3   :  { %v1853_v0 = vsel %vm133_vm0, %v1605_v10, %v1846_v61 }
0x17e4   :  { %v1854_v52 = vsel %vm256_vm3, %v1853_v0, %v1461_v34  ;;  %v3352_v34 = vld [vmem:[%s3072_s15 + $0x8] sm:$0xff] }
0x17e5   :  { %v3507_v50 = vpop.eup %3506 }
0x17e6   :  { %v1726_v41 = vmul.f32 %v3507_v50, %v1724_v15  ;;  %vm1731_vm7 = vweird.f32 %v3507_v50 }
0x17e7   :  { %vm1732_vm9 = vmor %vm1730_vm8, %vm1731_vm7 }
0x17e8   :  { %v1727_v60 = vsub.f32 1.0, %v1726_v41 }
0x17ea   :  { %v1728_v5 = vmul.f32 %v3507_v50, %v1727_v60 }
0x17ec   :  { %v1729_v23 = vadd.f32 %v3507_v50, %v1728_v5 }
0x17ee   :  { %v1733_v13 = vsel %vm1732_vm9, %v3507_v50, %v1729_v23  ;;  %v3416_v50 = vld [vmem:[%s3075_s2] ss:$0 sm:$0xff] }
0x17ef   :  { %v1738_v24 = vsel %vm1735_vm11, %v1737_v53, %v1733_v13 }
0x17f0   :  { %v1744_v36 = vmul.f32 %v1742_v14, %v1738_v24  ;;  %v1747_v9 = vsub.f32 1.0, %v1738_v24  ;;  %v1756_v11 = vmul.f32 %v1754_v54, %v1738_v24  ;;  %v1844_v14 = vrot.slane %v4258_v16, 2  ;;  %v3351_v16 = vld [vmem:[%s3072_s15] sm:$0xff] }
0x17f1   :  { %v1848_v24 = vrot.slane %v4159_v19, 2  ;;  %v3353_v19 = vld [vmem:[%s3072_s15 + $0x10] sm:$0xff] }
0x17f2   :  { %v1745_v8 = vadd.f32 %v1744_v36, %v4251_v57  ;;  %1922 = vmatpush.bf16.msra.mxu0 %v3353_v19 }
0x17f4   :  { %3508 = vtanh.f32 %v1745_v8 }
0x17f6   :  { %1923 = vmatpush.bf16.msra.mxu0 %v3352_v34 }
0x17fa   :  { %v3509_v29 = vpop.eup %3508  ;;  %1924 = vmatpush.bf16.msra.mxu0 %v3351_v16 }
0x17fb   :  { %1749 = vrot.lane.b32.xlu2 %v3509_v29, %s3629_s11 }
0x1855   :  { %v1750_v32 = vpop.permute.xlu2 %1749 }
0x1856   :  { %v1752_v59 = vmul.f32 %v1750_v32, %v1747_v9 }
0x1858   :  { %v4284_v12 = vadd.f32 %v1756_v11, %v1752_v59 }
0x185a   :  { %v1758_v4 = vpack.c.bf16 %v4284_v12, %v4284_v12  ;;  %v4293_v3 = vsel %vm256_vm3, %v1836_v63, %v4284_v12  ;;  %v1829_v42 = vrot.slane %v4284_v12, 6  ;;  %v1842_v23 = vrot.slane %v4284_v12, 2 }
0x185c   :  { %v1760_v20 = vrot.slane %v1758_v4, 2 }
0x185e   :  { %1761 = vrot.lane.b32.xlu0 %v1760_v20, %s3629_s11 }
0x18d0   :  { %v1762_v22 = vpop.permute.xlu0 %1761 }
0x18d1   :  { %3266 = vmatmul.msk.bf16.vlgmr.msra.gmra.mxu2 %vm460_vm10, %v1762_v22  ;;  %3267 = vmatmul.msk.bf16.vlgmr.msra.gmra.mxu3 %vm460_vm10, %v1762_v22 }
0x1954   :  { %v1775_v37 = vpop.f32.mrf.mxu2  ;;  %v1788_v25 = vpop.f32.mrf.mxu3 }
0x1955   :  { %v1793_v38 = vrot.slane %v1775_v37, 2  ;;  %v1815_v48 = vadd.f32 %v4149_v6, %v1788_v25  ;;  %v1884_v6 = vld [vmem:[%s3074_s6] sm:$0x3] }
0x1956   :  { %v1934_v41 = vsel %vm133_vm0, %v1884_v6, 0  ;;  %v4347_v25 = vld [vmem:[%s4322_s10] ss:$0 sm:$0xff] }
0x1957   :  { %v1795_v49 = vadd.f32 %v1793_v38, %v4244_v28  ;;  %v1817_v51 = vrot.slane %v1815_v48, 2  ;;  %1943 = vmatpush.bf16.msra.mxu1 %v1934_v41  ;;  %2008 = vmatpush.bf16.msrb.mxu2 %v1934_v41 }
0x1958   :  { %2076 = vmatpush.bf16.msrb.mxu3 %v1934_v41  ;;  %2144 = vmatpush.bf16.msrb.mxu0 %v1934_v41 }
0x1959   :  { %v3268_v17 = vmul.f32 -1.442695, %v1795_v49 }
0x195a   :  { %1944 = vmatmul.bf16.vlgmr.msra.gmra.mxu1 %v3626_v46 }
0x195b   :  { %3510 = vpow2.f32 %v3268_v17  ;;  %2212 = vmatpush.bf16.msrb.mxu1 %v1934_v41  ;;  %2275 = vmatpush.bf16.msra.mxu2 %v1934_v41 }
0x195c   :  { %v1777_v21 = vpop.f32.mrf.mxu2  ;;  %v1790_v26 = vpop.f32.mrf.mxu3  ;;  %2343 = vmatpush.bf16.msra.mxu3 %v1934_v41 }
0x1961   :  { %v3511_v39 = vpop.eup %3510 }
0x1962   :  { %v1799_v30 = vadd.f32 1.0, %v3511_v39 }
0x1964   :  { %3512 = vrcp.f32 %v1799_v30  ;;  %v1811_v27 = vand.u32 2147483648, %v1799_v30  ;;  %v1809_v45 = vand.u32 2147483647, %v1799_v30  ;;  %vm1805_vm13 = vweird.f32 %v1799_v30 }
0x1966   :  { %v1812_v28 = vor.u32 1.1754944e-38, %v1811_v27  ;;  %vm1810_vm15 = vcmp.eq.f32.partialorder %v1809_v45, 8.507059e+37 }
0x196a   :  { %v3513_v31 = vpop.eup %3512 }
0x196b   :  { %v1801_v33 = vmul.f32 %v3513_v31, %v1799_v30  ;;  %vm1806_vm12 = vweird.f32 %v3513_v31 }
0x196c   :  { %vm1807_vm14 = vmor %vm1805_vm13, %vm1806_vm12 }
0x196d   :  { %v1802_v40 = vsub.f32 1.0, %v1801_v33 }
0x196f   :  { %v1803_v44 = vmul.f32 %v3513_v31, %v1802_v40 }
0x1971   :  { %v1804_v62 = vadd.f32 %v3513_v31, %v1803_v44 }
0x1973   :  { %v1808_v1 = vsel %vm1807_vm14, %v3513_v31, %v1804_v62 }
0x1974   :  { %v1813_v58 = vsel %vm1810_vm15, %v1812_v28, %v1808_v1 }
0x1975   :  { %v1819_v56 = vmul.f32 %v1817_v51, %v1813_v58  ;;  %v1831_v47 = vmul.f32 %v1829_v42, %v1813_v58 }
0x1977   :  { %v1820_v35 = vadd.f32 %v1819_v56, %v4251_v57  ;;  %v1822_v57 = vsub.f32 1.0, %v1813_v58 }
0x1979   :  { %3514 = vtanh.f32 %v1820_v35 }
0x197f   :  { %v3515_v15 = vpop.eup %3514 }
0x1980   :  { %1824 = vrot.lane.b32.xlu1 %v3515_v15, %s3629_s11 }
0x1988   :  { %1971 = vrot.lane.b32.xlu1 %v3416_v50, %s3618_s30 }
0x19d7   :  { %v1945_v9 = vpop.f32.mrf.mxu1 }
0x19df   :  { %v1947_v32 = vpop.f32.mrf.mxu1 }
0x19f2   :  { %v1825_v60 = vpop.permute.xlu1 %1824 }
0x19f3   :  { %v1827_v5 = vmul.f32 %v1825_v60, %v1822_v57 }
0x19f5   :  { %v1832_v55 = vadd.f32 %v1831_v47, %v1827_v5 }
0x19f7   :  { %v1840_v53 = vrot.slane %v1832_v55, 6  ;;  %v1838_v13 = vsel %vm140_vm2, %v4293_v3, %v1832_v55 }
0x19f8   :  { %v3398_v18 = vpack.i.bf16 %v1838_v13, %v4236_v7  ;;  %v1855_v7 = vsel %vm140_vm2, %v1854_v52, %v1848_v24 }
0x19f9   :  { %v1850_v10 = vsel %vm133_vm0, %v1840_v53, %v1842_v23 }
0x19fa   :  { %3399 = vrot.lane.b32.xlu2 %v3398_v18, %s3629_s11  ;;  %v1851_v36 = vsel %vm256_vm3, %v1850_v10, %v1754_v54  ;;  %v4341_v43 = vpop.permute.xlu1 %1971 }
0x19fb   :  { %v1852_v8 = vsel %vm140_vm2, %v1851_v36, %v1844_v14  ;;  %v1974_v54 = vadd.f32 %v4341_v43, %v1945_v9 }
0x19fc   :  { %v3403_v29 = vpack.i.bf16 %v1855_v7, %v1852_v8 }
0x19fe   :  { %3404 = vrot.lane.b32.xlu0 %v3403_v29, %s3629_s11  ;;  %s3638_s11 = smov 120  }
0x1a02   :  { %1976 = vrot.lane.b32.xlu2 %v1974_v54, %s3638_s11 }
0x1a54   :  { %v3400_v11 = vpop.permute.xlu2 %3399 }
0x1a55   :  { %v3402_v12 = vunpack.i.h.bf16 %v3400_v11  ;;  %v3401_v63 = vunpack.i.l.bf16 %v3400_v11 }
0x1a5c   :  { %v1977_v62 = vpop.permute.xlu2 %1976 }
0x1a70   :  { %v3405_v59 = vpop.permute.xlu0 %3404 }
0x1a71   :  { %v3407_v4 = vunpack.i.h.bf16 %v3405_v59  ;;  %v3406_v3 = vunpack.i.l.bf16 %v3405_v59 }
0x1a73   :  { %v1873_v20 = vsel %vm1872_vm4, %v3401_v63, %v3406_v3  ;;  %v1874_v22 = vsel %vm1872_vm4, %v3402_v12, %v3407_v4 }
0x1a74   :  { %v1886_v37 = vpack.c.bf16 %v1874_v22, %v1873_v20 }
0x1a76   :  { %3285 = vmatmul.msk.bf16.vlgmr.msra.gmra.mxu0 %vm460_vm10, %v1886_v37 }
0x1a77   :  { %2411 = vmatpush.bf16.msra.mxu0 %v1934_v41 }
0x1af3   :  { %v1926_v38 = vpop.f32.mrf.mxu0 }
0x1af4   :  { %v4350_v49 = vadd.f32 %v4347_v25, %v1926_v38 }
0x1af6   :  { %v1949_v17 = vadd.f32 %v1945_v9, %v4350_v49 }
0x1af8   :  { %v3286_v21 = vmul.f32 -1.442695, %v1949_v17 }
0x1afa   :  { %3516 = vpow2.f32 %v3286_v21 }
0x1b00   :  { %v3517_v26 = vpop.eup %3516 }
0x1b01   :  { %v1953_v39 = vadd.f32 1.0, %v3517_v26 }
0x1b03   :  { %3518 = vrcp.f32 %v1953_v39  ;;  %v1965_v40 = vand.u32 2147483648, %v1953_v39  ;;  %v1963_v44 = vand.u32 2147483647, %v1953_v39  ;;  %vm1959_vm5 = vweird.f32 %v1953_v39 }
0x1b05   :  { %v1966_v48 = vor.u32 1.1754944e-38, %v1965_v40  ;;  %vm1964_vm7 = vcmp.eq.f32.partialorder %v1963_v44, 8.507059e+37 }
0x1b09   :  { %v3519_v30 = vpop.eup %3518 }
0x1b0a   :  { %v1955_v31 = vmul.f32 %v3519_v30, %v1953_v39  ;;  %vm1960_vm10 = vweird.f32 %v3519_v30 }
0x1b0b   :  { %vm1961_vm6 = vmor %vm1959_vm5, %vm1960_vm10 }
0x1b0c   :  { %v1956_v33 = vsub.f32 1.0, %v1955_v31 }
0x1b0e   :  { %v1957_v27 = vmul.f32 %v3519_v30, %v1956_v33 }
0x1b10   :  { %v1958_v45 = vadd.f32 %v3519_v30, %v1957_v27 }
0x1b12   :  { %v1962_v28 = vsel %vm1961_vm6, %v3519_v30, %v1958_v45 }
0x1b13   :  { %v1967_v1 = vsel %vm1964_vm7, %v1966_v48, %v1962_v28 }
0x1b14   :  { %v1979_v51 = vmul.f32 %v1977_v62, %v1967_v1  ;;  %v1986_v47 = vsub.f32 1.0, %v1967_v1  ;;  %v1992_v15 = vmul.f32 0.0, %v1967_v1 }
0x1b16   :  { %1981 = vrot.lane.b32.xlu0 %v1979_v51, %s3618_s30 }
0x1b88   :  { %v1982_v42 = vpop.permute.xlu0 %1981 }
0x1b89   :  { %v1984_v58 = vadd.f32 %v1982_v42, %v4350_v49 }
0x1b8b   :  { %3520 = vtanh.f32 %v1984_v58 }
0x1b91   :  { %v3521_v56 = vpop.eup %3520 }
0x1b92   :  { %1988 = vrot.lane.b32.xlu1 %v3521_v56, %s3639_s16 }
0x1c04   :  { %v1989_v35 = vpop.permute.xlu1 %1988 }
0x1c05   :  { %v1991_v6 = vmul.f32 %v1989_v35, %v1986_v47 }
0x1c07   :  { %v4356_v50 = vadd.f32 %v1992_v15, %v1991_v6 }
0x1c09   :  { %v1994_v41 = vpack.c.bf16 %v4356_v50, %v4356_v50  ;;  %v2057_v59 = vrot.slane %v4356_v50, 6 }
0x1c0b   :  { %1996 = vrot.lane.b32.xlu2 %v1994_v41, %s3639_s16 }
0x1c65   :  { %v1997_v57 = vpop.permute.xlu2 %1996 }
0x1c66   :  { %3287 = vmatmul.msk.bf16.vlgmr.msrb.gmra.mxu2 %vm149_vm1, %v1997_v57 }
0x1ce9   :  { %v2010_v60 = vpop.f32.mrf.mxu2 }
0x1cea   :  { %v2037_v61 = vadd.f32 %v2010_v60, %v4341_v43  ;;  %v2015_v0 = vrot.slane %v2010_v60, 6 }
0x1cec   :  { %v2039_v5 = vrot.slane %v2037_v61, 6  ;;  %v2017_v23 = vadd.f32 %v2015_v0, %v4350_v49 }
0x1cee   :  { %2040 = vrot.lane.b32.xlu0 %v2039_v5, %s3638_s11  ;;  %v3288_v53 = vmul.f32 -1.442695, %v2017_v23 }
0x1cf0   :  { %3522 = vpow2.f32 %v3288_v53 }
0x1cf1   :  { %v2012_v55 = vpop.f32.mrf.mxu2 }
0x1cf6   :  { %v3523_v13 = vpop.eup %3522 }
0x1cf7   :  { %v2021_v18 = vadd.f32 1.0, %v3523_v13 }
0x1cf9   :  { %3524 = vrcp.f32 %v2021_v18  ;;  %v2033_v8 = vand.u32 2147483648, %v2021_v18  ;;  %vm2027_vm9 = vweird.f32 %v2021_v18  ;;  %v2031_v7 = vand.u32 2147483647, %v2021_v18 }
0x1cfb   :  { %v2034_v2 = vor.u32 1.1754944e-38, %v2033_v8  ;;  %vm2032_vm12 = vcmp.eq.f32.partialorder %v2031_v7, 8.507059e+37 }
0x1cff   :  { %v3525_v52 = vpop.eup %3524 }
0x1d00   :  { %v2023_v10 = vmul.f32 %v3525_v52, %v2021_v18  ;;  %vm2028_vm8 = vweird.f32 %v3525_v52 }
0x1d01   :  { %vm2029_vm11 = vmor %vm2027_vm9, %vm2028_vm8 }
0x1d02   :  { %v2024_v14 = vsub.f32 1.0, %v2023_v10 }
0x1d04   :  { %v2025_v24 = vmul.f32 %v3525_v52, %v2024_v14 }
0x1d06   :  { %v2026_v36 = vadd.f32 %v3525_v52, %v2025_v24 }
0x1d08   :  { %v2030_v29 = vsel %vm2029_vm11, %v3525_v52, %v2026_v36  ;;  %v1928_v52 = vpop.f32.mrf.mxu0 }
0x1d09   :  { %v2035_v34 = vsel %vm2032_vm12, %v2034_v2, %v2030_v29 }
0x1d0a   :  { %v2050_v11 = vsub.f32 1.0, %v2035_v34  ;;  %v2059_v63 = vmul.f32 %v2057_v59, %v2035_v34 }
0x1d60   :  { %v2041_v19 = vpop.permute.xlu0 %2040 }
0x1d61   :  { %v2043_v16 = vmul.f32 %v2041_v19, %v2035_v34 }
0x1d63   :  { %2045 = vrot.lane.b32.xlu1 %v2043_v16, %s3618_s30 }
0x1dd5   :  { %v2046_v9 = vpop.permute.xlu1 %2045 }
0x1dd6   :  { %v2048_v54 = vadd.f32 %v2046_v9, %v4350_v49 }
0x1dd8   :  { %3526 = vtanh.f32 %v2048_v54 }
0x1dde   :  { %v3527_v32 = vpop.eup %3526 }
0x1ddf   :  { %2052 = vrot.lane.b32.xlu2 %v3527_v32, %s3639_s16 }
0x1e39   :  { %v2053_v12 = vpop.permute.xlu2 %2052 }
0x1e3a   :  { %v2055_v4 = vmul.f32 %v2053_v12, %v2050_v11 }
0x1e3c   :  { %v2060_v3 = vadd.f32 %v2059_v63, %v2055_v4 }
0x1e3e   :  { %v2061_v20 = vpack.c.bf16 %v2060_v3, %v2060_v3  ;;  %v2125_v57 = vrot.slane %v2060_v3, 6  ;;  %v2464_v0 = vsel %vm133_vm0, %v4356_v50, %v2060_v3 }
0x1e40   :  { %v2063_v22 = vrot.slane %v2061_v20, 1 }
0x1e42   :  { %2064 = vrot.lane.b32.xlu0 %v2063_v22, %s3639_s16 }
0x1eb4   :  { %v2065_v37 = vpop.permute.xlu0 %2064 }
0x1eb5   :  { %3289 = vmatmul.msk.bf16.vlgmr.msrb.gmra.mxu3 %vm149_vm1, %v2065_v37 }
0x1f38   :  { %v2078_v38 = vpop.f32.mrf.mxu3 }
0x1f39   :  { %v2105_v17 = vadd.f32 %v2078_v38, %v4341_v43  ;;  %v2083_v39 = vrot.slane %v2078_v38, 4 }
0x1f3b   :  { %v2107_v21 = vrot.slane %v2105_v17, 4  ;;  %v2085_v30 = vadd.f32 %v2083_v39, %v4350_v49 }
0x1f3d   :  { %2108 = vrot.lane.b32.xlu1 %v2107_v21, %s3638_s11  ;;  %v3290_v31 = vmul.f32 -1.442695, %v2085_v30 }
0x1f3f   :  { %3528 = vpow2.f32 %v3290_v31 }
0x1f40   :  { %v2080_v26 = vpop.f32.mrf.mxu3 }
0x1f45   :  { %v3529_v33 = vpop.eup %3528 }
0x1f46   :  { %v2089_v40 = vadd.f32 1.0, %v3529_v33 }
0x1f48   :  { %3530 = vrcp.f32 %v2089_v40  ;;  %v2101_v28 = vand.u32 2147483648, %v2089_v40  ;;  %vm2095_vm14 = vweird.f32 %v2089_v40  ;;  %v2099_v1 = vand.u32 2147483647, %v2089_v40 }
0x1f4a   :  { %v2102_v42 = vor.u32 1.1754944e-38, %v2101_v28  ;;  %vm2100_vm4 = vcmp.eq.f32.partialorder %v2099_v1, 8.507059e+37 }
0x1f4e   :  { %v3531_v27 = vpop.eup %3530 }
0x1f4f   :  { %v2091_v44 = vmul.f32 %v3531_v27, %v2089_v40  ;;  %vm2096_vm13 = vweird.f32 %v3531_v27 }
0x1f50   :  { %vm2097_vm15 = vmor %vm2095_vm14, %vm2096_vm13 }
0x1f51   :  { %v2092_v45 = vsub.f32 1.0, %v2091_v44 }
0x1f53   :  { %v2093_v48 = vmul.f32 %v3531_v27, %v2092_v45 }
0x1f55   :  { %v2094_v62 = vadd.f32 %v3531_v27, %v2093_v48  ;;  %v4396_v48 = vadd.f32 %v4347_v25, %v1928_v52 }
0x1f57   :  { %v2098_v51 = vsel %vm2097_vm15, %v3531_v27, %v2094_v62 }
0x1f58   :  { %v2103_v56 = vsel %vm2100_vm4, %v2102_v42, %v2098_v51 }
0x1f59   :  { %v2118_v41 = vsub.f32 1.0, %v2103_v56  ;;  %v2127_v61 = vmul.f32 %v2125_v57, %v2103_v56 }
0x1faf   :  { %v2109_v58 = vpop.permute.xlu1 %2108 }
0x1fb0   :  { %v2111_v47 = vmul.f32 %v2109_v58, %v2103_v56 }
0x1fb2   :  { %2113 = vrot.lane.b32.xlu2 %v2111_v47, %s3618_s30 }
0x200c   :  { %v2114_v35 = vpop.permute.xlu2 %2113 }
0x200d   :  { %v2116_v15 = vadd.f32 %v2114_v35, %v4350_v49 }
0x200f   :  { %3532 = vtanh.f32 %v2116_v15 }
0x2015   :  { %v3533_v6 = vpop.eup %3532 }
0x2016   :  { %2120 = vrot.lane.b32.xlu0 %v3533_v6, %s3639_s16 }
0x2088   :  { %v2121_v60 = vpop.permute.xlu0 %2120 }
0x2089   :  { %v2123_v5 = vmul.f32 %v2121_v60, %v2118_v41 }
0x208b   :  { %v2128_v55 = vadd.f32 %v2127_v61, %v2123_v5 }
0x208d   :  { %v2465_v23 = vsel %vm256_vm3, %v2464_v0, %v2128_v55  ;;  %v2129_v53 = vpack.c.bf16 %v2128_v55, %v2128_v55  ;;  %v2193_v63 = vrot.slane %v2128_v55, 6 }
0x208f   :  { %v2131_v13 = vrot.slane %v2129_v53, 2 }
0x2091   :  { %2132 = vrot.lane.b32.xlu1 %v2131_v13, %s3639_s16 }
0x2103   :  { %v2133_v18 = vpop.permute.xlu1 %2132 }
0x2104   :  { %3291 = vmatmul.msk.bf16.vlgmr.msrb.gmra.mxu0 %vm149_vm1, %v2133_v18 }
0x2181   :  { %v2146_v10 = vpop.f32.mrf.mxu0 }
0x2182   :  { %v2151_v14 = vrot.slane %v2146_v10, 2  ;;  %v2173_v24 = vadd.f32 %v2146_v10, %v4341_v43 }
0x2184   :  { %v2153_v36 = vadd.f32 %v2151_v14, %v4350_v49  ;;  %v2175_v8 = vrot.slane %v2173_v24, 2 }
0x2186   :  { %v3292_v7 = vmul.f32 -1.442695, %v2153_v36  ;;  %2176 = vrot.lane.b32.xlu2 %v2175_v8, %s3638_s11 }
0x2188   :  { %3534 = vpow2.f32 %v3292_v7 }
0x2189   :  { %v2148_v50 = vpop.f32.mrf.mxu0 }
0x218e   :  { %v3535_v29 = vpop.eup %3534 }
0x218f   :  { %v2157_v2 = vadd.f32 1.0, %v3535_v29 }
0x2191   :  { %3536 = vrcp.f32 %v2157_v2  ;;  %v2169_v9 = vand.u32 2147483648, %v2157_v2  ;;  %v2167_v32 = vand.u32 2147483647, %v2157_v2  ;;  %vm2163_vm5 = vweird.f32 %v2157_v2 }
0x2193   :  { %v2170_v59 = vor.u32 1.1754944e-38, %v2169_v9  ;;  %vm2168_vm7 = vcmp.eq.f32.partialorder %v2167_v32, 8.507059e+37 }
0x2197   :  { %v3537_v19 = vpop.eup %3536 }
0x2198   :  { %v2159_v34 = vmul.f32 %v3537_v19, %v2157_v2  ;;  %vm2164_vm10 = vweird.f32 %v3537_v19 }
0x2199   :  { %vm2165_vm6 = vmor %vm2163_vm5, %vm2164_vm10 }
0x219a   :  { %v2160_v16 = vsub.f32 1.0, %v2159_v34 }
0x219c   :  { %v2161_v54 = vmul.f32 %v3537_v19, %v2160_v16 }
0x219e   :  { %v2162_v11 = vadd.f32 %v3537_v19, %v2161_v54 }
0x21a0   :  { %v2166_v12 = vsel %vm2165_vm6, %v3537_v19, %v2162_v11 }
0x21a1   :  { %v2171_v4 = vsel %vm2168_vm7, %v2170_v59, %v2166_v12 }
0x21a2   :  { %v2195_v3 = vmul.f32 %v2193_v63, %v2171_v4  ;;  %v2186_v21 = vsub.f32 1.0, %v2171_v4 }
0x21e0   :  { %v2177_v20 = vpop.permute.xlu2 %2176 }
0x21e1   :  { %v2179_v22 = vmul.f32 %v2177_v20, %v2171_v4 }
0x21e3   :  { %2181 = vrot.lane.b32.xlu0 %v2179_v22, %s3618_s30 }
0x2255   :  { %v2182_v37 = vpop.permute.xlu0 %2181 }
0x2256   :  { %v2184_v38 = vadd.f32 %v2182_v37, %v4350_v49 }
0x2258   :  { %3538 = vtanh.f32 %v2184_v38 }
0x225e   :  { %v3539_v17 = vpop.eup %3538 }
0x225f   :  { %2188 = vrot.lane.b32.xlu1 %v3539_v17, %s3639_s16 }
0x22d1   :  { %v2189_v26 = vpop.permute.xlu1 %2188 }
0x22d2   :  { %v2191_v39 = vmul.f32 %v2189_v26, %v2186_v21 }
0x22d4   :  { %v2196_v30 = vadd.f32 %v2195_v3, %v2191_v39 }
0x22d6   :  { %v2197_v31 = vpack.c.bf16 %v2196_v30, %v2196_v30  ;;  %v4389_v33 = vsel %vm140_vm2, %v2465_v23, %v2196_v30  ;;  %v2257_v53 = vrot.slane %v2196_v30, 6 }
0x22d8   :  { %v2199_v40 = vrot.slane %v2197_v31, 3 }
0x22da   :  { %2200 = vrot.lane.b32.xlu2 %v2199_v40, %s3639_s16 }
0x2334   :  { %v2201_v27 = vpop.permute.xlu2 %2200 }
0x2335   :  { %3293 = vmatmul.msk.bf16.vlgmr.msrb.gmra.mxu1 %vm149_vm1, %v2201_v27 }
0x23b2   :  { %v2214_v44 = vpop.f32.mrf.mxu1 }
0x23b3   :  { %v2238_v49 = vadd.f32 %v2214_v44, %v4341_v43  ;;  %v2218_v62 = vadd.f32 %v2214_v44, %v4396_v48 }
0x23b5   :  { %2240 = vrot.lane.b32.xlu0 %v2238_v49, %s3638_s11  ;;  %v3294_v28 = vmul.f32 -1.442695, %v2218_v62 }
0x23b7   :  { %3540 = vpow2.f32 %v3294_v28 }
0x23ba   :  { %v2216_v45 = vpop.f32.mrf.mxu1 }
0x23bd   :  { %v3541_v1 = vpop.eup %3540 }
0x23be   :  { %v2222_v51 = vadd.f32 1.0, %v3541_v1 }
0x23c0   :  { %3542 = vrcp.f32 %v2222_v51  ;;  %v2234_v15 = vand.u32 2147483648, %v2222_v51  ;;  %vm2228_vm9 = vweird.f32 %v2222_v51  ;;  %v2232_v6 = vand.u32 2147483647, %v2222_v51 }
0x23c2   :  { %v2235_v25 = vor.u32 1.1754944e-38, %v2234_v15  ;;  %vm2233_vm12 = vcmp.eq.f32.partialorder %v2232_v6, 8.507059e+37 }
0x23c6   :  { %v3543_v42 = vpop.eup %3542 }
0x23c7   :  { %v2224_v58 = vmul.f32 %v3543_v42, %v2222_v51  ;;  %vm2229_vm8 = vweird.f32 %v3543_v42 }
0x23c8   :  { %vm2230_vm11 = vmor %vm2228_vm9, %vm2229_vm8 }
0x23c9   :  { %v2225_v56 = vsub.f32 1.0, %v2224_v58 }
0x23cb   :  { %v2226_v47 = vmul.f32 %v3543_v42, %v2225_v56 }
0x23cd   :  { %v2227_v35 = vadd.f32 %v3543_v42, %v2226_v47 }
0x23cf   :  { %v2231_v41 = vsel %vm2230_vm11, %v3543_v42, %v2227_v35 }
0x23d0   :  { %v2236_v60 = vsel %vm2233_vm12, %v2235_v25, %v2231_v41 }
0x23d1   :  { %v2250_v23 = vsub.f32 1.0, %v2236_v60  ;;  %v2259_v18 = vmul.f32 %v2257_v53, %v2236_v60 }
0x2427   :  { %v2241_v57 = vpop.permute.xlu0 %2240 }
0x2428   :  { %v2243_v61 = vmul.f32 %v2241_v57, %v2236_v60 }
0x242a   :  { %2245 = vrot.lane.b32.xlu1 %v2243_v61, %s3618_s30 }
0x249c   :  { %v2246_v5 = vpop.permute.xlu1 %2245 }
0x249d   :  { %v2248_v55 = vadd.f32 %v2246_v5, %v4396_v48 }
0x249f   :  { %3544 = vtanh.f32 %v2248_v55 }
0x24a5   :  { %v3545_v0 = vpop.eup %3544 }
0x24a6   :  { %2252 = vrot.lane.b32.xlu2 %v3545_v0, %s3639_s16 }
0x2500   :  { %v2253_v13 = vpop.permute.xlu2 %2252 }
0x2501   :  { %v2255_v52 = vmul.f32 %v2253_v13, %v2250_v23 }
0x2503   :  { %v4402_v10 = vadd.f32 %v2259_v18, %v2255_v52 }
0x2505   :  { %v2261_v14 = vpack.c.bf16 %v4402_v10, %v4402_v10  ;;  %v2324_v39 = vrot.slane %v4402_v10, 6 }
0x2507   :  { %2263 = vrot.lane.b32.xlu0 %v2261_v14, %s3639_s16 }
0x2579   :  { %v2264_v24 = vpop.permute.xlu0 %2263 }
0x257a   :  { %3295 = vmatmul.msk.bf16.vlgmr.msra.gmra.mxu2 %vm149_vm1, %v2264_v24 }
0x25fd   :  { %v2277_v36 = vpop.f32.mrf.mxu2 }
0x25fe   :  { %v2304_v8 = vadd.f32 %v2277_v36, %v4341_v43  ;;  %v2282_v29 = vrot.slane %v2277_v36, 6 }
0x2600   :  { %v2306_v7 = vrot.slane %v2304_v8, 6  ;;  %v2284_v2 = vadd.f32 %v2282_v29, %v4396_v48 }
0x2602   :  { %2307 = vrot.lane.b32.xlu1 %v2306_v7, %s3638_s11  ;;  %v3296_v19 = vmul.f32 -1.442695, %v2284_v2 }
0x2604   :  { %3546 = vpow2.f32 %v3296_v19 }
0x2605   :  { %v2279_v50 = vpop.f32.mrf.mxu2 }
0x260a   :  { %v3547_v34 = vpop.eup %3546 }
0x260b   :  { %v2288_v16 = vadd.f32 1.0, %v3547_v34 }
0x260d   :  { %3548 = vrcp.f32 %v2288_v16  ;;  %v2300_v12 = vand.u32 2147483648, %v2288_v16  ;;  %vm2294_vm14 = vweird.f32 %v2288_v16  ;;  %v2298_v63 = vand.u32 2147483647, %v2288_v16 }
0x260f   :  { %v2301_v3 = vor.u32 1.1754944e-38, %v2300_v12  ;;  %vm2299_vm4 = vcmp.eq.f32.partialorder %v2298_v63, 8.507059e+37 }
0x2613   :  { %v3549_v9 = vpop.eup %3548 }
0x2614   :  { %v2290_v54 = vmul.f32 %v3549_v9, %v2288_v16  ;;  %vm2295_vm13 = vweird.f32 %v3549_v9 }
0x2615   :  { %vm2296_vm15 = vmor %vm2294_vm14, %vm2295_vm13 }
0x2616   :  { %v2291_v32 = vsub.f32 1.0, %v2290_v54 }
0x2618   :  { %v2292_v11 = vmul.f32 %v3549_v9, %v2291_v32 }
0x261a   :  { %v2293_v59 = vadd.f32 %v3549_v9, %v2292_v11 }
0x261c   :  { %v2297_v4 = vsel %vm2296_vm15, %v3549_v9, %v2293_v59 }
0x261d   :  { %v2302_v22 = vsel %vm2299_vm4, %v2301_v3, %v2297_v4 }
0x261e   :  { %v2317_v26 = vsub.f32 1.0, %v2302_v22  ;;  %v2326_v31 = vmul.f32 %v2324_v39, %v2302_v22 }
0x2674   :  { %v2308_v20 = vpop.permute.xlu1 %2307 }
0x2675   :  { %v2310_v37 = vmul.f32 %v2308_v20, %v2302_v22 }
0x2677   :  { %2312 = vrot.lane.b32.xlu2 %v2310_v37, %s3618_s30 }
0x26d1   :  { %v2313_v38 = vpop.permute.xlu2 %2312 }
0x26d2   :  { %v2315_v17 = vadd.f32 %v2313_v38, %v4396_v48 }
0x26d4   :  { %3550 = vtanh.f32 %v2315_v17 }
0x26da   :  { %v3551_v21 = vpop.eup %3550 }
0x26db   :  { %2319 = vrot.lane.b32.xlu0 %v3551_v21, %s3639_s16 }
0x274d   :  { %v2320_v30 = vpop.permute.xlu0 %2319 }
0x274e   :  { %v2322_v40 = vmul.f32 %v2320_v30, %v2317_v26 }
0x2750   :  { %v2327_v27 = vadd.f32 %v2326_v31, %v2322_v40 }
0x2752   :  { %v2328_v44 = vpack.c.bf16 %v2327_v27, %v2327_v27  ;;  %v2392_v0 = vrot.slane %v2327_v27, 6  ;;  %v2467_v29 = vsel %vm133_vm0, %v4402_v10, %v2327_v27 }
0x2754   :  { %v2330_v49 = vrot.slane %v2328_v44, 1 }
0x2756   :  { %2331 = vrot.lane.b32.xlu1 %v2330_v49, %s3639_s16  ;;  %v2472_v49 = vld [vmem:[%s3078_s24] sm:$0x3] }
0x27c8   :  { %v2332_v45 = vpop.permute.xlu1 %2331 }
0x27c9   :  { %3297 = vmatmul.msk.bf16.vlgmr.msra.gmra.mxu3 %vm149_vm1, %v2332_v45  ;;  %v3418_v45 = vld [vmem:[%s3079_s20] ss:$0 sm:$0xff] }
0x284c   :  { %v2345_v62 = vpop.f32.mrf.mxu3 }
0x284d   :  { %v2350_v28 = vrot.slane %v2345_v62, 4  ;;  %v2372_v1 = vadd.f32 %v2345_v62, %v4341_v43  ;;  %v2470_v62 = vld [vmem:[%s3076_s28] sm:$0x3] }
0x284f   :  { %v2352_v51 = vadd.f32 %v2350_v28, %v4396_v48  ;;  %v2374_v42 = vrot.slane %v2372_v1, 4  ;;  %v2502_v28 = vsel %vm133_vm0, %v2472_v49, 0 }
0x2850   :  { %2511 = vmatpush.bf16.msrb.mxu2 %v2502_v28  ;;  %2576 = vmatpush.bf16.msrb.mxu3 %v2502_v28 }
0x2851   :  { %v3298_v58 = vmul.f32 -1.442695, %v2352_v51  ;;  %2375 = vrot.lane.b32.xlu2 %v2374_v42, %s3638_s11  ;;  %2644 = vmatpush.bf16.msrb.mxu0 %v2502_v28 }
0x2853   :  { %3552 = vpow2.f32 %v3298_v58  ;;  %2512 = vmatmul.bf16.vlgmr.msrb.gmra.mxu2 %v3626_v46 }
0x2854   :  { %v2347_v56 = vpop.f32.mrf.mxu3  ;;  %2843 = vmatpush.bf16.msra.mxu3 %v2502_v28  ;;  %2780 = vmatpush.bf16.msra.mxu2 %v2502_v28 }
0x2859   :  { %v3553_v47 = vpop.eup %3552 }
0x285a   :  { %v2356_v35 = vadd.f32 1.0, %v3553_v47 }
0x285c   :  { %3554 = vrcp.f32 %v2356_v35  ;;  %v2368_v25 = vand.u32 2147483648, %v2356_v35  ;;  %v2366_v60 = vand.u32 2147483647, %v2356_v35  ;;  %vm2362_vm5 = vweird.f32 %v2356_v35 }
0x285e   :  { %v2369_v5 = vor.u32 1.1754944e-38, %v2368_v25  ;;  %vm2367_vm7 = vcmp.eq.f32.partialorder %v2366_v60, 8.507059e+37  ;;  %v4467_v60 = vld [vmem:[%s3077_s3] ss:$0 sm:$0xff] }
0x2862   :  { %v3555_v15 = vpop.eup %3554 }
0x2863   :  { %v2358_v6 = vmul.f32 %v3555_v15, %v2356_v35  ;;  %vm2363_vm10 = vweird.f32 %v3555_v15 }
0x2864   :  { %vm2364_vm6 = vmor %vm2362_vm5, %vm2363_vm10 }
0x2865   :  { %v2359_v41 = vsub.f32 1.0, %v2358_v6 }
0x2867   :  { %v2360_v57 = vmul.f32 %v3555_v15, %v2359_v41 }
0x2869   :  { %v2361_v61 = vadd.f32 %v3555_v15, %v2360_v57 }
0x286b   :  { %v2365_v55 = vsel %vm2364_vm6, %v3555_v15, %v2361_v61 }
0x286c   :  { %v2370_v23 = vsel %vm2367_vm7, %v2369_v5, %v2365_v55 }
0x286d   :  { %v2394_v53 = vmul.f32 %v2392_v0, %v2370_v23  ;;  %v2385_v36 = vsub.f32 1.0, %v2370_v23 }
0x28ab   :  { %v2376_v13 = vpop.permute.xlu2 %2375 }
0x28ac   :  { %v2378_v18 = vmul.f32 %v2376_v13, %v2370_v23 }
0x28ae   :  { %2380 = vrot.lane.b32.xlu0 %v2378_v18, %s3618_s30 }
0x28d6   :  { %v2513_v6 = vpop.f32.mrf.mxu2 }
0x28de   :  { %v2515_v25 = vpop.f32.mrf.mxu2 }
0x2920   :  { %v2381_v52 = vpop.permute.xlu0 %2380 }
0x2921   :  { %v2383_v14 = vadd.f32 %v2381_v52, %v4396_v48 }
0x2923   :  { %3556 = vtanh.f32 %v2383_v14 }
0x2929   :  { %v3557_v24 = vpop.eup %3556 }
0x292a   :  { %2387 = vrot.lane.b32.xlu1 %v3557_v24, %s3639_s16 }
0x299c   :  { %v2388_v8 = vpop.permute.xlu1 %2387 }
0x299d   :  { %v2390_v7 = vmul.f32 %v2388_v8, %v2385_v36 }
0x299f   :  { %v4423_v50 = vadd.f32 %v2394_v53, %v2390_v7 }
0x29a1   :  { %v4429_v2 = vsel %vm256_vm3, %v2467_v29, %v4423_v50  ;;  %v2396_v19 = vpack.c.bf16 %v4423_v50, %v4423_v50  ;;  %v2460_v51 = vrot.slane %v4423_v50, 6 }
0x29a3   :  { %v2398_v34 = vrot.slane %v2396_v19, 2 }
0x29a5   :  { %2399 = vrot.lane.b32.xlu2 %v2398_v34, %s3639_s16 }
0x29ff   :  { %v2400_v16 = vpop.permute.xlu2 %2399 }
0x2a00   :  { %3299 = vmatmul.msk.bf16.vlgmr.msra.gmra.mxu0 %vm149_vm1, %v2400_v16 }
0x2a01   :  { %2911 = vmatpush.bf16.msra.mxu0 %v2502_v28 }
0x2a7d   :  { %v2413_v9 = vpop.f32.mrf.mxu0 }
0x2a7e   :  { %v2440_v54 = vadd.f32 %v2413_v9, %v4341_v43  ;;  %v2418_v11 = vrot.slane %v2413_v9, 2 }
0x2a80   :  { %v2442_v32 = vrot.slane %v2440_v54, 2  ;;  %v2420_v59 = vadd.f32 %v2418_v11, %v4396_v48 }
0x2a82   :  { %2443 = vrot.lane.b32.xlu0 %v2442_v32, %s3638_s11  ;;  %v3300_v12 = vmul.f32 -1.442695, %v2420_v59 }
0x2a84   :  { %3558 = vpow2.f32 %v3300_v12 }
0x2a85   :  { %v2415_v10 = vpop.f32.mrf.mxu0 }
0x2a8a   :  { %v3559_v63 = vpop.eup %3558 }
0x2a8b   :  { %v2424_v4 = vadd.f32 1.0, %v3559_v63 }
0x2a8d   :  { %3560 = vrcp.f32 %v2424_v4  ;;  %v2436_v17 = vand.u32 2147483648, %v2424_v4  ;;  %vm2430_vm9 = vweird.f32 %v2424_v4  ;;  %v2434_v43 = vand.u32 2147483647, %v2424_v4 }
0x2a8f   :  { %v2437_v26 = vor.u32 1.1754944e-38, %v2436_v17  ;;  %vm2435_vm12 = vcmp.eq.f32.partialorder %v2434_v43, 8.507059e+37 }
0x2a93   :  { %v3561_v3 = vpop.eup %3560 }
0x2a94   :  { %v2426_v20 = vmul.f32 %v3561_v3, %v2424_v4  ;;  %vm2431_vm8 = vweird.f32 %v3561_v3 }
0x2a95   :  { %vm2432_vm11 = vmor %vm2430_vm9, %vm2431_vm8 }
0x2a96   :  { %v2427_v22 = vsub.f32 1.0, %v2426_v20 }
0x2a98   :  { %v2428_v37 = vmul.f32 %v3561_v3, %v2427_v22 }
0x2a9a   :  { %v2429_v38 = vadd.f32 %v3561_v3, %v2428_v37 }
0x2a9c   :  { %v2433_v21 = vsel %vm2432_vm11, %v3561_v3, %v2429_v38 }
0x2a9d   :  { %v2438_v30 = vsel %vm2435_vm12, %v2437_v26, %v2433_v21 }
0x2a9e   :  { %v2453_v1 = vsub.f32 1.0, %v2438_v30  ;;  %v2462_v58 = vmul.f32 %v2460_v51, %v2438_v30 }
0x2af4   :  { %v2444_v39 = vpop.permute.xlu0 %2443 }
0x2af5   :  { %v2446_v31 = vmul.f32 %v2444_v39, %v2438_v30 }
0x2af7   :  { %2448 = vrot.lane.b32.xlu1 %v2446_v31, %s3618_s30 }
0x2aff   :  { %2539 = vrot.lane.b32.xlu1 %v3418_v45, %s3618_s30 }
0x2b69   :  { %v2449_v40 = vpop.permute.xlu1 %2448 }
0x2b6a   :  { %v2451_v27 = vadd.f32 %v2449_v40, %v4396_v48  ;;  %v2485_v48 = vsel %vm133_vm0, %v2470_v62, 0 }
0x2b6b   :  { %2494 = vmatpush.bf16.msra.mxu1 %v2485_v48 }
0x2b6c   :  { %3562 = vtanh.f32 %v2451_v27 }
0x2b6f   :  { %2712 = vmatpush.bf16.msrb.mxu1 %v2502_v28 }
0x2b71   :  { %v4462_v15 = vpop.permute.xlu1 %2539 }
0x2b72   :  { %v3563_v44 = vpop.eup %3562  ;;  %v2542_v41 = vadd.f32 %v4462_v15, %v2513_v6 }
0x2b73   :  { %2455 = vrot.lane.b32.xlu2 %v3563_v44, %s3639_s16 }
0x2b7b   :  { %2544 = vrot.lane.b32.xlu2 %v2542_v41, %s3638_s11 }
0x2bcd   :  { %v2456_v42 = vpop.permute.xlu2 %2455 }
0x2bce   :  { %v2458_v56 = vmul.f32 %v2456_v42, %v2453_v1 }
0x2bd0   :  { %v2463_v47 = vadd.f32 %v2462_v58, %v2458_v56 }
0x2bd2   :  { %v2469_v35 = vsel %vm140_vm2, %v4429_v2, %v2463_v47 }
0x2bd3   :  { %v2474_v46 = vpack.c.bf16 %v2469_v35, %v4389_v33 }
0x2bd5   :  { %2479 = vrot.lane.b32.xlu0 %v2474_v46, %s3639_s16  ;;  %v2545_v8 = vpop.permute.xlu2 %2544 }
0x2c47   :  { %v2480_v57 = vpop.permute.xlu0 %2479 }
0x2c48   :  { %3301 = vmatmul.msk.bf16.vlgmr.msra.gmra.mxu1 %vm149_vm1, %v2480_v57 }
0x2c49   :  { %2979 = vmatpush.bf16.msra.mxu1 %v2502_v28 }
0x2cc5   :  { %v2496_v61 = vpop.f32.mrf.mxu1 }
0x2cc6   :  { %v4470_v5 = vadd.f32 %v4467_v60, %v2496_v61 }
0x2cc8   :  { %v2517_v33 = vadd.f32 %v2513_v6, %v4470_v5 }
0x2cca   :  { %v3302_v55 = vmul.f32 -1.442695, %v2517_v33 }
0x2ccc   :  { %3564 = vpow2.f32 %v3302_v55 }
0x2cd2   :  { %v3565_v0 = vpop.eup %3564 }
0x2cd3   :  { %v2521_v23 = vadd.f32 1.0, %v3565_v0 }
0x2cd5   :  { %3566 = vrcp.f32 %v2521_v23  ;;  %v2533_v52 = vand.u32 2147483648, %v2521_v23  ;;  %v2531_v24 = vand.u32 2147483647, %v2521_v23  ;;  %vm2527_vm14 = vweird.f32 %v2521_v23 }
0x2cd7   :  { %v2534_v7 = vor.u32 1.1754944e-38, %v2533_v52  ;;  %vm2532_vm4 = vcmp.eq.f32.partialorder %v2531_v24, 8.507059e+37 }
0x2cdb   :  { %v3567_v53 = vpop.eup %3566 }
0x2cdc   :  { %v2523_v13 = vmul.f32 %v3567_v53, %v2521_v23  ;;  %vm2528_vm13 = vweird.f32 %v3567_v53 }
0x2cdd   :  { %vm2529_vm15 = vmor %vm2527_vm14, %vm2528_vm13 }
0x2cde   :  { %v2524_v18 = vsub.f32 1.0, %v2523_v13 }
0x2ce0   :  { %v2525_v14 = vmul.f32 %v3567_v53, %v2524_v18 }
0x2ce2   :  { %v2526_v36 = vadd.f32 %v3567_v53, %v2525_v14 }
0x2ce4   :  { %v2530_v50 = vsel %vm2529_vm15, %v3567_v53, %v2526_v36 }
0x2ce5   :  { %v2535_v29 = vsel %vm2532_vm4, %v2534_v7, %v2530_v50 }
0x2ce6   :  { %v2547_v2 = vmul.f32 %v2545_v8, %v2535_v29  ;;  %v2554_v9 = vsub.f32 1.0, %v2535_v29  ;;  %v2560_v32 = vmul.f32 0.0, %v2535_v29 }
0x2ce8   :  { %2549 = vrot.lane.b32.xlu0 %v2547_v2, %s3618_s30 }
0x2d5a   :  { %v2550_v19 = vpop.permute.xlu0 %2549 }
0x2d5b   :  { %v2552_v34 = vadd.f32 %v2550_v19, %v4470_v5 }
0x2d5d   :  { %3568 = vtanh.f32 %v2552_v34 }
0x2d63   :  { %v3569_v16 = vpop.eup %3568 }
0x2d64   :  { %2556 = vrot.lane.b32.xlu1 %v3569_v16, %s3639_s16 }
0x2dd6   :  { %v2557_v54 = vpop.permute.xlu1 %2556 }
0x2dd7   :  { %v2559_v10 = vmul.f32 %v2557_v54, %v2554_v9 }
0x2dd9   :  { %v4476_v11 = vadd.f32 %v2560_v32, %v2559_v10 }
0x2ddb   :  { %v2562_v59 = vpack.c.bf16 %v4476_v11, %v4476_v11  ;;  %v2625_v58 = vrot.slane %v4476_v11, 6 }
0x2ddd   :  { %2564 = vrot.lane.b32.xlu2 %v2562_v59, %s3639_s16 }
0x2e37   :  { %v2565_v12 = vpop.permute.xlu2 %2564 }
0x2e38   :  { %3303 = vmatmul.msk.bf16.vlgmr.msrb.gmra.mxu3 %vm149_vm1, %v2565_v12 }
0x2ebb   :  { %v2578_v63 = vpop.f32.mrf.mxu3 }
0x2ebc   :  { %v2605_v4 = vadd.f32 %v2578_v63, %v4462_v15  ;;  %v2583_v22 = vrot.slane %v2578_v63, 6 }
0x2ebe   :  { %v2607_v3 = vrot.slane %v2605_v4, 6  ;;  %v2585_v37 = vadd.f32 %v2583_v22, %v4470_v5 }
0x2ec0   :  { %2608 = vrot.lane.b32.xlu0 %v2607_v3, %s3638_s11  ;;  %v3304_v38 = vmul.f32 -1.442695, %v2585_v37 }
0x2ec2   :  { %3570 = vpow2.f32 %v3304_v38 }
0x2ec3   :  { %v2580_v20 = vpop.f32.mrf.mxu3 }
0x2ec8   :  { %v3571_v17 = vpop.eup %3570 }
0x2ec9   :  { %v2589_v43 = vadd.f32 1.0, %v3571_v17 }
0x2ecb   :  { %3572 = vrcp.f32 %v2589_v43  ;;  %v2601_v40 = vand.u32 2147483648, %v2589_v43  ;;  %vm2595_vm5 = vweird.f32 %v2589_v43  ;;  %v2599_v27 = vand.u32 2147483647, %v2589_v43 }
0x2ecd   :  { %v2602_v49 = vor.u32 1.1754944e-38, %v2601_v40  ;;  %vm2600_vm7 = vcmp.eq.f32.partialorder %v2599_v27, 8.507059e+37 }
0x2ed1   :  { %v3573_v21 = vpop.eup %3572 }
0x2ed2   :  { %v2591_v26 = vmul.f32 %v3573_v21, %v2589_v43  ;;  %vm2596_vm10 = vweird.f32 %v3573_v21  ;;  %v2498_v43 = vpop.f32.mrf.mxu1 }
0x2ed3   :  { %vm2597_vm6 = vmor %vm2595_vm5, %vm2596_vm10 }
0x2ed4   :  { %v2592_v39 = vsub.f32 1.0, %v2591_v26 }
0x2ed6   :  { %v2593_v30 = vmul.f32 %v3573_v21, %v2592_v39 }
0x2ed8   :  { %v2594_v31 = vadd.f32 %v3573_v21, %v2593_v30 }
0x2eda   :  { %v2598_v44 = vsel %vm2597_vm6, %v3573_v21, %v2594_v31 }
0x2edb   :  { %v2603_v62 = vsel %vm2600_vm7, %v2602_v49, %v2598_v44 }
0x2edc   :  { %v2618_v42 = vsub.f32 1.0, %v2603_v62  ;;  %v2627_v47 = vmul.f32 %v2625_v58, %v2603_v62 }
0x2f32   :  { %v2609_v45 = vpop.permute.xlu0 %2608 }
0x2f33   :  { %v2611_v28 = vmul.f32 %v2609_v45, %v2603_v62 }
0x2f35   :  { %2613 = vrot.lane.b32.xlu1 %v2611_v28, %s3618_s30 }
0x2fa7   :  { %v2614_v48 = vpop.permute.xlu1 %2613 }
0x2fa8   :  { %v2616_v1 = vadd.f32 %v2614_v48, %v4470_v5 }
0x2faa   :  { %3574 = vtanh.f32 %v2616_v1 }
0x2fb0   :  { %v3575_v51 = vpop.eup %3574 }
0x2fb1   :  { %2620 = vrot.lane.b32.xlu2 %v3575_v51, %s3639_s16 }
0x300b   :  { %v2621_v56 = vpop.permute.xlu2 %2620 }
0x300c   :  { %v2623_v35 = vmul.f32 %v2621_v56, %v2618_v42 }
0x300e   :  { %v2628_v46 = vadd.f32 %v2627_v47, %v2623_v35 }
0x3010   :  { %v2629_v6 = vpack.c.bf16 %v2628_v46, %v2628_v46  ;;  %v2693_v59 = vrot.slane %v2628_v46, 6  ;;  %v3032_v20 = vsel %vm133_vm0, %v4476_v11, %v2628_v46 }
0x3012   :  { %v2631_v41 = vrot.slane %v2629_v6, 1 }
0x3014   :  { %2632 = vrot.lane.b32.xlu0 %v2631_v41, %s3639_s16 }
0x3086   :  { %v2633_v25 = vpop.permute.xlu0 %2632 }
0x3087   :  { %3305 = vmatmul.msk.bf16.vlgmr.msrb.gmra.mxu0 %vm149_vm1, %v2633_v25 }
0x3104   :  { %v2646_v57 = vpop.f32.mrf.mxu0 }
0x3105   :  { %v2673_v61 = vadd.f32 %v2646_v57, %v4462_v15  ;;  %v2651_v0 = vrot.slane %v2646_v57, 4 }
0x3107   :  { %v2675_v33 = vrot.slane %v2673_v61, 4  ;;  %v2653_v23 = vadd.f32 %v2651_v0, %v4470_v5 }
0x3109   :  { %2676 = vrot.lane.b32.xlu1 %v2675_v33, %s3638_s11  ;;  %v3306_v53 = vmul.f32 -1.442695, %v2653_v23 }
0x310b   :  { %3576 = vpow2.f32 %v3306_v53 }
0x310c   :  { %v2648_v55 = vpop.f32.mrf.mxu0 }
0x3111   :  { %v3577_v13 = vpop.eup %3576 }
0x3112   :  { %v2657_v18 = vadd.f32 1.0, %v3577_v13 }
0x3114   :  { %3578 = vrcp.f32 %v2657_v18  ;;  %v2669_v7 = vand.u32 2147483648, %v2657_v18  ;;  %vm2663_vm9 = vweird.f32 %v2657_v18  ;;  %v2667_v50 = vand.u32 2147483647, %v2657_v18 }
0x3116   :  { %v2670_v2 = vor.u32 1.1754944e-38, %v2669_v7  ;;  %vm2668_vm12 = vcmp.eq.f32.partialorder %v2667_v50, 8.507059e+37 }
0x311a   :  { %v3579_v52 = vpop.eup %3578 }
0x311b   :  { %v2659_v14 = vmul.f32 %v3579_v52, %v2657_v18  ;;  %vm2664_vm8 = vweird.f32 %v3579_v52 }
0x311c   :  { %vm2665_vm11 = vmor %vm2663_vm9, %vm2664_vm8 }
0x311d   :  { %v2660_v24 = vsub.f32 1.0, %v2659_v14 }
0x311f   :  { %v2661_v36 = vmul.f32 %v3579_v52, %v2660_v24  ;;  %v4516_v24 = vadd.f32 %v4467_v60, %v2498_v43 }
0x3121   :  { %v2662_v8 = vadd.f32 %v3579_v52, %v2661_v36 }
0x3123   :  { %v2666_v29 = vsel %vm2665_vm11, %v3579_v52, %v2662_v8 }
0x3124   :  { %v2671_v34 = vsel %vm2668_vm12, %v2670_v2, %v2666_v29 }
0x3125   :  { %v2686_v10 = vsub.f32 1.0, %v2671_v34  ;;  %v2695_v63 = vmul.f32 %v2693_v59, %v2671_v34 }
0x317b   :  { %v2677_v19 = vpop.permute.xlu1 %2676 }
0x317c   :  { %v2679_v16 = vmul.f32 %v2677_v19, %v2671_v34 }
0x317e   :  { %2681 = vrot.lane.b32.xlu2 %v2679_v16, %s3618_s30 }
0x31d8   :  { %v2682_v9 = vpop.permute.xlu2 %2681 }
0x31d9   :  { %v2684_v54 = vadd.f32 %v2682_v9, %v4470_v5 }
0x31db   :  { %3580 = vtanh.f32 %v2684_v54 }
0x31e1   :  { %v3581_v32 = vpop.eup %3580 }
0x31e2   :  { %2688 = vrot.lane.b32.xlu0 %v3581_v32, %s3639_s16 }
0x3254   :  { %v2689_v12 = vpop.permute.xlu0 %2688 }
0x3255   :  { %v2691_v4 = vmul.f32 %v2689_v12, %v2686_v10 }
0x3257   :  { %v2696_v3 = vadd.f32 %v2695_v63, %v2691_v4 }
0x3259   :  { %v2697_v22 = vpack.c.bf16 %v2696_v3, %v2696_v3  ;;  %v3033_v37 = vsel %vm256_vm3, %v3032_v20, %v2696_v3  ;;  %v2761_v56 = vrot.slane %v2696_v3, 6 }
0x325b   :  { %v2699_v38 = vrot.slane %v2697_v22, 2 }
0x325d   :  { %2700 = vrot.lane.b32.xlu1 %v2699_v38, %s3639_s16 }
0x32cf   :  { %v2701_v17 = vpop.permute.xlu1 %2700 }
0x32d0   :  { %3307 = vmatmul.msk.bf16.vlgmr.msrb.gmra.mxu1 %vm149_vm1, %v2701_v17 }
0x334d   :  { %v2714_v21 = vpop.f32.mrf.mxu1 }
0x334e   :  { %v2719_v26 = vrot.slane %v2714_v21, 2  ;;  %v2741_v39 = vadd.f32 %v2714_v21, %v4462_v15 }
0x3350   :  { %v2721_v30 = vadd.f32 %v2719_v26, %v4470_v5  ;;  %v2743_v31 = vrot.slane %v2741_v39, 2 }
0x3352   :  { %v3308_v40 = vmul.f32 -1.442695, %v2721_v30  ;;  %2744 = vrot.lane.b32.xlu2 %v2743_v31, %s3638_s11 }
0x3354   :  { %3582 = vpow2.f32 %v3308_v40 }
0x3355   :  { %v2716_v11 = vpop.f32.mrf.mxu1 }
0x335a   :  { %v3583_v27 = vpop.eup %3582 }
0x335b   :  { %v2725_v44 = vadd.f32 1.0, %v3583_v27 }
0x335d   :  { %3584 = vrcp.f32 %v2725_v44  ;;  %v2737_v28 = vand.u32 2147483648, %v2725_v44  ;;  %v2735_v1 = vand.u32 2147483647, %v2725_v44  ;;  %vm2731_vm14 = vweird.f32 %v2725_v44 }
0x335f   :  { %v2738_v42 = vor.u32 1.1754944e-38, %v2737_v28  ;;  %vm2736_vm4 = vcmp.eq.f32.partialorder %v2735_v1, 8.507059e+37 }
0x3363   :  { %v3585_v49 = vpop.eup %3584 }
0x3364   :  { %v2727_v45 = vmul.f32 %v3585_v49, %v2725_v44  ;;  %vm2732_vm13 = vweird.f32 %v3585_v49 }
0x3365   :  { %vm2733_vm15 = vmor %vm2731_vm14, %vm2732_vm13 }
0x3366   :  { %v2728_v62 = vsub.f32 1.0, %v2727_v45 }
0x3368   :  { %v2729_v48 = vmul.f32 %v3585_v49, %v2728_v62 }
0x336a   :  { %v2730_v51 = vadd.f32 %v3585_v49, %v2729_v48 }
0x336c   :  { %v2734_v58 = vsel %vm2733_vm15, %v3585_v49, %v2730_v51 }
0x336d   :  { %v2739_v47 = vsel %vm2736_vm4, %v2738_v42, %v2734_v58 }
0x336e   :  { %v2763_v35 = vmul.f32 %v2761_v56, %v2739_v47  ;;  %v2754_v61 = vsub.f32 1.0, %v2739_v47 }
0x33ac   :  { %v2745_v46 = vpop.permute.xlu2 %2744 }
0x33ad   :  { %v2747_v6 = vmul.f32 %v2745_v46, %v2739_v47 }
0x33af   :  { %2749 = vrot.lane.b32.xlu0 %v2747_v6, %s3618_s30 }
0x3421   :  { %v2750_v41 = vpop.permute.xlu0 %2749 }
0x3422   :  { %v2752_v25 = vadd.f32 %v2750_v41, %v4470_v5 }
0x3424   :  { %3586 = vtanh.f32 %v2752_v25 }
0x342a   :  { %v3587_v57 = vpop.eup %3586 }
0x342b   :  { %2756 = vrot.lane.b32.xlu1 %v3587_v57, %s3639_s16 }
0x349d   :  { %v2757_v33 = vpop.permute.xlu1 %2756 }
0x349e   :  { %v2759_v55 = vmul.f32 %v2757_v33, %v2754_v61 }
0x34a0   :  { %v2764_v0 = vadd.f32 %v2763_v35, %v2759_v55 }
0x34a2   :  { %v2765_v23 = vpack.c.bf16 %v2764_v0, %v2764_v0  ;;  %v4509_v53 = vsel %vm140_vm2, %v3033_v37, %v2764_v0  ;;  %v2825_v22 = vrot.slane %v2764_v0, 6 }
0x34a4   :  { %v2767_v13 = vrot.slane %v2765_v23, 3 }
0x34a6   :  { %2768 = vrot.lane.b32.xlu2 %v2767_v13, %s3639_s16 }
0x3500   :  { %v2769_v18 = vpop.permute.xlu2 %2768 }
0x3501   :  { %3309 = vmatmul.msk.bf16.vlgmr.msra.gmra.mxu2 %vm149_vm1, %v2769_v18 }
0x3584   :  { %v2782_v52 = vpop.f32.mrf.mxu2 }
0x3585   :  { %v2806_v5 = vadd.f32 %v2782_v52, %v4462_v15  ;;  %v2786_v36 = vadd.f32 %v2782_v52, %v4516_v24 }
0x3587   :  { %2808 = vrot.lane.b32.xlu0 %v2806_v5, %s3638_s11  ;;  %v3310_v8 = vmul.f32 -1.442695, %v2786_v36 }
0x3589   :  { %3588 = vpow2.f32 %v3310_v8 }
0x358c   :  { %v2784_v14 = vpop.f32.mrf.mxu2 }
0x358f   :  { %v3589_v7 = vpop.eup %3588 }
0x3590   :  { %v2790_v50 = vadd.f32 1.0, %v3589_v7 }
0x3592   :  { %3590 = vrcp.f32 %v2790_v50  ;;  %v2802_v9 = vand.u32 2147483648, %v2790_v50  ;;  %vm2796_vm5 = vweird.f32 %v2790_v50  ;;  %v2800_v54 = vand.u32 2147483647, %v2790_v50 }
0x3594   :  { %v2803_v60 = vor.u32 1.1754944e-38, %v2802_v9  ;;  %vm2801_vm7 = vcmp.eq.f32.partialorder %v2800_v54, 8.507059e+37 }
0x3598   :  { %v3591_v29 = vpop.eup %3590 }
0x3599   :  { %v2792_v2 = vmul.f32 %v3591_v29, %v2790_v50  ;;  %vm2797_vm10 = vweird.f32 %v3591_v29 }
0x359a   :  { %vm2798_vm6 = vmor %vm2796_vm5, %vm2797_vm10 }
0x359b   :  { %v2793_v19 = vsub.f32 1.0, %v2792_v2 }
0x359d   :  { %v2794_v34 = vmul.f32 %v3591_v29, %v2793_v19 }
0x359f   :  { %v2795_v16 = vadd.f32 %v3591_v29, %v2794_v34 }
0x35a1   :  { %v2799_v32 = vsel %vm2798_vm6, %v3591_v29, %v2795_v16 }
0x35a2   :  { %v2804_v59 = vsel %vm2801_vm7, %v2803_v60, %v2799_v32 }
0x35a3   :  { %v2818_v20 = vsub.f32 1.0, %v2804_v59  ;;  %v2827_v38 = vmul.f32 %v2825_v22, %v2804_v59 }
0x35f9   :  { %v2809_v10 = vpop.permute.xlu0 %2808 }
0x35fa   :  { %v2811_v12 = vmul.f32 %v2809_v10, %v2804_v59 }
0x35fc   :  { %2813 = vrot.lane.b32.xlu1 %v2811_v12, %s3618_s30 }
0x366e   :  { %v2814_v63 = vpop.permute.xlu1 %2813 }
0x366f   :  { %v2816_v4 = vadd.f32 %v2814_v63, %v4516_v24 }
0x3671   :  { %3592 = vtanh.f32 %v2816_v4 }
0x3677   :  { %v3593_v3 = vpop.eup %3592 }
0x3678   :  { %2820 = vrot.lane.b32.xlu2 %v3593_v3, %s3639_s16 }
0x36d2   :  { %v2821_v37 = vpop.permute.xlu2 %2820 }
0x36d3   :  { %v2823_v17 = vmul.f32 %v2821_v37, %v2818_v20 }
0x36d5   :  { %v4522_v43 = vadd.f32 %v2827_v38, %v2823_v17 }
0x36d7   :  { %v2829_v21 = vpack.c.bf16 %v4522_v43, %v4522_v43  ;;  %v2892_v33 = vrot.slane %v4522_v43, 6 }
0x36d9   :  { %2831 = vrot.lane.b32.xlu0 %v2829_v21, %s3639_s16 }
0x374b   :  { %v2832_v26 = vpop.permute.xlu0 %2831 }
0x374c   :  { %3311 = vmatmul.msk.bf16.vlgmr.msra.gmra.mxu3 %vm149_vm1, %v2832_v26 }
0x37cf   :  { %v2845_v39 = vpop.f32.mrf.mxu3 }
0x37d0   :  { %v2872_v30 = vadd.f32 %v2845_v39, %v4462_v15  ;;  %v2850_v11 = vrot.slane %v2845_v39, 6 }
0x37d2   :  { %v2874_v31 = vrot.slane %v2872_v30, 6  ;;  %v2852_v27 = vadd.f32 %v2850_v11, %v4516_v24 }
0x37d4   :  { %2875 = vrot.lane.b32.xlu1 %v2874_v31, %s3638_s11  ;;  %v3312_v44 = vmul.f32 -1.442695, %v2852_v27 }
0x37d6   :  { %3594 = vpow2.f32 %v3312_v44 }
0x37d7   :  { %v2847_v40 = vpop.f32.mrf.mxu3 }
0x37dc   :  { %v3595_v49 = vpop.eup %3594 }
0x37dd   :  { %v2856_v45 = vadd.f32 1.0, %v3595_v49 }
0x37df   :  { %3596 = vrcp.f32 %v2856_v45  ;;  %v2868_v42 = vand.u32 2147483648, %v2856_v45  ;;  %vm2862_vm9 = vweird.f32 %v2856_v45  ;;  %v2866_v58 = vand.u32 2147483647, %v2856_v45 }
0x37e1   :  { %v2869_v47 = vor.u32 1.1754944e-38, %v2868_v42  ;;  %vm2867_vm12 = vcmp.eq.f32.partialorder %v2866_v58, 8.507059e+37 }
0x37e5   :  { %v3597_v62 = vpop.eup %3596 }
0x37e6   :  { %v2858_v28 = vmul.f32 %v3597_v62, %v2856_v45  ;;  %vm2863_vm8 = vweird.f32 %v3597_v62 }
0x37e7   :  { %vm2864_vm11 = vmor %vm2862_vm9, %vm2863_vm8 }
0x37e8   :  { %v2859_v48 = vsub.f32 1.0, %v2858_v28 }
0x37ea   :  { %v2860_v1 = vmul.f32 %v3597_v62, %v2859_v48 }
0x37ec   :  { %v2861_v51 = vadd.f32 %v3597_v62, %v2860_v1 }
0x37ee   :  { %v2865_v56 = vsel %vm2864_vm11, %v3597_v62, %v2861_v51 }
0x37ef   :  { %v2870_v46 = vsel %vm2867_vm12, %v2869_v47, %v2865_v56 }
0x37f0   :  { %v2885_v61 = vsub.f32 1.0, %v2870_v46  ;;  %v2894_v0 = vmul.f32 %v2892_v33, %v2870_v46 }
0x3846   :  { %v2876_v35 = vpop.permute.xlu1 %2875 }
0x3847   :  { %v2878_v6 = vmul.f32 %v2876_v35, %v2870_v46 }
0x3849   :  { %2880 = vrot.lane.b32.xlu2 %v2878_v6, %s3618_s30 }
0x38a3   :  { %v2881_v41 = vpop.permute.xlu2 %2880 }
0x38a4   :  { %v2883_v25 = vadd.f32 %v2881_v41, %v4516_v24 }
0x38a6   :  { %3598 = vtanh.f32 %v2883_v25 }
0x38ac   :  { %v3599_v57 = vpop.eup %3598 }
0x38ad   :  { %2887 = vrot.lane.b32.xlu0 %v3599_v57, %s3639_s16 }
0x391f   :  { %v2888_v55 = vpop.permute.xlu0 %2887 }
0x3920   :  { %v2890_v23 = vmul.f32 %v2888_v55, %v2885_v61 }
0x3922   :  { %v2895_v13 = vadd.f32 %v2894_v0, %v2890_v23 }
0x3924   :  { %v2896_v18 = vpack.c.bf16 %v2895_v13, %v2895_v13  ;;  %v2960_v4 = vrot.slane %v2895_v13, 6  ;;  %v3035_v40 = vsel %vm133_vm0, %v4522_v43, %v2895_v13 }
0x3926   :  { %v2898_v52 = vrot.slane %v2896_v18, 1 }
0x3928   :  { %2899 = vrot.lane.b32.xlu1 %v2898_v52, %s3639_s16 }
0x399a   :  { %v2900_v5 = vpop.permute.xlu1 %2899 }
0x399b   :  { %3313 = vmatmul.msk.bf16.vlgmr.msra.gmra.mxu0 %vm149_vm1, %v2900_v5 }
0x3a18   :  { %v2913_v14 = vpop.f32.mrf.mxu0 }
0x3a19   :  { %v2918_v36 = vrot.slane %v2913_v14, 4  ;;  %v2940_v8 = vadd.f32 %v2913_v14, %v4462_v15 }
0x3a1b   :  { %v2920_v7 = vadd.f32 %v2918_v36, %v4516_v24  ;;  %v2942_v50 = vrot.slane %v2940_v8, 4 }
0x3a1d   :  { %v3314_v29 = vmul.f32 -1.442695, %v2920_v7  ;;  %2943 = vrot.lane.b32.xlu2 %v2942_v50, %s3638_s11 }
0x3a1f   :  { %3600 = vpow2.f32 %v3314_v29 }
0x3a20   :  { %v2915_v2 = vpop.f32.mrf.mxu0 }
0x3a25   :  { %v3601_v19 = vpop.eup %3600 }
0x3a26   :  { %v2924_v34 = vadd.f32 1.0, %v3601_v19 }
0x3a28   :  { %3602 = vrcp.f32 %v2924_v34  ;;  %v2936_v32 = vand.u32 2147483648, %v2924_v34  ;;  %v2934_v10 = vand.u32 2147483647, %v2924_v34  ;;  %vm2930_vm14 = vweird.f32 %v2924_v34 }
0x3a2a   :  { %v2937_v12 = vor.u32 1.1754944e-38, %v2936_v32  ;;  %vm2935_vm4 = vcmp.eq.f32.partialorder %v2934_v10, 8.507059e+37 }
0x3a2e   :  { %v3603_v16 = vpop.eup %3602 }
0x3a2f   :  { %v2926_v9 = vmul.f32 %v3603_v16, %v2924_v34  ;;  %vm2931_vm13 = vweird.f32 %v3603_v16 }
0x3a30   :  { %vm2932_vm15 = vmor %vm2930_vm14, %vm2931_vm13 }
0x3a31   :  { %v2927_v54 = vsub.f32 1.0, %v2926_v9 }
0x3a33   :  { %v2928_v60 = vmul.f32 %v3603_v16, %v2927_v54 }
0x3a35   :  { %v2929_v59 = vadd.f32 %v3603_v16, %v2928_v60 }
0x3a37   :  { %v2933_v63 = vsel %vm2932_vm15, %v3603_v16, %v2929_v59 }
0x3a38   :  { %v2938_v3 = vsel %vm2935_vm4, %v2937_v12, %v2933_v63 }
0x3a39   :  { %v2962_v20 = vmul.f32 %v2960_v4, %v2938_v3  ;;  %v2953_v26 = vsub.f32 1.0, %v2938_v3 }
0x3a77   :  { %v2944_v22 = vpop.permute.xlu2 %2943 }
0x3a78   :  { %v2946_v37 = vmul.f32 %v2944_v22, %v2938_v3 }
0x3a7a   :  { %2948 = vrot.lane.b32.xlu0 %v2946_v37, %s3618_s30 }
0x3aec   :  { %v2949_v38 = vpop.permute.xlu0 %2948 }
0x3aed   :  { %v2951_v17 = vadd.f32 %v2949_v38, %v4516_v24 }
0x3aef   :  { %3604 = vtanh.f32 %v2951_v17 }
0x3af5   :  { %v3605_v21 = vpop.eup %3604 }
0x3af6   :  { %2955 = vrot.lane.b32.xlu1 %v3605_v21, %s3639_s16 }
0x3b68   :  { %v2956_v39 = vpop.permute.xlu1 %2955 }
0x3b69   :  { %v2958_v30 = vmul.f32 %v2956_v39, %v2953_v26 }
0x3b6b   :  { %v2963_v31 = vadd.f32 %v2962_v20, %v2958_v30 }
0x3b6d   :  { %v2964_v11 = vpack.c.bf16 %v2963_v31, %v2963_v31  ;;  %v3036_v27 = vsel %vm256_vm3, %v3035_v40, %v2963_v31  ;;  %v3028_v52 = vrot.slane %v2963_v31, 6 }
0x3b6f   :  { %v2966_v44 = vrot.slane %v2964_v11, 2 }
0x3b71   :  { %2967 = vrot.lane.b32.xlu2 %v2966_v44, %s3639_s16 }
0x3bcb   :  { %v2968_v49 = vpop.permute.xlu2 %2967 }
0x3bcc   :  { %3315 = vmatmul.msk.bf16.vlgmr.msra.gmra.mxu1 %vm149_vm1, %v2968_v49 }
0x3c49   :  { %v2981_v45 = vpop.f32.mrf.mxu1 }
0x3c4a   :  { %v3008_v62 = vadd.f32 %v2981_v45, %v4462_v15  ;;  %v2986_v43 = vrot.slane %v2981_v45, 2 }
0x3c4c   :  { %v3010_v28 = vrot.slane %v3008_v62, 2  ;;  %v2988_v1 = vadd.f32 %v2986_v43, %v4516_v24 }
0x3c4e   :  { %3011 = vrot.lane.b32.xlu0 %v3010_v28, %s3638_s11  ;;  %v3316_v51 = vmul.f32 -1.442695, %v2988_v1 }
0x3c50   :  { %3606 = vpow2.f32 %v3316_v51 }
0x3c51   :  { %v2983_v48 = vpop.f32.mrf.mxu1 }
0x3c56   :  { %3040 = vrot.lane.b32.xlu0 %v4509_v53, %s3639_s16  ;;  %v3607_v42 = vpop.eup %3606 }
0x3c57   :  { %v2992_v58 = vadd.f32 1.0, %v3607_v42 }
0x3c59   :  { %3608 = vrcp.f32 %v2992_v58  ;;  %v3004_v6 = vand.u32 2147483648, %v2992_v58  ;;  %vm2998_vm3 = vweird.f32 %v2992_v58  ;;  %v3002_v41 = vand.u32 2147483647, %v2992_v58 }
0x3c5b   :  { %v3005_v53 = vor.u32 1.1754944e-38, %v3004_v6  ;;  %vm3003_vm5 = vcmp.eq.f32.partialorder %v3002_v41, 8.507059e+37 }
0x3c5f   :  { %v3609_v56 = vpop.eup %3608 }
0x3c60   :  { %v2994_v47 = vmul.f32 %v3609_v56, %v2992_v58  ;;  %vm2999_vm0 = vweird.f32 %v3609_v56 }
0x3c61   :  { %vm3000_vm10 = vmor %vm2998_vm3, %vm2999_vm0 }
0x3c62   :  { %v2995_v35 = vsub.f32 1.0, %v2994_v47 }
0x3c64   :  { %v2996_v46 = vmul.f32 %v3609_v56, %v2995_v35 }
0x3c66   :  { %v2997_v15 = vadd.f32 %v3609_v56, %v2996_v46 }
0x3c68   :  { %v3001_v25 = vsel %vm3000_vm10, %v3609_v56, %v2997_v15 }
0x3c69   :  { %v3006_v61 = vsel %vm3003_vm5, %v3005_v53, %v3001_v25 }
0x3c6a   :  { %v3021_v18 = vsub.f32 1.0, %v3006_v61  ;;  %v3030_v14 = vmul.f32 %v3028_v52, %v3006_v61 }
0x3cc0   :  { %v3012_v57 = vpop.permute.xlu0 %3011 }
0x3cc1   :  { %v3014_v33 = vmul.f32 %v3012_v57, %v3006_v61 }
0x3cc3   :  { %3016 = vrot.lane.b32.xlu1 %v3014_v33, %s3618_s30 }
0x3cc8   :  { %v3041_v55 = vpop.permute.xlu0 %3040 }
0x3cc9   :  { %3046 = vst.msk [vmem:[%s3080_s7] sm:$0xff] %vm149_vm1, %v3041_v55 }
0x3d35   :  { %v3017_v0 = vpop.permute.xlu1 %3016 }
0x3d36   :  { %v3019_v23 = vadd.f32 %v3017_v0, %v4516_v24 }
0x3d38   :  { %3610 = vtanh.f32 %v3019_v23 }
0x3d3e   :  { %v3611_v13 = vpop.eup %3610 }
0x3d3f   :  { %3023 = vrot.lane.b32.xlu2 %v3611_v13, %s3639_s16 }
0x3d99   :  { %v3024_v5 = vpop.permute.xlu2 %3023 }
0x3d9a   :  { %v3026_v36 = vmul.f32 %v3024_v5, %v3021_v18 }
0x3d9c   :  { %v3031_v8 = vadd.f32 %v3030_v14, %v3026_v36 }
0x3d9e   :  { %v3037_v7 = vsel %vm140_vm2, %v3036_v27, %v3031_v8 }
0x3d9f   :  { %3042 = vrot.lane.b32.xlu1 %v3037_v7, %s3639_s16 }
0x3e11   :  { %v3043_v50 = vpop.permute.xlu1 %3042 }
0x3e12   :  { %3047 = vst.msk [vmem:[%s3080_s7 + $0x8] sm:$0xff] %vm149_vm1, %v3043_v50 }

</bundles_post_ra>
